<compile_context>
chip_gen: v6e
topology: v6e:2x2x1
jax: 0.10.0
libtpu: 0.0.40
codegen_flags: <defaults>
</compile_context>

<pallas_src>
import functools

import jax
import jax.numpy as jnp
from jax import lax
from jax.experimental import pallas as pl
from jax.experimental.pallas import tpu as pltpu

_EPS = 1e-5
_LANE = 128


def _round_up(x, m):
    return ((x + m - 1) // m) * m


def _make_conv_kernel(H, W, th, apply_act, compute_dtype):
    """3x3 'same' conv over a (th+2)-row window, as 3 kw-im2col MXU matmuls + per-tile BN stats.

    apply_act=True additionally applies the previous stage's folded BatchNorm (y*scale + shift)
    + ReLU to the window before the conv; out-of-image rows are forced back to exact zeros.
    """

    def conv_body(top_ref, mid_ref, bot_ref, scale_ref, shift_ref, w_ref, y_ref, stats_ref):
        # top_ref / bot_ref: (1, 1, W, Ci) clamped halo rows; mid_ref: (1, th, W, Ci)
        # w_ref: (3, 3*Ci, Co) kw-im2col weights; y_ref: (1, th, W, Co); stats_ref: (1, 1, 2, Co)
        Ci = mid_ref.shape[-1]
        Co = y_ref.shape[-1]
        h = pl.program_id(1)
        row0 = h * th

        # Assemble the (th+2)-row window (row i <-> global image row row0 - 1 + i).
        tile = jnp.concatenate(
            [top_ref[0].astype(jnp.float32),
             mid_ref[0].astype(jnp.float32),
             bot_ref[0].astype(jnp.float32)], axis=0)                  # (th+2, W, Ci)

        if apply_act:
            # Previous stage's BN+ReLU as a single f32 FMA (gamma folded into scale, mean into shift).
            tile = jnp.maximum(tile * scale_ref[...] + shift_ref[...], 0.0)

        # Zero every row outside the image: kills (a) the clamped duplicate halo rows at the image
        # borders, (b) grid-tail rows, and restores the conv's zero padding *after* the BN affine.
        grow = row0 - 1 + lax.broadcasted_iota(jnp.int32, (th + 2, 1, 1), 0)
        tile = jnp.where((grow >= 0) & (grow < H), tile, 0.0)

        # kw-im2col: channel-concat the three column shifts so each kh is ONE matmul with K = 3*Ci.
        zcol = jnp.zeros((th + 2, 1, Ci), jnp.float32)
        left = jnp.concatenate([zcol, tile[:, :W - 1, :]], axis=1)     # col w <- input col w-1 (kw=0)
        right = jnp.concatenate([tile[:, 1:, :], zcol], axis=1)        # col w <- input col w+1 (kw=2)
        x3 = jnp.concatenate([left, tile, right], axis=-1).astype(compute_dtype)  # (th+2, W, 3*Ci)

        acc = None                                                     # f32 accumulator (th*W, Co)
        for kh in range(3):
            xs = x3[kh:kh + th].reshape(th * W, 3 * Ci)                # cheap leading-dim slice
            part = jnp.dot(xs, w_ref[kh], preferred_element_type=jnp.float32)
            acc = part if acc is None else acc + part
        # NOTE: for very large th*W the accumulator could move to a VMEM scratch (+= per kh) to
        # bound vreg pressure; with th=8 and 3 adds the compiler handles it fine.

        # Tail masking (only generated when H % th != 0): output rows past H must not pollute stats.
        if H % th:
            omask = ((row0 + lax.broadcasted_iota(jnp.int32, (th, W), 0)).reshape(th * W, 1) < H)
            acc = jnp.where(omask, acc, 0.0)
            cnt = (jnp.minimum(th, H - row0) * W).astype(jnp.float32)
        else:
            omask = None
            cnt = float(th * W)

        y_ref[...] = acc.reshape(1, th, W, Co).astype(y_ref.dtype)

        # Per-tile (sum, centered M2) so the wrapper can do a Chan-style combine (avoids the
        # catastrophic cancellation of a global E[x^2] - E[x]^2).
        csum = jnp.sum(acc, axis=0, keepdims=True)                     # (1, Co)
        dev = acc - csum / cnt
        if omask is not None:
            dev = jnp.where(omask, dev, 0.0)
        stats_ref[0, 0, 0:1, :] = csum
        stats_ref[0, 0, 1:2, :] = jnp.sum(dev * dev, axis=0, keepdims=True)

    if apply_act:
        return conv_body
    # conv-only variant (pass A): no scale/shift inputs in the signature.
    return lambda top, mid, bot, w, y, st: conv_body(top, mid, bot, None, None, w, y, st)


def _bn_relu_kernel(y_ref, scale_ref, shift_ref, o_ref):
    """Folded BatchNorm + ReLU over a large, lane-dense (rows, C) tile.  f32 elementwise math."""
    o_ref[...] = jnp.maximum(y_ref[...].astype(jnp.float32) * scale_ref[...] + shift_ref[...], 0.0)


def _fold_bn(stats, counts, gamma, beta, total_count):
    """Chan-combine per-tile (sum, centered M2) stats and fold training-mode BN into (scale, shift)."""
    s = stats[:, :, 0, :]                                  # (N, HT, C) per-tile sums
    m2 = stats[:, :, 1, :]                                 # (N, HT, C) per-tile centered M2
    c = counts[None, :, None]                              # (1, HT, 1) per-tile element counts
    total = jnp.sum(s, axis=(0, 1))
    mean = total / total_count
    delta = s / c - mean[None, None, :]
    var = (jnp.sum(m2, axis=(0, 1)) + jnp.sum(c * delta * delta, axis=(0, 1))) / total_count
    var = jnp.maximum(var, 0.0)                            # biased variance (PyTorch BN, training)
    scale = gamma * lax.rsqrt(var + _EPS)
    shift = beta - mean * scale
    return scale.reshape(1, -1), shift.reshape(1, -1)


def blind_spot_double_conv(x_nchw, params, *, row_tile=8, use_bf16_matmul=True):
    """NCHW in / NCHW out.  Three gridded Pallas passes; see module docstring."""
    f32 = jnp.float32
    cdt = jnp.bfloat16 if use_bf16_matmul else f32         # matmul operand dtype
    sdt = jnp.bfloat16 if use_bf16_matmul else f32         # HBM dtype of the conv1 / conv2 raws

    x = jnp.transpose(x_nchw, (0, 2, 3, 1)).astype(f32)    # NHWC
    N, H, W, Cin = x.shape
    Cout = params["w1"].shape[-1]
    Cpo = _round_up(Cout, _LANE)                           # lane-dense output channels

    th = max(1, min(row_tile, H))
    HT = pl.cdiv(H, th)

    # Weights: pad ONLY output channels to 128 (padded channels get zero weights / gamma / beta so
    # they stay exactly 0), fold kw into K (im2col layout) and pre-cast once to the matmul dtype.
    w1k = jnp.pad(params["w1"].astype(f32), ((0, 0), (0, 0), (0, 0), (0, Cpo - Cout)))
    w1k = w1k.reshape(3, 3 * Cin, Cpo).astype(cdt)
    w2k = jnp.pad(params["w2"].astype(f32), ((0, 0), (0, 0), (0, Cpo - Cout), (0, Cpo - Cout)))
    w2k = w2k.reshape(3, 3 * Cpo, Cpo).astype(cdt)
    g1 = jnp.pad(params["g1"].reshape(-1).astype(f32), (0, Cpo - Cout))
    be1 = jnp.pad(params["be1"].reshape(-1).astype(f32), (0, Cpo - Cout))
    g2 = jnp.pad(params["g2"].reshape(-1).astype(f32), (0, Cpo - Cout))
    be2 = jnp.pad(params["be2"].reshape(-1).astype(f32), (0, Cpo - Cout))
    # NOTE: params["b1"] / params["b2"] are intentionally unused: training-mode BatchNorm's
    # batch-mean subtraction cancels a per-channel conv bias exactly.

    total_count = float(N * H * W)
    counts = jnp.full((HT,), float(th * W), f32).at[-1].set(float((H - (HT - 1) * th) * W))

    cparams = pltpu.CompilerParams(dimension_semantics=("parallel", "parallel"))

    def row_specs(C):
        # Main row block + two clamped 1-row halo blocks (clamped duplicates are zeroed in-kernel).
        top = pl.BlockSpec((1, 1, W, C), lambda n, h: (n, jnp.maximum(h * th - 1, 0), 0, 0))
        mid = pl.BlockSpec((1, th, W, C), lambda n, h: (n, h, 0, 0))
        bot = pl.BlockSpec((1, 1, W, C), lambda n, h: (n, jnp.minimum(h * th + th, H - 1), 0, 0))
        return top, mid, bot

    y_spec = pl.BlockSpec((1, th, W, Cpo), lambda n, h: (n, h, 0, 0))
    st_spec = pl.BlockSpec((1, 1, 2, Cpo), lambda n, h: (n, h, 0, 0))
    vec_spec = pl.BlockSpec((1, Cpo), lambda n, h: (0, 0))
    # Weights / scale / shift are grid-invariant (constant block index -> Pallas skips re-fetch).
    # pipeline_mode=pl.Buffered(1) could halve their double-buffer VMEM, but the per-step footprint
    # is already only a few MiB so the default is kept.
    st_shape = jax.ShapeDtypeStruct((N, HT, 2, Cpo), f32)

    # ---- pass A: conv1 (the "blind spot" conv; its masking is an exact no-op) + BN1 stats -------
    t1, m1, b1 = row_specs(Cin)
    y1, st1 = pl.pallas_call(
        _make_conv_kernel(H, W, th, apply_act=False, compute_dtype=cdt),
        grid=(N, HT),
        in_specs=[t1, m1, b1, pl.BlockSpec((3, 3 * Cin, Cpo), lambda n, h: (0, 0, 0))],
        out_specs=(y_spec, st_spec),
        out_shape=(jax.ShapeDtypeStruct((N, H, W, Cpo), sdt), st_shape),
        compiler_params=cparams,
    )(x, x, x, w1k)

    scale1, shift1 = _fold_bn(st1, counts, g1, be1, total_count)

    # ---- pass B: folded BN1 + ReLU + conv2 + BN2 stats -------------------------------------------
    t2, m2, b2 = row_specs(Cpo)
    y2, st2 = pl.pallas_call(
        _make_conv_kernel(H, W, th, apply_act=True, compute_dtype=cdt),
        grid=(N, HT),
        in_specs=[t2, m2, b2, vec_spec, vec_spec,
                  pl.BlockSpec((3, 3 * Cpo, Cpo), lambda n, h: (0, 0, 0))],
        out_specs=(y_spec, st_spec),
        out_shape=(jax.ShapeDtypeStruct((N, H, W, Cpo), sdt), st_shape),
        compiler_params=cparams,
    )(y1, y1, y1, scale1, shift1, w2k)

    scale2, shift2 = _fold_bn(st2, counts, g2, be2, total_count)

    # ---- pass C: folded BN2 + ReLU over the flattened activation (large lane-dense tiles) -------
    R = N * H * W
    tr = R if R <= 1024 else 1024
    y2v = y2.reshape(R, Cpo)
    out_flat = pl.pallas_call(
        _bn_relu_kernel,
        grid=(pl.cdiv(R, tr),),
        in_specs=[pl.BlockSpec((tr, Cpo), lambda i: (i, 0)),
                  pl.BlockSpec((1, Cpo), lambda i: (0, 0)),
                  pl.BlockSpec((1, Cpo), lambda i: (0, 0))],
        out_specs=pl.BlockSpec((tr, Cpo), lambda i: (i, 0)),
        out_shape=jax.ShapeDtypeStruct((R, Cpo), f32),
        compiler_params=pltpu.CompilerParams(dimension_semantics=("parallel",)),
        input_output_aliases=({0: 0} if sdt == f32 else {}),   # in-place when dtypes match
    )(y2v, scale2, shift2)

    # Slice off the padded channels and return NCHW.  (Fusing this into pass C would require an
    # in-kernel lane<->sublane transpose and non-lane-dense stores when Cout % 128 != 0, so the
    # cheap slice+transpose over the *real* Cout channels is left to XLA.)
    y = out_flat.reshape(N, H, W, Cpo)[..., :Cout]
    return jnp.transpose(y, (0, 3, 1, 2))


# ---------------------------- pure-JAX reference (for verification) ----------------------------
def _reference(x_nchw, p):
    x = jnp.transpose(x_nchw, (0, 2, 3, 1)).astype(jnp.float32)

    def conv(v, w, b):
        y = lax.conv_general_dilated(
            v, w, window_strides=(1, 1), padding="SAME",
            dimension_numbers=("NHWC", "HWIO", "NHWC"),
            precision=lax.Precision.HIGHEST)
        return y + b.reshape(1, 1, 1, -1)

    def bn_relu(v, g, be):
        m = jnp.mean(v, axis=(0, 1, 2), keepdims=True)
        var = jnp.mean((v - m) ** 2, axis=(0, 1, 2), keepdims=True)
        y = (v - m) * lax.rsqrt(var + _EPS) * g.reshape(1, 1, 1, -1) + be.reshape(1, 1, 1, -1)
        return jnp.maximum(y, 0.0)

    y = bn_relu(conv(x, p["w1"], p["b1"]), p["g1"], p["be1"])
    y = bn_relu(conv(y, p["w2"], p["b2"]), p["g2"], p["be2"])
    return jnp.transpose(y, (0, 3, 1, 2))


if __name__ == "__main__":
    key = jax.random.PRNGKey(0)
    ks = jax.random.split(key, 10)

    N, Cin, Cout, H, W = 2, 4, 8, 16, 16

    # Deterministic synthetic parameters (weights in HWIO layout for the NHWC kernels).
    params = {
        "w1": 0.2 * jax.random.normal(ks[0], (3, 3, Cin, Cout), jnp.float32),
        "b1": 0.1 * jax.random.normal(ks[1], (1, Cout), jnp.float32),
        "g1": 1.0 + 0.1 * jax.random.normal(ks[2], (1, Cout), jnp.float32),
        "be1": 0.1 * jax.random.normal(ks[3], (1, Cout), jnp.float32),
        "w2": 0.2 * jax.random.normal(ks[4], (3, 3, Cout, Cout), jnp.float32),
        "b2": 0.1 * jax.random.normal(ks[5], (1, Cout), jnp.float32),
        "g2": 1.0 + 0.1 * jax.random.normal(ks[6], (1, Cout), jnp.float32),
        "be2": 0.1 * jax.random.normal(ks[7], (1, Cout), jnp.float32),
    }
    x = jax.random.normal(ks[9], (N, Cin, H, W), jnp.float32)

    ref = _reference(x, params)

    # f32 matmul path: tight tolerance against the f32 reference.
    run_f32 = jax.jit(functools.partial(blind_spot_double_conv, use_bf16_matmul=False))
    out_f32 = jax.block_until_ready(run_f32(x, params))
    assert out_f32.shape == (N, Cout, H, W), out_f32.shape
    err_f32 = float(jnp.max(jnp.abs(out_f32 - ref)))
    assert jnp.allclose(out_f32, ref, atol=2e-3, rtol=2e-3), f"f32 max abs err {err_f32}"

    # Default bf16 MXU path (bf16 operands + bf16 intermediates, f32 accumulation / BN math):
    # looser tolerance against the f32 reference.
    run_bf16 = jax.jit(blind_spot_double_conv)
    out_bf16 = jax.block_until_ready(run_bf16(x, params))
    assert out_bf16.shape == (N, Cout, H, W), out_bf16.shape
    err_bf16 = float(jnp.max(jnp.abs(out_bf16 - ref)))
    assert jnp.allclose(out_bf16, ref, atol=1e-1, rtol=1e-1), f"bf16 max abs err {err_bf16}"

    print("KERNEL_OK")
</pallas_src>

<mosaic_0001>
module attributes {stable_mosaic.version = 11 : i64} {
  func.func @_lambda_(%arg0: i32, %arg1: i32, %arg2: memref<1x1x16x4xf32, #tpu.memory_space<vmem>>, %arg3: memref<1x8x16x4xf32, #tpu.memory_space<vmem>>, %arg4: memref<1x1x16x4xf32, #tpu.memory_space<vmem>>, %arg5: memref<3x12x128xf32, #tpu.memory_space<vmem>>, %arg6: memref<1x8x16x128xf32, #tpu.memory_space<vmem>>, %arg7: memref<1x1x2x128xf32, #tpu.memory_space<vmem>>) attributes {dimension_semantics = [#tpu.dimension_semantics<parallel>, #tpu.dimension_semantics<parallel>], iteration_bounds = array<i64: 2, 2>, scalar_prefetch = 0 : i64, scratch_operands = 0 : i64, tpu.core_type = #tpu.core_type<tc>, window_params = [{transform_indices = @transform_0, window_bounds = array<i64: 1, 1, 16, 4>}, {transform_indices = @transform_1, window_bounds = array<i64: 1, 8, 16, 4>}, {transform_indices = @transform_2, window_bounds = array<i64: 1, 1, 16, 4>}, {pipeline_mode = #tpu.pipeline_mode<synchronous>, transform_indices = @transform_3, window_bounds = array<i64: 3, 12, 128>}, {transform_indices = @transform_4, window_bounds = array<i64: 1, 8, 16, 128>}, {transform_indices = @transform_5, window_bounds = array<i64: 1, 1, 2, 128>}]} {
    %c8_i32 = arith.constant 8 : i32
    %0 = arith.muli %arg1, %c8_i32 : i32
    %c0 = arith.constant 0 : index
    %c0_0 = arith.constant 0 : index
    %c0_1 = arith.constant 0 : index
    %c0_2 = arith.constant 0 : index
    %1 = vector.load %arg2[%c0, %c0_0, %c0_1, %c0_2] : memref<1x1x16x4xf32, #tpu.memory_space<vmem>>, vector<1x1x16x4xf32>
    %2 = vector.shape_cast %1 : vector<1x1x16x4xf32> to vector<1x16x4xf32>
    %c0_3 = arith.constant 0 : index
    %c0_4 = arith.constant 0 : index
    %c0_5 = arith.constant 0 : index
    %c0_6 = arith.constant 0 : index
    %3 = vector.load %arg3[%c0_3, %c0_4, %c0_5, %c0_6] : memref<1x8x16x4xf32, #tpu.memory_space<vmem>>, vector<1x8x16x4xf32>
    %4 = vector.shape_cast %3 : vector<1x8x16x4xf32> to vector<8x16x4xf32>
    %c0_7 = arith.constant 0 : index
    %c0_8 = arith.constant 0 : index
    %c0_9 = arith.constant 0 : index
    %c0_10 = arith.constant 0 : index
    %5 = vector.load %arg4[%c0_7, %c0_8, %c0_9, %c0_10] : memref<1x1x16x4xf32, #tpu.memory_space<vmem>>, vector<1x1x16x4xf32>
    %6 = vector.shape_cast %5 : vector<1x1x16x4xf32> to vector<1x16x4xf32>
    %7 = tpu.concatenate %2, %4, %6 in 0 : vector<1x16x4xf32>, vector<8x16x4xf32>, vector<1x16x4xf32> -> vector<10x16x4xf32>
    %c1_i32 = arith.constant 1 : i32
    %8 = arith.subi %0, %c1_i32 : i32
    %9 = tpu.iota {dimensions = array<i32: 0>} : vector<10x1x1xi32>
    %10 = vector.broadcast %8 : i32 to vector<10x1x1xi32>
    %11 = arith.addi %10, %9 : vector<10x1x1xi32>
    %c0_i32 = arith.constant 0 : i32
    %12 = vector.broadcast %c0_i32 : i32 to vector<10x1x1xi32>
    %13 = arith.cmpi sge, %11, %12 : vector<10x1x1xi32>
    %c16_i32 = arith.constant 16 : i32
    %14 = vector.broadcast %c16_i32 : i32 to vector<10x1x1xi32>
    %15 = arith.cmpi slt, %11, %14 : vector<10x1x1xi32>
    %16 = arith.andi %13, %15 : vector<10x1x1xi1>
    %cst = arith.constant 0.000000e+00 : f32
    %17 = vector.shape_cast %16 : vector<10x1x1xi1> to vector<10x1x1xi1>
    %18 = vector.broadcast %17 : vector<10x1x1xi1> to vector<10x16x4xi1>
    %19 = vector.broadcast %cst : f32 to vector<10x16x4xf32>
    %20 = arith.select %18, %7, %19 : vector<10x16x4xi1>, vector<10x16x4xf32>
    %cst_11 = arith.constant 0.000000e+00 : f32
    %21 = vector.broadcast %cst_11 : f32 to vector<10x1x4xf32>
    %22 = vector.extract_strided_slice %20 {offsets = [0, 0, 0], sizes = [10, 15, 4], strides = [1, 1, 1]} : vector<10x16x4xf32> to vector<10x15x4xf32>
    %23 = tpu.concatenate %21, %22 in 1 : vector<10x1x4xf32>, vector<10x15x4xf32> -> vector<10x16x4xf32>
    %24 = vector.extract_strided_slice %20 {offsets = [0, 1, 0], sizes = [10, 15, 4], strides = [1, 1, 1]} : vector<10x16x4xf32> to vector<10x15x4xf32>
    %25 = tpu.concatenate %24, %21 in 1 : vector<10x15x4xf32>, vector<10x1x4xf32> -> vector<10x16x4xf32>
    %26 = tpu.concatenate %23, %20, %25 in 2 : vector<10x16x4xf32>, vector<10x16x4xf32>, vector<10x16x4xf32> -> vector<10x16x12xf32>
    %27 = vector.extract_strided_slice %26 {offsets = [0, 0, 0], sizes = [8, 16, 12], strides = [1, 1, 1]} : vector<10x16x12xf32> to vector<8x16x12xf32>
    %28 = vector.shape_cast %27 : vector<8x16x12xf32> to vector<128x12xf32>
    %c0_12 = arith.constant 0 : index
    %c0_13 = arith.constant 0 : index
    %c0_14 = arith.constant 0 : index
    %29 = vector.load %arg5[%c0_12, %c0_13, %c0_14] : memref<3x12x128xf32, #tpu.memory_space<vmem>>, vector<1x12x128xf32>
    %30 = vector.shape_cast %29 : vector<1x12x128xf32> to vector<12x128xf32>
    %cst_15 = arith.constant dense<0.000000e+00> : vector<128x128xf32>
    %31 = tpu.matmul %28, %30, %cst_15 {dimension_numbers = #tpu.dot_dimension_numbers<[1], [0], [0], [1], [0, 0, 1, 1], [], []>} : vector<128x12xf32>, vector<12x128xf32>, vector<128x128xf32> -> vector<128x128xf32>
    %32 = vector.extract_strided_slice %26 {offsets = [1, 0, 0], sizes = [8, 16, 12], strides = [1, 1, 1]} : vector<10x16x12xf32> to vector<8x16x12xf32>
    %33 = vector.shape_cast %32 : vector<8x16x12xf32> to vector<128x12xf32>
    %c1 = arith.constant 1 : index
    %c0_16 = arith.constant 0 : index
    %c0_17 = arith.constant 0 : index
    %34 = vector.load %arg5[%c1, %c0_16, %c0_17] : memref<3x12x128xf32, #tpu.memory_space<vmem>>, vector<1x12x128xf32>
    %35 = vector.shape_cast %34 : vector<1x12x128xf32> to vector<12x128xf32>
    %cst_18 = arith.constant dense<0.000000e+00> : vector<128x128xf32>
    %36 = tpu.matmul %33, %35, %cst_18 {dimension_numbers = #tpu.dot_dimension_numbers<[1], [0], [0], [1], [0, 0, 1, 1], [], []>} : vector<128x12xf32>, vector<12x128xf32>, vector<128x128xf32> -> vector<128x128xf32>
    %37 = arith.addf %31, %36 : vector<128x128xf32>
    %38 = vector.extract_strided_slice %26 {offsets = [2, 0, 0], sizes = [8, 16, 12], strides = [1, 1, 1]} : vector<10x16x12xf32> to vector<8x16x12xf32>
    %39 = vector.shape_cast %38 : vector<8x16x12xf32> to vector<128x12xf32>
    %c2 = arith.constant 2 : index
    %c0_19 = arith.constant 0 : index
    %c0_20 = arith.constant 0 : index
    %40 = vector.load %arg5[%c2, %c0_19, %c0_20] : memref<3x12x128xf32, #tpu.memory_space<vmem>>, vector<1x12x128xf32>
    %41 = vector.shape_cast %40 : vector<1x12x128xf32> to vector<12x128xf32>
    %cst_21 = arith.constant dense<0.000000e+00> : vector<128x128xf32>
    %42 = tpu.matmul %39, %41, %cst_21 {dimension_numbers = #tpu.dot_dimension_numbers<[1], [0], [0], [1], [0, 0, 1, 1], [], []>} : vector<128x12xf32>, vector<12x128xf32>, vector<128x128xf32> -> vector<128x128xf32>
    %43 = arith.addf %37, %42 : vector<128x128xf32>
    %44 = vector.shape_cast %43 : vector<128x128xf32> to vector<1x8x16x128xf32>
    %c0_22 = arith.constant 0 : index
    %c0_23 = arith.constant 0 : index
    %c0_24 = arith.constant 0 : index
    %c0_25 = arith.constant 0 : index
    %45 = vector.load %arg6[%c0_22, %c0_23, %c0_24, %c0_25] : memref<1x8x16x128xf32, #tpu.memory_space<vmem>>, vector<1x8x16x128xf32>
    tpu.vector_store %arg6[%c0_22, %c0_23, %c0_24, %c0_25], %44 {strides = array<i32>} : memref<1x8x16x128xf32, #tpu.memory_space<vmem>>, vector<1x8x16x128xf32>,
    %cst_26 = arith.constant dense<0.000000e+00> : vector<128xf32>
    %46 = vector.multi_reduction <add>, %43, %cst_26 [0] : vector<128x128xf32> to vector<128xf32>
    %47 = vector.shape_cast %46 : vector<128xf32> to vector<1x128xf32>
    %cst_27 = arith.constant 1.280000e+02 : f32
    %48 = vector.broadcast %cst_27 : f32 to vector<1x128xf32>
    %49 = arith.divf %47, %48 : vector<1x128xf32>
    %50 = vector.broadcast %49 : vector<1x128xf32> to vector<128x128xf32>
    %51 = arith.subf %43, %50 : vector<128x128xf32>
    %c0_28 = arith.constant 0 : index
    %c0_29 = arith.constant 0 : index
    %c0_30 = arith.constant 0 : index
    %c0_31 = arith.constant 0 : index
    %52 = vector.load %arg7[%c0_28, %c0_29, %c0_30, %c0_31] : memref<1x1x2x128xf32, #tpu.memory_space<vmem>>, vector<1x1x1x128xf32>
    %53 = vector.shape_cast %52 : vector<1x1x1x128xf32> to vector<1x128xf32>
    %54 = vector.shape_cast %47 : vector<1x128xf32> to vector<1x1x1x128xf32>
    tpu.vector_store %arg7[%c0_28, %c0_29, %c0_30, %c0_31], %54 {strides = array<i32>} : memref<1x1x2x128xf32, #tpu.memory_space<vmem>>, vector<1x1x1x128xf32>,
    %55 = arith.mulf %51, %51 : vector<128x128xf32>
    %cst_32 = arith.constant dense<0.000000e+00> : vector<128xf32>
    %56 = vector.multi_reduction <add>, %55, %cst_32 [0] : vector<128x128xf32> to vector<128xf32>
    %57 = vector.shape_cast %56 : vector<128xf32> to vector<1x128xf32>
    %c0_33 = arith.constant 0 : index
    %c0_34 = arith.constant 0 : index
    %c1_35 = arith.constant 1 : index
    %c0_36 = arith.constant 0 : index
    %58 = vector.load %arg7[%c0_33, %c0_34, %c1_35, %c0_36] : memref<1x1x2x128xf32, #tpu.memory_space<vmem>>, vector<1x1x1x128xf32>
    %59 = vector.shape_cast %58 : vector<1x1x1x128xf32> to vector<1x128xf32>
    %60 = vector.shape_cast %57 : vector<1x128xf32> to vector<1x1x1x128xf32>
    tpu.vector_store %arg7[%c0_33, %c0_34, %c1_35, %c0_36], %60 {strides = array<i32>} : memref<1x1x2x128xf32, #tpu.memory_space<vmem>>, vector<1x1x1x128xf32>,
    return
  }
  func.func @transform_0(%arg0: i32, %arg1: i32) -> (i32, i32, i32, i32) {
    %c8_i32 = arith.constant 8 : i32
    %0 = arith.muli %arg1, %c8_i32 : i32
    %c1_i32 = arith.constant 1 : i32
    %1 = arith.subi %0, %c1_i32 : i32
    %c0_i32 = arith.constant 0 : i32
    %2 = arith.maxsi %1, %c0_i32 : i32
    %c0_i32_0 = arith.constant 0 : i32
    %c0_i32_1 = arith.constant 0 : i32
    %c0_i32_2 = arith.constant 0 : i32
    return %arg0, %2, %c0_i32_0, %c0_i32_1 : i32, i32, i32, i32
  }
  func.func @transform_1(%arg0: i32, %arg1: i32) -> (i32, i32, i32, i32) {
    %c0_i32 = arith.constant 0 : i32
    %c0_i32_0 = arith.constant 0 : i32
    %c0_i32_1 = arith.constant 0 : i32
    return %arg0, %arg1, %c0_i32, %c0_i32_0 : i32, i32, i32, i32
  }
  func.func @transform_2(%arg0: i32, %arg1: i32) -> (i32, i32, i32, i32) {
    %c8_i32 = arith.constant 8 : i32
    %0 = arith.muli %arg1, %c8_i32 : i32
    %c8_i32_0 = arith.constant 8 : i32
    %1 = arith.addi %0, %c8_i32_0 : i32
    %c15_i32 = arith.constant 15 : i32
    %2 = arith.minsi %1, %c15_i32 : i32
    %c0_i32 = arith.constant 0 : i32
    %c0_i32_1 = arith.constant 0 : i32
    %c0_i32_2 = arith.constant 0 : i32
    return %arg0, %2, %c0_i32, %c0_i32_1 : i32, i32, i32, i32
  }
  func.func @transform_3(%arg0: i32, %arg1: i32) -> (i32, i32, i32) {
    %c0_i32 = arith.constant 0 : i32
    %c0_i32_0 = arith.constant 0 : i32
    %c0_i32_1 = arith.constant 0 : i32
    %c0_i32_2 = arith.constant 0 : i32
    return %c0_i32, %c0_i32_0, %c0_i32_1 : i32, i32, i32
  }
  func.func @transform_4(%arg0: i32, %arg1: i32) -> (i32, i32, i32, i32) {
    %c0_i32 = arith.constant 0 : i32
    %c0_i32_0 = arith.constant 0 : i32
    %c0_i32_1 = arith.constant 0 : i32
    return %arg0, %arg1, %c0_i32, %c0_i32_0 : i32, i32, i32, i32
  }
  func.func @transform_5(%arg0: i32, %arg1: i32) -> (i32, i32, i32, i32) {
    %c0_i32 = arith.constant 0 : i32
    %c0_i32_0 = arith.constant 0 : i32
    %c0_i32_1 = arith.constant 0 : i32
    return %arg0, %arg1, %c0_i32, %c0_i32_0 : i32, i32, i32, i32
  }
}

module attributes {stable_mosaic.version = 11 : i64} {
  func.func @conv_body(%arg0: i32, %arg1: i32, %arg2: memref<1x1x16x128xf32, #tpu.memory_space<vmem>>, %arg3: memref<1x8x16x128xf32, #tpu.memory_space<vmem>>, %arg4: memref<1x1x16x128xf32, #tpu.memory_space<vmem>>, %arg5: memref<1x128xf32, #tpu.memory_space<vmem>>, %arg6: memref<1x128xf32, #tpu.memory_space<vmem>>, %arg7: memref<3x384x128xf32, #tpu.memory_space<vmem>>, %arg8: memref<1x8x16x128xf32, #tpu.memory_space<vmem>>, %arg9: memref<1x1x2x128xf32, #tpu.memory_space<vmem>>) attributes {dimension_semantics = [#tpu.dimension_semantics<parallel>, #tpu.dimension_semantics<parallel>], iteration_bounds = array<i64: 2, 2>, scalar_prefetch = 0 : i64, scratch_operands = 0 : i64, tpu.core_type = #tpu.core_type<tc>, window_params = [{transform_indices = @transform_0, window_bounds = array<i64: 1, 1, 16, 128>}, {transform_indices = @transform_1, window_bounds = array<i64: 1, 8, 16, 128>}, {transform_indices = @transform_2, window_bounds = array<i64: 1, 1, 16, 128>}, {pipeline_mode = #tpu.pipeline_mode<synchronous>, transform_indices = @transform_3, window_bounds = array<i64: 1, 128>}, {pipeline_mode = #tpu.pipeline_mode<synchronous>, transform_indices = @transform_4, window_bounds = array<i64: 1, 128>}, {pipeline_mode = #tpu.pipeline_mode<synchronous>, transform_indices = @transform_5, window_bounds = array<i64: 3, 384, 128>}, {transform_indices = @transform_6, window_bounds = array<i64: 1, 8, 16, 128>}, {transform_indices = @transform_7, window_bounds = array<i64: 1, 1, 2, 128>}]} {
    %c8_i32 = arith.constant 8 : i32
    %0 = arith.muli %arg1, %c8_i32 : i32
    %c0 = arith.constant 0 : index
    %c0_0 = arith.constant 0 : index
    %c0_1 = arith.constant 0 : index
    %c0_2 = arith.constant 0 : index
    %1 = vector.load %arg2[%c0, %c0_0, %c0_1, %c0_2] : memref<1x1x16x128xf32, #tpu.memory_space<vmem>>, vector<1x1x16x128xf32>
    %2 = vector.shape_cast %1 : vector<1x1x16x128xf32> to vector<1x16x128xf32>
    %c0_3 = arith.constant 0 : index
    %c0_4 = arith.constant 0 : index
    %c0_5 = arith.constant 0 : index
    %c0_6 = arith.constant 0 : index
    %3 = vector.load %arg3[%c0_3, %c0_4, %c0_5, %c0_6] : memref<1x8x16x128xf32, #tpu.memory_space<vmem>>, vector<1x8x16x128xf32>
    %4 = vector.shape_cast %3 : vector<1x8x16x128xf32> to vector<8x16x128xf32>
    %c0_7 = arith.constant 0 : index
    %c0_8 = arith.constant 0 : index
    %c0_9 = arith.constant 0 : index
    %c0_10 = arith.constant 0 : index
    %5 = vector.load %arg4[%c0_7, %c0_8, %c0_9, %c0_10] : memref<1x1x16x128xf32, #tpu.memory_space<vmem>>, vector<1x1x16x128xf32>
    %6 = vector.shape_cast %5 : vector<1x1x16x128xf32> to vector<1x16x128xf32>
    %7 = tpu.concatenate %2, %4, %6 in 0 : vector<1x16x128xf32>, vector<8x16x128xf32>, vector<1x16x128xf32> -> vector<10x16x128xf32>
    %c0_11 = arith.constant 0 : index
    %c0_12 = arith.constant 0 : index
    %8 = vector.load %arg5[%c0_11, %c0_12] : memref<1x128xf32, #tpu.memory_space<vmem>>, vector<1x128xf32>
    %9 = vector.shape_cast %8 : vector<1x128xf32> to vector<1x1x128xf32>
    %10 = vector.broadcast %9 : vector<1x1x128xf32> to vector<10x16x128xf32>
    %11 = arith.mulf %7, %10 : vector<10x16x128xf32>
    %c0_13 = arith.constant 0 : index
    %c0_14 = arith.constant 0 : index
    %12 = vector.load %arg6[%c0_13, %c0_14] : memref<1x128xf32, #tpu.memory_space<vmem>>, vector<1x128xf32>
    %13 = vector.shape_cast %12 : vector<1x128xf32> to vector<1x1x128xf32>
    %14 = vector.broadcast %13 : vector<1x1x128xf32> to vector<10x16x128xf32>
    %15 = arith.addf %11, %14 : vector<10x16x128xf32>
    %cst = arith.constant 0.000000e+00 : f32
    %16 = vector.broadcast %cst : f32 to vector<10x16x128xf32>
    %17 = arith.maximumf %15, %16 : vector<10x16x128xf32>
    %c1_i32 = arith.constant 1 : i32
    %18 = arith.subi %0, %c1_i32 : i32
    %19 = tpu.iota {dimensions = array<i32: 0>} : vector<10x1x1xi32>
    %20 = vector.broadcast %18 : i32 to vector<10x1x1xi32>
    %21 = arith.addi %20, %19 : vector<10x1x1xi32>
    %c0_i32 = arith.constant 0 : i32
    %22 = vector.broadcast %c0_i32 : i32 to vector<10x1x1xi32>
    %23 = arith.cmpi sge, %21, %22 : vector<10x1x1xi32>
    %c16_i32 = arith.constant 16 : i32
    %24 = vector.broadcast %c16_i32 : i32 to vector<10x1x1xi32>
    %25 = arith.cmpi slt, %21, %24 : vector<10x1x1xi32>
    %26 = arith.andi %23, %25 : vector<10x1x1xi1>
    %cst_15 = arith.constant 0.000000e+00 : f32
    %27 = vector.shape_cast %26 : vector<10x1x1xi1> to vector<10x1x1xi1>
    %28 = vector.broadcast %27 : vector<10x1x1xi1> to vector<10x16x128xi1>
    %29 = vector.broadcast %cst_15 : f32 to vector<10x16x128xf32>
    %30 = arith.select %28, %17, %29 : vector<10x16x128xi1>, vector<10x16x128xf32>
    %cst_16 = arith.constant 0.000000e+00 : f32
    %31 = vector.broadcast %cst_16 : f32 to vector<10x1x128xf32>
    %32 = vector.extract_strided_slice %30 {offsets = [0, 0, 0], sizes = [10, 15, 128], strides = [1, 1, 1]} : vector<10x16x128xf32> to vector<10x15x128xf32>
    %33 = tpu.concatenate %31, %32 in 1 : vector<10x1x128xf32>, vector<10x15x128xf32> -> vector<10x16x128xf32>
    %34 = vector.extract_strided_slice %30 {offsets = [0, 1, 0], sizes = [10, 15, 128], strides = [1, 1, 1]} : vector<10x16x128xf32> to vector<10x15x128xf32>
    %35 = tpu.concatenate %34, %31 in 1 : vector<10x15x128xf32>, vector<10x1x128xf32> -> vector<10x16x128xf32>
    %36 = tpu.concatenate %33, %30, %35 in 2 : vector<10x16x128xf32>, vector<10x16x128xf32>, vector<10x16x128xf32> -> vector<10x16x384xf32>
    %37 = vector.extract_strided_slice %36 {offsets = [0, 0, 0], sizes = [8, 16, 384], strides = [1, 1, 1]} : vector<10x16x384xf32> to vector<8x16x384xf32>
    %38 = vector.shape_cast %37 : vector<8x16x384xf32> to vector<128x384xf32>
    %c0_17 = arith.constant 0 : index
    %c0_18 = arith.constant 0 : index
    %c0_19 = arith.constant 0 : index
    %39 = vector.load %arg7[%c0_17, %c0_18, %c0_19] : memref<3x384x128xf32, #tpu.memory_space<vmem>>, vector<1x384x128xf32>
    %40 = vector.shape_cast %39 : vector<1x384x128xf32> to vector<384x128xf32>
    %cst_20 = arith.constant dense<0.000000e+00> : vector<128x128xf32>
    %41 = tpu.matmul %38, %40, %cst_20 {dimension_numbers = #tpu.dot_dimension_numbers<[1], [0], [0], [1], [0, 0, 1, 1], [], []>} : vector<128x384xf32>, vector<384x128xf32>, vector<128x128xf32> -> vector<128x128xf32>
    %42 = vector.extract_strided_slice %36 {offsets = [1, 0, 0], sizes = [8, 16, 384], strides = [1, 1, 1]} : vector<10x16x384xf32> to vector<8x16x384xf32>
    %43 = vector.shape_cast %42 : vector<8x16x384xf32> to vector<128x384xf32>
    %c1 = arith.constant 1 : index
    %c0_21 = arith.constant 0 : index
    %c0_22 = arith.constant 0 : index
    %44 = vector.load %arg7[%c1, %c0_21, %c0_22] : memref<3x384x128xf32, #tpu.memory_space<vmem>>, vector<1x384x128xf32>
    %45 = vector.shape_cast %44 : vector<1x384x128xf32> to vector<384x128xf32>
    %cst_23 = arith.constant dense<0.000000e+00> : vector<128x128xf32>
    %46 = tpu.matmul %43, %45, %cst_23 {dimension_numbers = #tpu.dot_dimension_numbers<[1], [0], [0], [1], [0, 0, 1, 1], [], []>} : vector<128x384xf32>, vector<384x128xf32>, vector<128x128xf32> -> vector<128x128xf32>
    %47 = arith.addf %41, %46 : vector<128x128xf32>
    %48 = vector.extract_strided_slice %36 {offsets = [2, 0, 0], sizes = [8, 16, 384], strides = [1, 1, 1]} : vector<10x16x384xf32> to vector<8x16x384xf32>
    %49 = vector.shape_cast %48 : vector<8x16x384xf32> to vector<128x384xf32>
    %c2 = arith.constant 2 : index
    %c0_24 = arith.constant 0 : index
    %c0_25 = arith.constant 0 : index
    %50 = vector.load %arg7[%c2, %c0_24, %c0_25] : memref<3x384x128xf32, #tpu.memory_space<vmem>>, vector<1x384x128xf32>
    %51 = vector.shape_cast %50 : vector<1x384x128xf32> to vector<384x128xf32>
    %cst_26 = arith.constant dense<0.000000e+00> : vector<128x128xf32>
    %52 = tpu.matmul %49, %51, %cst_26 {dimension_numbers = #tpu.dot_dimension_numbers<[1], [0], [0], [1], [0, 0, 1, 1], [], []>} : vector<128x384xf32>, vector<384x128xf32>, vector<128x128xf32> -> vector<128x128xf32>
    %53 = arith.addf %47, %52 : vector<128x128xf32>
    %54 = vector.shape_cast %53 : vector<128x128xf32> to vector<1x8x16x128xf32>
    %c0_27 = arith.constant 0 : index
    %c0_28 = arith.constant 0 : index
    %c0_29 = arith.constant 0 : index
    %c0_30 = arith.constant 0 : index
    %55 = vector.load %arg8[%c0_27, %c0_28, %c0_29, %c0_30] : memref<1x8x16x128xf32, #tpu.memory_space<vmem>>, vector<1x8x16x128xf32>
    tpu.vector_store %arg8[%c0_27, %c0_28, %c0_29, %c0_30], %54 {strides = array<i32>} : memref<1x8x16x128xf32, #tpu.memory_space<vmem>>, vector<1x8x16x128xf32>,
    %cst_31 = arith.constant dense<0.000000e+00> : vector<128xf32>
    %56 = vector.multi_reduction <add>, %53, %cst_31 [0] : vector<128x128xf32> to vector<128xf32>
    %57 = vector.shape_cast %56 : vector<128xf32> to vector<1x128xf32>
    %cst_32 = arith.constant 1.280000e+02 : f32
    %58 = vector.broadcast %cst_32 : f32 to vector<1x128xf32>
    %59 = arith.divf %57, %58 : vector<1x128xf32>
    %60 = vector.broadcast %59 : vector<1x128xf32> to vector<128x128xf32>
    %61 = arith.subf %53, %60 : vector<128x128xf32>
    %c0_33 = arith.constant 0 : index
    %c0_34 = arith.constant 0 : index
    %c0_35 = arith.constant 0 : index
    %c0_36 = arith.constant 0 : index
    %62 = vector.load %arg9[%c0_33, %c0_34, %c0_35, %c0_36] : memref<1x1x2x128xf32, #tpu.memory_space<vmem>>, vector<1x1x1x128xf32>
    %63 = vector.shape_cast %62 : vector<1x1x1x128xf32> to vector<1x128xf32>
    %64 = vector.shape_cast %57 : vector<1x128xf32> to vector<1x1x1x128xf32>
    tpu.vector_store %arg9[%c0_33, %c0_34, %c0_35, %c0_36], %64 {strides = array<i32>} : memref<1x1x2x128xf32, #tpu.memory_space<vmem>>, vector<1x1x1x128xf32>,
    %65 = arith.mulf %61, %61 : vector<128x128xf32>
    %cst_37 = arith.constant dense<0.000000e+00> : vector<128xf32>
    %66 = vector.multi_reduction <add>, %65, %cst_37 [0] : vector<128x128xf32> to vector<128xf32>
    %67 = vector.shape_cast %66 : vector<128xf32> to vector<1x128xf32>
    %c0_38 = arith.constant 0 : index
    %c0_39 = arith.constant 0 : index
    %c1_40 = arith.constant 1 : index
    %c0_41 = arith.constant 0 : index
    %68 = vector.load %arg9[%c0_38, %c0_39, %c1_40, %c0_41] : memref<1x1x2x128xf32, #tpu.memory_space<vmem>>, vector<1x1x1x128xf32>
    %69 = vector.shape_cast %68 : vector<1x1x1x128xf32> to vector<1x128xf32>
    %70 = vector.shape_cast %67 : vector<1x128xf32> to vector<1x1x1x128xf32>
    tpu.vector_store %arg9[%c0_38, %c0_39, %c1_40, %c0_41], %70 {strides = array<i32>} : memref<1x1x2x128xf32, #tpu.memory_space<vmem>>, vector<1x1x1x128xf32>,
    return
  }
  func.func @transform_0(%arg0: i32, %arg1: i32) -> (i32, i32, i32, i32) {
    %c8_i32 = arith.constant 8 : i32
    %0 = arith.muli %arg1, %c8_i32 : i32
    %c1_i32 = arith.constant 1 : i32
    %1 = arith.subi %0, %c1_i32 : i32
    %c0_i32 = arith.constant 0 : i32
    %2 = arith.maxsi %1, %c0_i32 : i32
    %c0_i32_0 = arith.constant 0 : i32
    %c0_i32_1 = arith.constant 0 : i32
    %c0_i32_2 = arith.constant 0 : i32
    return %arg0, %2, %c0_i32_0, %c0_i32_1 : i32, i32, i32, i32
  }
  func.func @transform_1(%arg0: i32, %arg1: i32) -> (i32, i32, i32, i32) {
    %c0_i32 = arith.constant 0 : i32
    %c0_i32_0 = arith.constant 0 : i32
    %c0_i32_1 = arith.constant 0 : i32
    return %arg0, %arg1, %c0_i32, %c0_i32_0 : i32, i32, i32, i32
  }
  func.func @transform_2(%arg0: i32, %arg1: i32) -> (i32, i32, i32, i32) {
    %c8_i32 = arith.constant 8 : i32
    %0 = arith.muli %arg1, %c8_i32 : i32
    %c8_i32_0 = arith.constant 8 : i32
    %1 = arith.addi %0, %c8_i32_0 : i32
    %c15_i32 = arith.constant 15 : i32
    %2 = arith.minsi %1, %c15_i32 : i32
    %c0_i32 = arith.constant 0 : i32
    %c0_i32_1 = arith.constant 0 : i32
    %c0_i32_2 = arith.constant 0 : i32
    return %arg0, %2, %c0_i32, %c0_i32_1 : i32, i32, i32, i32
  }
  func.func @transform_3(%arg0: i32, %arg1: i32) -> (i32, i32) {
    %c0_i32 = arith.constant 0 : i32
    %c0_i32_0 = arith.constant 0 : i32
    %c0_i32_1 = arith.constant 0 : i32
    return %c0_i32, %c0_i32_0 : i32, i32
  }
  func.func @transform_4(%arg0: i32, %arg1: i32) -> (i32, i32) {
    %c0_i32 = arith.constant 0 : i32
    %c0_i32_0 = arith.constant 0 : i32
    %c0_i32_1 = arith.constant 0 : i32
    return %c0_i32, %c0_i32_0 : i32, i32
  }
  func.func @transform_5(%arg0: i32, %arg1: i32) -> (i32, i32, i32) {
    %c0_i32 = arith.constant 0 : i32
    %c0_i32_0 = arith.constant 0 : i32
    %c0_i32_1 = arith.constant 0 : i32
    %c0_i32_2 = arith.constant 0 : i32
    return %c0_i32, %c0_i32_0, %c0_i32_1 : i32, i32, i32
  }
  func.func @transform_6(%arg0: i32, %arg1: i32) -> (i32, i32, i32, i32) {
    %c0_i32 = arith.constant 0 : i32
    %c0_i32_0 = arith.constant 0 : i32
    %c0_i32_1 = arith.constant 0 : i32
    return %arg0, %arg1, %c0_i32, %c0_i32_0 : i32, i32, i32, i32
  }
  func.func @transform_7(%arg0: i32, %arg1: i32) -> (i32, i32, i32, i32) {
    %c0_i32 = arith.constant 0 : i32
    %c0_i32_0 = arith.constant 0 : i32
    %c0_i32_1 = arith.constant 0 : i32
    return %arg0, %arg1, %c0_i32, %c0_i32_0 : i32, i32, i32, i32
  }
}

module attributes {stable_mosaic.version = 11 : i64} {
  func.func @_bn_relu_kernel(%arg0: i32, %arg1: memref<512x128xf32, #tpu.memory_space<vmem>>, %arg2: memref<1x128xf32, #tpu.memory_space<vmem>>, %arg3: memref<1x128xf32, #tpu.memory_space<vmem>>, %arg4: memref<512x128xf32, #tpu.memory_space<vmem>>) attributes {dimension_semantics = [#tpu.dimension_semantics<parallel>], iteration_bounds = array<i64: 1>, scalar_prefetch = 0 : i64, scratch_operands = 0 : i64, tpu.core_type = #tpu.core_type<tc>, window_params = [{transform_indices = @transform_0, window_bounds = array<i64: 512, 128>}, {pipeline_mode = #tpu.pipeline_mode<synchronous>, transform_indices = @transform_1, window_bounds = array<i64: 1, 128>}, {pipeline_mode = #tpu.pipeline_mode<synchronous>, transform_indices = @transform_2, window_bounds = array<i64: 1, 128>}, {transform_indices = @transform_3, window_bounds = array<i64: 512, 128>}]} {
    %c0 = arith.constant 0 : index
    %c0_0 = arith.constant 0 : index
    %0 = vector.load %arg1[%c0, %c0_0] : memref<512x128xf32, #tpu.memory_space<vmem>>, vector<512x128xf32>
    %c0_1 = arith.constant 0 : index
    %c0_2 = arith.constant 0 : index
    %1 = vector.load %arg2[%c0_1, %c0_2] : memref<1x128xf32, #tpu.memory_space<vmem>>, vector<1x128xf32>
    %2 = vector.broadcast %1 : vector<1x128xf32> to vector<512x128xf32>
    %3 = arith.mulf %0, %2 : vector<512x128xf32>
    %c0_3 = arith.constant 0 : index
    %c0_4 = arith.constant 0 : index
    %4 = vector.load %arg3[%c0_3, %c0_4] : memref<1x128xf32, #tpu.memory_space<vmem>>, vector<1x128xf32>
    %5 = vector.broadcast %4 : vector<1x128xf32> to vector<512x128xf32>
    %6 = arith.addf %3, %5 : vector<512x128xf32>
    %cst = arith.constant 0.000000e+00 : f32
    %7 = vector.broadcast %cst : f32 to vector<512x128xf32>
    %8 = arith.maximumf %6, %7 : vector<512x128xf32>
    %c0_5 = arith.constant 0 : index
    %c0_6 = arith.constant 0 : index
    %9 = vector.load %arg4[%c0_5, %c0_6] : memref<512x128xf32, #tpu.memory_space<vmem>>, vector<512x128xf32>
    tpu.vector_store %arg4[%c0_5, %c0_6], %8 {strides = array<i32>} : memref<512x128xf32, #tpu.memory_space<vmem>>, vector<512x128xf32>,
    return
  }
  func.func @transform_0(%arg0: i32) -> (i32, i32) {
    %c0_i32 = arith.constant 0 : i32
    %c0_i32_0 = arith.constant 0 : i32
    return %arg0, %c0_i32 : i32, i32
  }
  func.func @transform_1(%arg0: i32) -> (i32, i32) {
    %c0_i32 = arith.constant 0 : i32
    %c0_i32_0 = arith.constant 0 : i32
    %c0_i32_1 = arith.constant 0 : i32
    return %c0_i32, %c0_i32_0 : i32, i32
  }
  func.func @transform_2(%arg0: i32) -> (i32, i32) {
    %c0_i32 = arith.constant 0 : i32
    %c0_i32_0 = arith.constant 0 : i32
    %c0_i32_1 = arith.constant 0 : i32
    return %c0_i32, %c0_i32_0 : i32, i32
  }
  func.func @transform_3(%arg0: i32) -> (i32, i32) {
    %c0_i32 = arith.constant 0 : i32
    %c0_i32_0 = arith.constant 0 : i32
    return %arg0, %c0_i32 : i32, i32
  }
}

</mosaic_0001>

<bundles_post_ra>
// kernel: blind_spot_double_conv.3
= control target key start
LH: loop header
LB: loop body
LE: loop exit
PB: predicated region body
PF: predicated region fallthrough
CT: control target
= control target key end

     0   :  { %s1987_s18 = smov 0   ;;  %s1989_s19 = smov 0   ;;  %s2690_s0 = inlined_call_operand.vmem [shape: f32[2,16,16,4], index: 0, kind: input, shape index: {}, may-alias: {0,1,2}]   ;;  %s2691_s1 = inlined_call_operand.vmem [shape: f32[2,16,16,4], index: 1, kind: input, shape index: {}, may-alias: {0,1,2}]   ;;  %s2692_s2 = inlined_call_operand.vmem [shape: f32[2,16,16,4], index: 2, kind: input, shape index: {}, may-alias: {0,1,2}]   ;;  %s2693_s3 = inlined_call_operand.vmem [shape: f32[3,12,128], index: 3, kind: input, shape index: {}]   ;;  %s2694_s4 = inlined_call_operand.vmem [shape: f32[2,16,16,128], index: 4, kind: output, shape index: {0}]   ;;  %s2695_s5 = inlined_call_operand.vmem [shape: f32[2,2,2,128], index: 5, kind: output, shape index: {1}]  }
   0x1   :  { %s1991_s20 = smov 0   ;;  %s1993_s21 = smov 0  }
   0x2   :  { %s1995_s22 = smov 0  }
   0x3 LB: > { %s25_s23 = sadd.s32 1, %s1945_s20  ;;  %s28_s24 = sadd.s32 1, %s1949_s21  ;;  %s1953_s22 = sphi %s1995_s22, %s16_s22   ;;  %s1949_s21 = sphi %s1993_s21, %s2708_s21   ;;  %s1945_s20 = sphi %s1991_s20, %s2707_s20   ;;  %s1941_s19 = sphi %s1989_s19, %s2706_s19   ;;  %s1937_s18 = sphi %s1987_s18, %s2705_s18  }
   0x4   : > { %p26_p0 = scmp.ge.s32.totalorder %s25_s23, 2  ;;  %p1642_p1 = scmp.ge.s32.totalorder %s1953_s22, 1 }
   0x5   : > { %p278_p2 = scmp.lt.s32.totalorder %s1953_s22, 5 }
   0x6   : > { %s2710_s23 = smov (%p26_p0, %s25_s23), 0  ;;  %s2712_s24 = smov (!%p26_p0, %s28_s24), %s1949_s21 }
   0x7   : > { %p279_p3 = pnand %p1642_p1, %p278_p2  ;;  %p30_p4 = scmp.ge.s32.totalorder %s2712_s24, 2 }
   0x8   : > { %s2020_s25 = sshll.u32 (!%p279_p3), %s1937_s18, 3  ;;  %p354_p5 = scmp.lt.s32.totalorder (!%p279_p3), %s1941_s19, 1 }
   0x9   : > { %s2714_s24 = smov (%p30_p4, %s2712_s24), 0  ;;  %282 = sbr.rel (%p279_p3) target bundleno = 500 (0x1f4), region = 36 }
   0xa   : > { %s2023_s26 = sadd.s32 (!%p279_p3), 4294967295, %s2020_s25  ;;  %p370_p6 = scmp.lt.s32.totalorder (!%p279_p3), %s2020_s25, 15 }
   0xb   : > { %s1955_s10 = smov (!%p279_p3), 4   ;;  %s379_s11 = sadd.s32 (!%p279_p3), 8, %s2020_s25 }
   0xc   : > { %p2087_p7 = scmp.lt.s32.totalorder (!%p279_p3), %s379_s11, 15  ;;  %s1956_s13 = smov (!%p279_p3), 8  }
   0xd   : > { %p352_p8 = scmp.gt.s32.totalorder (!%p279_p3), %s2023_s26, 0  ;;  %p1645_p9 = scmp.lt.s32.totalorder (!%p279_p3), %s2023_s26, 15 }
   0xe   : > { %s2716_s19 = smov (!%p354_p5, %s1941_s19), 1  ;;  %v2029_v0 = vstv %s2023_s26  ;;  %vm597_vm8 = vcmask 1046528   ;;  %s2718_s11 = smov (!%p2087_p7, %s379_s11), 15  ;;  %vm536_vm14 = vcmask 1040384   ;;  %v1673_v51 = vld [vmem:[%s2693_s3 + $0x18] sm:$0xf] }
   0xf   : > { %s371_s27 = scalar_select %p370_p6, %s2020_s25, 15  ;;  %v441_v1 = vadd.s32 5, %v2029_v0  ;;  %v437_v2 = vadd.s32 1, %v2029_v0  ;;  %v442_v3 = vadd.s32 6, %v2029_v0  ;;  %v438_v16 = vadd.s32 2, %v2029_v0 }
  0x10   : > { %s2035_s28 = sshll.u32 %s2716_s19, 5  ;;  %v443_v22 = vadd.s32 7, %v2029_v0  ;;  %v439_v23 = vadd.s32 3, %v2029_v0  ;;  %v2115_v32 = vadd.s32 8, %v2029_v0  ;;  %s2720_s11 = smov (!%p2087_p7, %s2718_s11), 15  ;;  %v445_v45 = vadd.s32 9, %v2029_v0 }
  0x11   : > { %s1654_s29 = sshll.u32 %s371_s27, 1  ;;  %vm451_vm0 = vcmp.ge.s32.totalorder %v441_v1, 0  ;;  %vm461_vm1 = vcmp.lt.s32.totalorder %v441_v1, 16  ;;  %vm447_vm2 = vcmp.ge.s32.totalorder %v437_v2, 0  ;;  %vm457_vm3 = vcmp.lt.s32.totalorder %v437_v2, 16  ;;  %s1661_s14 = sshll.u32 %s2720_s11, 1 }
  0x12   : > { %s2039_s30 = sadd.s32 %s1654_s29, %s2035_s28  ;;  %vm471_vm4 = vmand %vm451_vm0, %vm461_vm1  ;;  %vm452_vm6 = vcmp.ge.s32.totalorder %v442_v3, 0  ;;  %vm462_vm7 = vcmp.lt.s32.totalorder %v442_v3, 16  ;;  %vm448_vm10 = vcmp.ge.s32.totalorder %v438_v16, 0  ;;  %vm458_vm11 = vcmp.lt.s32.totalorder %v438_v16, 16  ;;  %s388_s15 = sadd.s32 %s1661_s14, %s2035_s28 }
  0x13   : > { %s1656_s6 = sshll.u32 %s2039_s30, 3  ;;  %vm467_vm5 = vmand %vm447_vm2, %vm457_vm3  ;;  %vm453_vm12 = vcmp.ge.s32.totalorder %v443_v22, 0  ;;  %vm463_vm13 = vcmp.lt.s32.totalorder %v443_v22, 16  ;;  %vm449_vm1 = vcmp.ge.s32.totalorder %v439_v23, 0  ;;  %vm459_vm2 = vcmp.lt.s32.totalorder %v439_v23, 16  ;;  %s1663_s16 = sshll.u32 %s388_s15, 3 }
  0x14   : > { %s2047_s9 = scalar_lea.vmem %s2691_s1, %s1656_s6  ;;  %vm2067_vm9 = vmand %vm452_vm6, %vm462_vm7  ;;  %s390_s7 = scalar_lea.vmem %s2692_s2, %s1663_s16  ;;  %vm874_vm7 = vcmask 1043456   ;;  %v440_v23 = vadd.s32 4, %v2029_v0 }
  0x15   : > { %v425_v4 = vld [vmem:[%s2047_s9 + $0x40] sm:$0xff]  ;;  %v426_v6 = vld [vmem:[%s2047_s9 + $0x48] sm:$0xff]  ;;  %v427_v13 = vld [vmem:[%s2047_s9 + $0x50] sm:$0xff]  ;;  %1869 = vmatprep.subr.msk.mxu1 %vm874_vm7, %v1673_v51  ;;  %1785 = vmatprep.subr.msk.mxu0 %vm874_vm7, %v1673_v51  ;;  %s353_s12 = scalar_select %p352_p8, %s2023_s26, 0 }
  0x16   : > { %v417_v5 = vld [vmem:[%s2047_s9] sm:$0xff]  ;;  %v2052_v7 = vsel %vm471_vm4, %v425_v4, 0.0  ;;  %v2056_v9 = vsel %vm471_vm4, %v426_v6, 0.0  ;;  %v418_v10 = vld [vmem:[%s2047_s9 + $0x8] sm:$0xff]  ;;  %v2083_v20 = vsel %vm2067_vm9, %v427_v13, 0.0  ;;  %v428_v21 = vld [vmem:[%s2047_s9 + $0x58] sm:$0xff]  ;;  %1871 = vmatpush3.msk.msra.mxu1 %vm874_vm7, %v1673_v51  ;;  %1786 = vmatpush3.msk.msra.mxu0 %vm874_vm7, %v1673_v51 }
  0x17   : > { %v2054_v8 = vsel %vm467_vm5, %v417_v5, 0.0  ;;  %668 = vrot.lane.b32.xlu0 %v2052_v7, %s1955_s10  ;;  %v2063_v11 = vsel %vm467_vm5, %v418_v10, 0.0  ;;  %v614_v12 = vrot.slane %v2056_v9, 1  ;;  %v613_v15 = vrot.slane %v2052_v7, 1  ;;  %v419_v29 = vld [vmem:[%s2047_s9 + $0x10] sm:$0xff]  ;;  %vm2109_vm15 = vmand %vm448_vm10, %vm458_vm11  ;;  %v420_v31 = vld [vmem:[%s2047_s9 + $0x18] sm:$0xff] }
  0x18   : > { %652 = vrot.lane.b32.xlu1 %v2054_v8, %s1955_s10  ;;  %v601_v17 = vrot.slane %v2054_v8, 1  ;;  %v602_v18 = vrot.slane %v2063_v11, 1  ;;  %v2099_v26 = vsel %vm2067_vm9, %v428_v21, 0.0  ;;  %v616_v27 = vrot.slane %v2083_v20, 1  ;;  %v429_v35 = vld [vmem:[%s2047_s9 + $0x60] sm:$0xff]  ;;  %vm2124_vm0 = vmand %vm453_vm12, %vm463_vm13  ;;  %v430_v41 = vld [vmem:[%s2047_s9 + $0x68] sm:$0xff] }
  0x19   : > { %v643_v19 = vsel %vm597_vm8, %v614_v12, 0.0  ;;  %v615_v24 = vsel %vm597_vm8, %v613_v15, %v614_v12  ;;  %v617_v28 = vrot.slane %v2099_v26, 1  ;;  %v552_v33 = vrot.slane %v2052_v7, 7  ;;  %v422_v50 = vld [vmem:[%s2047_s9 + $0x28] sm:$0xff]  ;;  %v421_v54 = vld [vmem:[%s2047_s9 + $0x20] sm:$0xff]  ;;  %vm2166_vm3 = vmand %vm449_vm1, %vm459_vm2  ;;  %s2722_s12 = smov (!%p1645_p9, %s353_s12), 15 }
  0x1a   : > { %v603_v25 = vsel %vm597_vm8, %v601_v17, %v602_v18  ;;  %v639_v34 = vsel %vm597_vm8, %v602_v18, 0.0  ;;  %v540_v37 = vrot.slane %v2054_v8, 7  ;;  %v553_v38 = vrot.slane %v2056_v9, 7  ;;  %v433_v58 = vld [vmem:[%s390_s7] sm:$0xff]  ;;  %v434_v59 = vld [vmem:[%s390_s7 + $0x8] sm:$0xff]  ;;  %v1672_v6 = vld [vmem:[%s2693_s3 + $0x10] sm:$0xff] }
  0x1b   : > { %670 = vrot.lane.b32.xlu0 %v2056_v9, %s1955_s10  ;;  %v541_v39 = vrot.slane %v2063_v11, 7  ;;  %v555_v40 = vrot.slane %v2083_v20, 7  ;;  %v556_v42 = vrot.slane %v2099_v26, 7  ;;  %v2136_v43 = vsel %vm2109_vm15, %v419_v29, 0.0  ;;  %1870 = vmatprep.subr.mxu1 %v1672_v6  ;;  %v432_v17 = vld [vmem:[%s2047_s9 + $0x78] sm:$0xff]  ;;  %v431_v21 = vld [vmem:[%s2047_s9 + $0x70] sm:$0xff] }
  0x1c   : > { %654 = vrot.lane.b32.xlu1 %v2063_v11, %s1955_s10  ;;  %v2140_v44 = vsel %vm2109_vm15, %v420_v31, 0.0  ;;  %v543_v46 = vrot.slane %v2136_v43, 7  ;;  %v604_v47 = vrot.slane %v2136_v43, 1  ;;  %v618_v48 = vsel %vm597_vm8, %v616_v27, %v617_v28  ;;  %1787 = vmatprep.subr.mxu0 %v1672_v6  ;;  %v424_v30 = vld [vmem:[%s2047_s9 + $0x38] sm:$0xff]  ;;  %s1650_s26 = sshll.u32 %s2722_s12, 1  ;;  %p408_p10 = scmp.lt.s32.totalorder %s1937_s18, 1 }
  0x1d   : > { %v2152_v49 = vsel %vm2124_vm0, %v429_v35, 0.0  ;;  %v544_v52 = vrot.slane %v2140_v44, 7  ;;  %v2161_v53 = vsel %vm2124_vm0, %v430_v41, 0.0  ;;  %vm455_vm4 = vcmp.ge.s32.totalorder %v445_v45, 0  ;;  %1872 = vmatpush3.msra.mxu1 %v1672_v6  ;;  %1788 = vmatpush3.msra.mxu0 %v1672_v6  ;;  %s360_s14 = sadd.s32 %s2035_s28, %s1650_s26  ;;  %s2574_s26 = scalar_lea.vmem %s2694_s4, %s1656_s6 }
  0x1e   : > { %vm465_vm5 = vcmp.lt.s32.totalorder %v445_v45, 16  ;;  %v605_v56 = vrot.slane %v2140_v44, 1  ;;  %v559_v57 = vrot.slane %v2161_v53, 7  ;;  %v2178_v60 = vsel %vm536_vm14, %v552_v33, %v553_v38  ;;  %v2294_v45 = vld [vmem:[%s2693_s3 + $0x8] sm:$0xf]  ;;  %s2724_s18 = smov (!%p408_p10, %s1937_s18), 1 }
  0x1f   : > { %740 = vrot.lane.b32.xlu0 %v643_v19, %s1956_s13  ;;  %vm475_vm6 = vmand %vm455_vm4, %vm465_vm5  ;;  %v2183_v61 = vsel %vm536_vm14, %v540_v37, %v541_v39  ;;  %v2187_v62 = vsel %vm2166_vm3, %v422_v50, 0.0  ;;  %v558_v2 = vrot.slane %v2152_v49, 7  ;;  %v644_v9 = vsel %vm597_vm8, %v617_v28, 0.0  ;;  %1813 = vmatprep.subr.msk.mxu1 %vm874_vm7, %v2294_v45  ;;  %s1668_s30 = sshll.u32 %s2716_s19, 1 }
  0x20   : > { %672 = vrot.lane.b32.xlu1 %v2083_v20, %s1955_s10  ;;  %v2189_v63 = vsel %vm475_vm6, %v433_v58, 0.0  ;;  %v2191_v1 = vsel %vm475_vm6, %v434_v59, 0.0  ;;  %v547_v3 = vrot.slane %v2187_v62, 7  ;;  %v2206_v10 = vsel %vm2166_vm3, %v421_v54, 0.0  ;;  %s411_s6 = sadd.s32 %s1668_s30, %s2724_s18 }
  0x21   : > { %v625_v4 = vrot.slane %v2189_v63, 1  ;;  %v626_v5 = vrot.slane %v2191_v1, 1  ;;  %v2214_v11 = vsel %vm536_vm14, %v555_v40, %v556_v42  ;;  %v2219_v12 = vsel %vm536_vm14, %v543_v46, %v544_v52 }
  0x22   : > { %v546_v13 = vrot.slane %v2206_v10, 7  ;;  %v2233_v16 = vsel %vm536_vm14, %v558_v2, %v559_v57  ;;  %vm454_vm9 = vcmp.ge.s32.totalorder %v2115_v32, 0  ;;  %vm464_vm10 = vcmp.lt.s32.totalorder %v2115_v32, 16 }
  0x23   : > { %722 = vrot.lane.b32.xlu0 %v603_v25, %s1956_s13  ;;  %v2223_v14 = vsel %vm597_vm8, %v625_v4, %v626_v5  ;;  %v2226_v15 = vsel %vm597_vm8, %v626_v5, 0.0  ;;  %v606_v19 = vsel %vm597_vm8, %v604_v47, %v605_v56  ;;  %vm474_vm11 = vmand %vm454_vm9, %vm464_vm10  ;;  %v619_v25 = vrot.slane %v2152_v49, 1  ;;  %v2299_v47 = vld [vmem:[%s2693_s3 + $0x28] sm:$0xf] }
  0x24   : > { %738 = vrot.lane.b32.xlu1 %v615_v24, %s1956_s13  ;;  %v2245_v18 = vsel %vm536_vm14, %v546_v13, %v547_v3  ;;  %v2252_v22 = vsel %vm474_vm11, %v432_v17, 0.0  ;;  %v640_v27 = vsel %vm597_vm8, %v605_v56, 0.0  ;;  %v2262_v28 = vsel %vm474_vm11, %v431_v21, 0.0  ;;  %1841 = vmatprep.subr.msk.mxu0 %vm874_vm7, %v2299_v47 }
  0x25   : > { %v562_v24 = vrot.slane %v2252_v22, 7  ;;  %v561_v29 = vrot.slane %v2262_v28, 7  ;;  %vm450_vm12 = vcmp.ge.s32.totalorder %v440_v23, 0  ;;  %vm460_vm13 = vcmp.lt.s32.totalorder %v440_v23, 16 }
  0x26   : > { %vm470_vm15 = vmand %vm450_vm12, %vm460_vm13  ;;  %v607_v38 = vrot.slane %v2206_v10, 1  ;;  %v608_v39 = vrot.slane %v2187_v62, 1  ;;  %vm446_vm0 = vcmp.ge.s32.totalorder %v2029_v0, 0  ;;  %vm456_vm1 = vcmp.lt.s32.totalorder %v2029_v0, 16 }
  0x27   : > { %724 = vrot.lane.b32.xlu0 %v639_v34, %s1956_s13  ;;  %v2274_v31 = vsel %vm536_vm14, %v561_v29, %v562_v24  ;;  %v423_v34 = vld [vmem:[%s2047_s9 + $0x30] sm:$0xff]  ;;  %v505_v35 = vsel %vm470_vm15, %v424_v30, 0.0  ;;  %s1652_s9 = sshll.u32 %s360_s14, 3  ;;  %v622_v52 = vrot.slane %v2262_v28, 1  ;;  %vm466_vm2 = vmand %vm446_vm0, %vm456_vm1  ;;  %v564_v23 = vrot.slane %v2189_v63, 7  ;;  %s1669_s14 = sshll.u32 %s411_s6, 1 }
  0x28   : > { %674 = vrot.lane.b32.xlu1 %v2099_v26, %s1955_s10  ;;  %v620_v26 = vrot.slane %v2161_v53, 1  ;;  %v550_v36 = vrot.slane %v505_v35, 7  ;;  %v2285_v42 = vsel %vm470_vm15, %v423_v34, 0.0  ;;  %v609_v50 = vsel %vm597_vm8, %v607_v38, %v608_v39  ;;  %s362_s29 = scalar_lea.vmem %s2690_s0, %s1652_s9  ;;  %s2658_s16 = scalar_lea.vmem %s2695_s5, %s1669_s14 }
  0x29   : > { %v416_v51 = vld [vmem:[%s362_s29 + $0x8] sm:$0xff]  ;;  %v641_v54 = vsel %vm597_vm8, %v608_v39, 0.0  ;;  %v415_v55 = vld [vmem:[%s362_s29] sm:$0xff]  ;;  %v610_v3 = vrot.slane %v2285_v42, 1  ;;  %v611_v4 = vrot.slane %v505_v35, 1  ;;  %v565_v24 = vrot.slane %v2191_v1, 7 }
  0x2a   : > { %v621_v32 = vsel %vm597_vm8, %v619_v25, %v620_v26  ;;  %v645_v41 = vsel %vm597_vm8, %v620_v26, 0.0  ;;  %v497_v56 = vsel %vm466_vm2, %v416_v51, 0.0  ;;  %v2325_v0 = vsel %vm466_vm2, %v415_v55, 0.0 }
  0x2b   : > { %742 = vrot.lane.b32.xlu0 %v618_v48, %s1956_s13  ;;  %v538_v57 = vrot.slane %v497_v56, 7  ;;  %v537_v59 = vrot.slane %v2325_v0, 7  ;;  %v612_v6 = vsel %vm597_vm8, %v610_v3, %v611_v4  ;;  %v642_v17 = vsel %vm597_vm8, %v611_v4, 0.0 }
  0x2c   : > { %656 = vrot.lane.b32.xlu1 %v2136_v43, %s1955_s10  ;;  %v2364_v25 = vsel %vm536_vm14, 0.0, %v564_v23  ;;  %v2367_v26 = vsel %vm536_vm14, %v564_v23, %v565_v24  ;;  %vm799_vm3 = vcmask 64512   ;;  %vm825_vm4 = vcmask 97280  }
  0x2d   : > { %v590_v24 = vsel %vm536_vm14, 0.0, %v546_v13  ;;  %v595_v13 = vsel %vm536_vm14, 0.0, %v561_v29 }
  0x2f   : > { %744 = vrot.lane.b32.xlu0 %v644_v9, %s1956_s13  ;;  %v598_v9 = vrot.slane %v2325_v0, 1 }
  0x30   : > { %658 = vrot.lane.b32.xlu1 %v2140_v44, %s1955_s10  ;;  %v549_v44 = vrot.slane %v2285_v42, 7 }
  0x32   : > { %v2304_v48 = vsel %vm536_vm14, %v549_v44, %v550_v36 }
  0x33   : > { %726 = vrot.lane.b32.xlu0 %v606_v19, %s1956_s13  ;;  %v599_v19 = vrot.slane %v497_v56, 1 }
  0x34   : > { %676 = vrot.lane.b32.xlu1 %v2152_v49, %s1955_s10 }
  0x35   : > { %v638_v21 = vsel %vm597_vm8, %v599_v19, 0.0 }
  0x37   : > { %728 = vrot.lane.b32.xlu0 %v640_v27, %s1956_s13 }
  0x38   : > { %678 = vrot.lane.b32.xlu1 %v2161_v53, %s1955_s10  ;;  %v623_v53 = vrot.slane %v2252_v22, 1 }
  0x3a   : > { %v624_v58 = vsel %vm597_vm8, %v622_v52, %v623_v53  ;;  %v646_v5 = vsel %vm597_vm8, %v623_v53, 0.0  ;;  %v593_v52 = vsel %vm536_vm14, 0.0, %v555_v40 }
  0x3b   : > { %746 = vrot.lane.b32.xlu0 %v621_v32, %s1956_s13 }
  0x3c   : > { %660 = vrot.lane.b32.xlu1 %v2206_v10, %s1955_s10 }
  0x3f   : > { %748 = vrot.lane.b32.xlu0 %v645_v41, %s1956_s13 }
  0x40   : > { %662 = vrot.lane.b32.xlu1 %v2187_v62, %s1955_s10  ;;  %v2332_v62 = vsel %vm536_vm14, %v537_v59, %v538_v57 }
  0x43   : > { %730 = vrot.lane.b32.xlu0 %v609_v50, %s1956_s13 }
  0x44   : > { %680 = vrot.lane.b32.xlu1 %v2262_v28, %s1955_s10  ;;  %v591_v28 = vsel %vm536_vm14, 0.0, %v549_v44 }
  0x47   : > { %732 = vrot.lane.b32.xlu0 %v641_v54, %s1956_s13  ;;  %v1708_v54 = vld [vmem:[%s2693_s3 + $0x20] sm:$0xff] }
  0x48   : > { %682 = vrot.lane.b32.xlu1 %v2252_v22, %s1955_s10  ;;  %v600_v22 = vsel %vm597_vm8, %v598_v9, %v599_v19  ;;  %vm778_vm8 = vcmask 31744   ;;  %v594_v9 = vsel %vm536_vm14, 0.0, %v558_v2 }
  0x4b   : > { %750 = vrot.lane.b32.xlu0 %v624_v58, %s1956_s13 }
  0x4c   : > { %664 = vrot.lane.b32.xlu1 %v2285_v42, %s1955_s10  ;;  %v587_v42 = vsel %vm536_vm14, 0.0, %v537_v59 }
  0x4f   : > { %752 = vrot.lane.b32.xlu0 %v646_v5, %s1956_s13 }
  0x50   : > { %666 = vrot.lane.b32.xlu1 %v505_v35, %s1955_s10 }
  0x53   : > { %734 = vrot.lane.b32.xlu0 %v612_v6, %s1956_s13 }
  0x54   : > { %648 = vrot.lane.b32.xlu1 %v2325_v0, %s1955_s10 }
  0x57   : > { %736 = vrot.lane.b32.xlu0 %v642_v17, %s1956_s13 }
  0x58   : > { %650 = vrot.lane.b32.xlu1 %v497_v56, %s1955_s10 }
  0x5b   : > { %718 = vrot.lane.b32.xlu0 %v600_v22, %s1956_s13 }
  0x5c   : > { %720 = vrot.lane.b32.xlu1 %v638_v21, %s1956_s13 }
  0x5f   : > { %684 = vrot.lane.b32.xlu0 %v2189_v63, %s1955_s10 }
  0x60   : > { %686 = vrot.lane.b32.xlu1 %v2191_v1, %s1955_s10  ;;  %v592_v1 = vsel %vm536_vm14, 0.0, %v552_v33  ;;  %v820_v33 = vld [vmem:[%s2693_s3] sm:$0xff] }
  0x63   : > { %754 = vrot.lane.b32.xlu0 %v2223_v14, %s1956_s13  ;;  %v588_v14 = vsel %vm536_vm14, 0.0, %v540_v37 }
  0x64   : > { %756 = vrot.lane.b32.xlu1 %v2226_v15, %s1956_s13 }
  0x89   : > { %v669_v27 = vpop.permute.xlu0 %668 }
  0x8a   : > { %v653_v30 = vpop.permute.xlu1 %652  ;;  %v789_v15 = vsel %vm778_vm8, %v592_v1, %v669_v27 }
  0x8b   : > { %v781_v36 = vsel %vm778_vm8, %v588_v14, %v653_v30 }
  0x8d   : > { %v671_v32 = vpop.permute.xlu0 %670 }
  0x8e   : > { %v655_v34 = vpop.permute.xlu1 %654  ;;  %v790_v41 = vsel %vm778_vm8, %v2178_v60, %v671_v32 }
  0x8f   : > { %v782_v37 = vsel %vm778_vm8, %v2183_v61, %v655_v34 }
  0x91   : > { %v741_v35 = vpop.permute.xlu0 %740 }
  0x92   : > { %v673_v63 = vpop.permute.xlu1 %672  ;;  %v2386_v8 = vsel %vm799_vm3, %v790_v41, %v741_v35 }
  0x93   : > { %v791_v61 = vsel %vm778_vm8, %v593_v52, %v673_v63 }
  0x95   : > { %v723_v39 = vpop.permute.xlu0 %722 }
  0x96   : > { %v739_v38 = vpop.permute.xlu1 %738  ;;  %v2380_v50 = vsel %vm799_vm3, %v781_v36, %v723_v39 }
  0x97   : > { %v2383_v7 = vsel %vm799_vm3, %v789_v15, %v739_v38  ;;  %1789 = vmatprep.mubr.msk.f32.mxu0 %vm825_vm4, %v2380_v50 }
  0x98   : > { %1801 = vmatprep.mubr.msk.f32.mxu1 %vm825_vm4, %v2383_v7 }
  0x99   : > { %1802 = vmatmul.mubr.msk.f32.vlgmr.msra.gmra.mxu1 %vm825_vm4, %v2386_v8  ;;  %v725_v51 = vpop.permute.xlu0 %724 }
  0x9a   : > { %v675_v60 = vpop.permute.xlu1 %674  ;;  %1814 = vmatpush3.msk.msra.mxu1 %vm874_vm7, %v2294_v45  ;;  %v2405_v53 = vsel %vm799_vm3, %v782_v37, %v725_v51 }
  0x9b   : > { %1815 = vmatprep.subr.mxu1 %v820_v33  ;;  %1790 = vmatmul.mubr.msk.f32.vlgmr.msra.gmra.mxu0 %vm825_vm4, %v2405_v53  ;;  %v792_v55 = vsel %vm778_vm8, %v2214_v11, %v675_v60 }
  0x9c   : > { %1816 = vmatpush3.msra.mxu1 %v820_v33  ;;  %1842 = vmatpush3.msk.msra.mxu0 %vm874_vm7, %v2299_v47  ;;  %v589_v47 = vsel %vm536_vm14, 0.0, %v543_v46 }
  0x9d   : > { %v743_v45 = vpop.permute.xlu0 %742  ;;  %1843 = vmatprep.subr.mxu0 %v1708_v54 }
  0x9e   : > { %v657_v20 = vpop.permute.xlu1 %656  ;;  %v2416_v40 = vsel %vm799_vm3, %v791_v61, %v743_v45  ;;  %1844 = vmatpush3.msra.mxu0 %v1708_v54 }
  0x9f   : > { %1804 = vmatprep.mubr.msk.f32.mxu1 %vm825_vm4, %v2416_v40  ;;  %v783_v3 = vsel %vm778_vm8, %v589_v47, %v657_v20 }
  0xa1   : > { %v745_v57 = vpop.permute.xlu0 %744 }
  0xa2   : > { %v659_v56 = vpop.permute.xlu1 %658  ;;  %v2426_v58 = vsel %vm799_vm3, %v792_v55, %v745_v57 }
  0xa3   : > { %1805 = vmatmul.mubr.msk.f32.gmra.mxu1 %vm825_vm4, %v2426_v58  ;;  %v784_v43 = vsel %vm778_vm8, %v2219_v12, %v659_v56 }
  0xa5   : > { %v727_v5 = vpop.permute.xlu0 %726 }
  0xa6   : > { %v677_v4 = vpop.permute.xlu1 %676  ;;  %v2432_v6 = vsel %vm799_vm3, %v783_v3, %v727_v5 }
  0xa7   : > { %1792 = vmatprep.mubr.msk.f32.mxu0 %vm825_vm4, %v2432_v6  ;;  %v793_v19 = vsel %vm778_vm8, %v594_v9, %v677_v4 }
  0xa9   : > { %v729_v11 = vpop.permute.xlu0 %728 }
  0xaa   : > { %v679_v46 = vpop.permute.xlu1 %678  ;;  %v2442_v17 = vsel %vm799_vm3, %v784_v43, %v729_v11 }
  0xab   : > { %1793 = vmatmul.mubr.msk.f32.gmra.mxu0 %vm825_vm4, %v2442_v17  ;;  %v794_v49 = vsel %vm778_vm8, %v2233_v16, %v679_v46 }
  0xad   : > { %v747_v22 = vpop.permute.xlu0 %746 }
  0xae   : > { %v661_v21 = vpop.permute.xlu1 %660  ;;  %v2448_v23 = vsel %vm799_vm3, %v793_v19, %v747_v22 }
  0xaf   : > { %1807 = vmatprep.mubr.msk.f32.mxu1 %vm825_vm4, %v2448_v23  ;;  %v785_v30 = vsel %vm778_vm8, %v590_v24, %v661_v21 }
  0xb1   : > { %v749_v12 = vpop.permute.xlu0 %748 }
  0xb2   : > { %v663_v2 = vpop.permute.xlu1 %662  ;;  %v2458_v27 = vsel %vm799_vm3, %v794_v49, %v749_v12 }
  0xb3   : > { %1808 = vmatmul.mubr.msk.f32.gmra.mxu1 %vm825_vm4, %v2458_v27  ;;  %v786_v16 = vsel %vm778_vm8, %v2245_v18, %v663_v2 }
  0xb5   : > { %v731_v34 = vpop.permute.xlu0 %730 }
  0xb6   : > { %v681_v32 = vpop.permute.xlu1 %680  ;;  %v806_v35 = vsel %vm799_vm3, %v785_v30, %v731_v34 }
  0xb7   : > { %1795 = vmatprep.mubr.msk.f32.mxu0 %vm825_vm4, %v806_v35  ;;  %v795_v14 = vsel %vm778_vm8, %v595_v13, %v681_v32 }
  0xb9   : > { %v733_v63 = vpop.permute.xlu0 %732 }
  0xba   : > { %v683_v10 = vpop.permute.xlu1 %682  ;;  %v807_v1 = vsel %vm799_vm3, %v786_v16, %v733_v63 }
  0xbb   : > { %1796 = vmatmul.mubr.msk.f32.gmra.mxu0 %vm825_vm4, %v807_v1  ;;  %v796_v18 = vsel %vm778_vm8, %v2274_v31, %v683_v10 }
  0xbd   : > { %v751_v36 = vpop.permute.xlu0 %750 }
  0xbe   : > { %v665_v15 = vpop.permute.xlu1 %664  ;;  %v816_v38 = vsel %vm799_vm3, %v795_v14, %v751_v36 }
  0xbf   : > { %1810 = vmatprep.mubr.msk.f32.mxu1 %vm825_vm4, %v816_v38  ;;  %v787_v33 = vsel %vm778_vm8, %v591_v28, %v665_v15 }
  0xc1   : > { %v753_v41 = vpop.permute.xlu0 %752 }
  0xc2   : > { %v667_v39 = vpop.permute.xlu1 %666  ;;  %v817_v29 = vsel %vm799_vm3, %v796_v18, %v753_v41 }
  0xc3   : > { %1811 = vmatmul.mubr.msk.f32.gmra.mxu1 %vm825_vm4, %v817_v29  ;;  %v788_v31 = vsel %vm778_vm8, %v2304_v48, %v667_v39 }
  0xc5   : > { %v735_v37 = vpop.permute.xlu0 %734 }
  0xc6   : > { %v649_v60 = vpop.permute.xlu1 %648  ;;  %v808_v51 = vsel %vm799_vm3, %v787_v33, %v735_v37 }
  0xc7   : > { %1798 = vmatprep.mubr.msk.f32.mxu0 %vm825_vm4, %v808_v51  ;;  %v779_v61 = vsel %vm778_vm8, %v587_v42, %v649_v60 }
  0xc9   : > { %v737_v52 = vpop.permute.xlu0 %736 }
  0xca   : > { %v651_v54 = vpop.permute.xlu1 %650  ;;  %v809_v44 = vsel %vm799_vm3, %v788_v31, %v737_v52 }
  0xcb   : > { %1799 = vmatmul.mubr.msk.f32.gmra.mxu0 %vm825_vm4, %v809_v44  ;;  %v780_v20 = vsel %vm778_vm8, %v2332_v62, %v651_v54 }
  0xcc   : > { %1845 = vmatprep.mubr.msk.f32.mxu0 %vm825_vm4, %v2432_v6 }
  0xcd   : > { %v719_v48 = vpop.permute.xlu0 %718 }
  0xce   : > { %v721_v45 = vpop.permute.xlu1 %720  ;;  %v800_v0 = vsel %vm799_vm3, %v779_v61, %v719_v48 }
  0xcf   : > { %v801_v55 = vsel %vm799_vm3, %v780_v20, %v721_v45  ;;  %1817 = vmatprep.mubr.msk.f32.mxu1 %vm825_vm4, %v800_v0  ;;  %1846 = vmatmul.mubr.msk.f32.vlgmr.msra.gmra.mxu0 %vm825_vm4, %v2442_v17 }
  0xd0   : > { %1818 = vmatmul.mubr.msk.f32.vlgmr.msra.gmra.mxu1 %vm825_vm4, %v801_v55  ;;  %1848 = vmatprep.mubr.msk.f32.mxu0 %vm825_vm4, %v806_v35 }
  0xd1   : > { %1820 = vmatprep.mubr.msk.f32.mxu1 %vm825_vm4, %v2380_v50  ;;  %v685_v59 = vpop.permute.xlu0 %684 }
  0xd2   : > { %v687_v62 = vpop.permute.xlu1 %686  ;;  %v797_v50 = vsel %vm778_vm8, %v2364_v25, %v685_v59 }
  0xd3   : > { %1849 = vmatmul.mubr.msk.f32.gmra.mxu0 %vm825_vm4, %v807_v1  ;;  %v798_v56 = vsel %vm778_vm8, %v2367_v26, %v687_v62 }
  0xd4   : > { %1821 = vmatmul.mubr.msk.f32.gmra.mxu1 %vm825_vm4, %v2405_v53  ;;  %1851 = vmatprep.mubr.msk.f32.mxu0 %vm825_vm4, %v808_v51 }
  0xd5   : > { %1823 = vmatprep.mubr.msk.f32.mxu1 %vm825_vm4, %v2432_v6  ;;  %v755_v53 = vpop.permute.xlu0 %754 }
  0xd6   : > { %v757_v57 = vpop.permute.xlu1 %756 }
  0xd7   : > { %1852 = vmatmul.mubr.msk.f32.gmra.mxu0 %vm825_vm4, %v809_v44  ;;  %v819_v25 = vsel %vm799_vm3, %v798_v56, %v757_v57 }
  0xd8   : > { %1824 = vmatmul.mubr.msk.f32.gmra.mxu1 %vm825_vm4, %v2442_v17  ;;  %1854 = vmatprep.mubr.msk.f32.mxu0 %vm825_vm4, %v2383_v7 }
  0xd9   : > { %1826 = vmatprep.mubr.msk.f32.mxu1 %vm825_vm4, %v806_v35 }
  0xdb   : > { %1855 = vmatmul.mubr.msk.f32.gmra.mxu0 %vm825_vm4, %v2386_v8 }
  0xdc   : > { %1827 = vmatmul.mubr.msk.f32.gmra.mxu1 %vm825_vm4, %v807_v1  ;;  %1857 = vmatprep.mubr.msk.f32.mxu0 %vm825_vm4, %v2416_v40 }
  0xdd   : > { %1829 = vmatprep.mubr.msk.f32.mxu1 %vm825_vm4, %v808_v51 }
  0xdf   : > { %1858 = vmatmul.mubr.msk.f32.gmra.mxu0 %vm825_vm4, %v2426_v58 }
  0xe0   : > { %1830 = vmatmul.mubr.msk.f32.gmra.mxu1 %vm825_vm4, %v809_v44  ;;  %1860 = vmatprep.mubr.msk.f32.mxu0 %vm825_vm4, %v2448_v23 }
  0xe1   : > { %1832 = vmatprep.mubr.msk.f32.mxu1 %vm825_vm4, %v2383_v7  ;;  %v818_v7 = vsel %vm799_vm3, %v797_v50, %v755_v53 }
  0xe3   : > { %1861 = vmatmul.mubr.msk.f32.gmra.mxu0 %vm825_vm4, %v2458_v27 }
  0xe4   : > { %1863 = vmatprep.mubr.msk.f32.mxu0 %vm825_vm4, %v816_v38  ;;  %1833 = vmatmul.mubr.msk.f32.gmra.mxu1 %vm825_vm4, %v2386_v8 }
  0xe5   : > { %1835 = vmatprep.mubr.msk.f32.mxu1 %vm825_vm4, %v2416_v40 }
  0xe7   : > { %1864 = vmatmul.mubr.msk.f32.gmra.mxu0 %vm825_vm4, %v817_v29 }
  0xe8   : > { %1836 = vmatmul.mubr.msk.f32.gmra.mxu1 %vm825_vm4, %v2426_v58  ;;  %1866 = vmatprep.mubr.msk.f32.mxu0 %vm825_vm4, %v818_v7 }
  0xe9   : > { %1838 = vmatprep.mubr.msk.f32.mxu1 %vm825_vm4, %v2448_v23 }
  0xeb   : > { %1867 = vmatmul.mubr.msk.f32.gmra.mxu0 %vm825_vm4, %v819_v25 }
  0xec   : > { %1839 = vmatmul.mubr.msk.f32.gmra.mxu1 %vm825_vm4, %v2458_v27 }
 0x159   : > { %v2553_v26 = vpop.f32.mrf.mxu1 }
 0x15b   : > { %v1791_v8 = vpop.f32.mrf.mxu0  ;;  %v2555_v40 = vpop.f32.mrf.mxu1 }
 0x15d   : > { %v944_v47 = vpop.f32.mrf.mxu0 }
 0x163   : > { %v2557_v3 = vpop.f32.mrf.mxu1 }
 0x165   : > { %v2559_v4 = vpop.f32.mrf.mxu1 }
 0x16b   : > { %v1794_v58 = vpop.f32.mrf.mxu0 }
 0x16d   : > { %v954_v5 = vpop.f32.mrf.mxu0 }
 0x173   : > { %v2561_v6 = vpop.f32.mrf.mxu1 }
 0x175   : > { %v2563_v46 = vpop.f32.mrf.mxu1 }
 0x17b   : > { %v1797_v43 = vpop.f32.mrf.mxu0 }
 0x17d   : > { %v964_v11 = vpop.f32.mrf.mxu0 }
 0x183   : > { %v2565_v9 = vpop.f32.mrf.mxu1 }
 0x185   : > { %v2567_v21 = vpop.f32.mrf.mxu1 }
 0x18b   : > { %v1800_v17 = vpop.f32.mrf.mxu0 }
 0x18d   : > { %v974_v19 = vpop.f32.mrf.mxu0 }
 0x18f   : > { %v1847_v22 = vpop.f32.mrf.mxu0 }
 0x190   : > { %v1819_v23 = vpop.f32.mrf.mxu1 }
 0x191   : > { %v1104_v49 = vadd.f32 %v1819_v23, %v1791_v8  ;;  %v1255_v2 = vpop.f32.mrf.mxu0 }
 0x192   : > { %v1098_v12 = vpop.f32.mrf.mxu1 }
 0x193   : > { %v2576_v24 = vadd.f32 %v1847_v22, %v1104_v49  ;;  %v1099_v27 = vadd.f32 %v1098_v12, %v944_v47  ;;  %v1850_v30 = vpop.f32.mrf.mxu0 }
 0x194   : > { %v1822_v32 = vpop.f32.mrf.mxu1 }
 0x195   : > { %1351 = vst [vmem:[%s2574_s26 + $0x8] sm:$0xff] %v2576_v24  ;;  %v2580_v34 = vadd.f32 %v1255_v2, %v1099_v27  ;;  %v1114_v35 = vadd.f32 %v1822_v32, %v1794_v58  ;;  %v1265_v16 = vpop.f32.mrf.mxu0 }
 0x196   : > { %v1108_v10 = vpop.f32.mrf.mxu1 }
 0x197   : > { %1350 = vst [vmem:[%s2574_s26] sm:$0xff] %v2580_v34  ;;  %v2584_v63 = vadd.f32 %v1850_v30, %v1114_v35  ;;  %v1109_v13 = vadd.f32 %v1108_v10, %v954_v5  ;;  %v1853_v1 = vpop.f32.mrf.mxu0  ;;  %v1366_v15 = vadd.f32 %v2576_v24, %v2580_v34 }
 0x198   : > { %v1825_v14 = vpop.f32.mrf.mxu1 }
 0x199   : > { %1353 = vst [vmem:[%s2574_s26 + $0x18] sm:$0xff] %v2584_v63  ;;  %v2590_v36 = vadd.f32 %v1265_v16, %v1109_v13  ;;  %v1124_v38 = vadd.f32 %v1825_v14, %v1797_v43  ;;  %v1275_v18 = vpop.f32.mrf.mxu0 }
 0x19a   : > { %v1118_v39 = vpop.f32.mrf.mxu1 }
 0x19b   : > { %1352 = vst [vmem:[%s2574_s26 + $0x10] sm:$0xff] %v2590_v36  ;;  %v1367_v41 = vadd.f32 %v1366_v15, %v2590_v36  ;;  %v2595_v28 = vadd.f32 %v1853_v1, %v1124_v38  ;;  %v1119_v29 = vadd.f32 %v1118_v39, %v964_v11  ;;  %v1856_v33 = vpop.f32.mrf.mxu0 }
 0x19c   : > { %v1828_v37 = vpop.f32.mrf.mxu1 }
 0x19d   : > { %1355 = vst [vmem:[%s2574_s26 + $0x28] sm:$0xff] %v2595_v28  ;;  %v2599_v60 = vadd.f32 %v1275_v18, %v1119_v29  ;;  %v1368_v51 = vadd.f32 %v1367_v41, %v2584_v63  ;;  %v1134_v31 = vadd.f32 %v1828_v37, %v1800_v17  ;;  %v1285_v52 = vpop.f32.mrf.mxu0 }
 0x19e   : > { %v1128_v54 = vpop.f32.mrf.mxu1 }
 0x19f   : > { %1354 = vst [vmem:[%s2574_s26 + $0x20] sm:$0xff] %v2599_v60  ;;  %v1369_v42 = vadd.f32 %v1368_v51, %v2599_v60  ;;  %v2605_v44 = vadd.f32 %v1856_v33, %v1134_v31  ;;  %v1129_v61 = vadd.f32 %v1128_v54, %v974_v19  ;;  %v1859_v20 = vpop.f32.mrf.mxu0 }
 0x1a0   : > { %v1831_v45 = vpop.f32.mrf.mxu1 }
 0x1a1   : > { %1357 = vst [vmem:[%s2574_s26 + $0x38] sm:$0xff] %v2605_v44  ;;  %v2609_v48 = vadd.f32 %v1285_v52, %v1129_v61  ;;  %v1370_v55 = vadd.f32 %v1369_v42, %v2595_v28  ;;  %v1144_v0 = vadd.f32 %v1831_v45, %v2553_v26  ;;  %v1295_v59 = vpop.f32.mrf.mxu0 }
 0x1a2   : > { %v1138_v62 = vpop.f32.mrf.mxu1 }
 0x1a3   : > { %1356 = vst [vmem:[%s2574_s26 + $0x30] sm:$0xff] %v2609_v48  ;;  %v1371_v50 = vadd.f32 %v1370_v55, %v2609_v48  ;;  %v2616_v53 = vadd.f32 %v1859_v20, %v1144_v0  ;;  %v1139_v56 = vadd.f32 %v1138_v62, %v2555_v40  ;;  %v1862_v7 = vpop.f32.mrf.mxu0 }
 0x1a4   : > { %v1834_v57 = vpop.f32.mrf.mxu1 }
 0x1a5   : > { %1359 = vst [vmem:[%s2574_s26 + $0x48] sm:$0xff] %v2616_v53  ;;  %v2621_v25 = vadd.f32 %v1295_v59, %v1139_v56  ;;  %v1372_v8 = vadd.f32 %v1371_v50, %v2605_v44  ;;  %v1154_v26 = vadd.f32 %v1834_v57, %v2557_v3  ;;  %v1305_v47 = vpop.f32.mrf.mxu0 }
 0x1a6   : > { %v1148_v58 = vpop.f32.mrf.mxu1 }
 0x1a7   : > { %1358 = vst [vmem:[%s2574_s26 + $0x40] sm:$0xff] %v2621_v25  ;;  %v1373_v5 = vadd.f32 %v1372_v8, %v2621_v25  ;;  %v2628_v43 = vadd.f32 %v1862_v7, %v1154_v26  ;;  %v1149_v40 = vadd.f32 %v1148_v58, %v2559_v4  ;;  %v1865_v11 = vpop.f32.mrf.mxu0 }
 0x1a8   : > { %v1837_v17 = vpop.f32.mrf.mxu1 }
 0x1a9   : > { %1361 = vst [vmem:[%s2574_s26 + $0x58] sm:$0xff] %v2628_v43  ;;  %v2633_v19 = vadd.f32 %v1305_v47, %v1149_v40  ;;  %v1374_v3 = vadd.f32 %v1373_v5, %v2616_v53  ;;  %v1164_v22 = vadd.f32 %v1837_v17, %v2561_v6  ;;  %v1315_v23 = vpop.f32.mrf.mxu0 }
 0x1aa   : > { %v1158_v49 = vpop.f32.mrf.mxu1 }
 0x1ab   : > { %1360 = vst [vmem:[%s2574_s26 + $0x50] sm:$0xff] %v2633_v19  ;;  %v1375_v2 = vadd.f32 %v1374_v3, %v2633_v19  ;;  %v2640_v12 = vadd.f32 %v1865_v11, %v1164_v22  ;;  %v1159_v4 = vadd.f32 %v1158_v49, %v2563_v46  ;;  %v1868_v27 = vpop.f32.mrf.mxu0 }
 0x1ac   : > { %v1840_v30 = vpop.f32.mrf.mxu1 }
 0x1ad   : > { %1363 = vst [vmem:[%s2574_s26 + $0x68] sm:$0xff] %v2640_v12  ;;  %v1346_v32 = vadd.f32 %v1315_v23, %v1159_v4  ;;  %v1376_v6 = vadd.f32 %v1375_v2, %v2628_v43  ;;  %v1174_v35 = vadd.f32 %v1840_v30, %v2565_v9  ;;  %v1325_v46 = vpop.f32.mrf.mxu0 }
 0x1ae   : > { %v1168_v16 = vpop.f32.mrf.mxu1 }
 0x1af   : > { %1362 = vst [vmem:[%s2574_s26 + $0x60] sm:$0xff] %v1346_v32  ;;  %v1377_v10 = vadd.f32 %v1376_v6, %v1346_v32  ;;  %v1349_v13 = vadd.f32 %v1868_v27, %v1174_v35  ;;  %v1169_v1 = vadd.f32 %v1168_v16, %v2567_v21 }
 0x1b1   : > { %1365 = vst [vmem:[%s2574_s26 + $0x78] sm:$0xff] %v1349_v13  ;;  %v1348_v14 = vadd.f32 %v1325_v46, %v1169_v1  ;;  %v1378_v15 = vadd.f32 %v1377_v10, %v2640_v12 }
 0x1b3   : > { %1364 = vst [vmem:[%s2574_s26 + $0x70] sm:$0xff] %v1348_v14  ;;  %v1379_v38 = vadd.f32 %v1378_v15, %v1348_v14 }
 0x1b5   : > { %v1380_v18 = vadd.f32 %v1379_v38, %v1349_v13 }
 0x1b7   : > { %v1381_v39 = vrot.slane %v1380_v18, 4 }
 0x1b9   : > { %v1382_v41 = vadd.f32 %v1381_v39, %v1380_v18 }
 0x1bb   : > { %v1383_v9 = vrot.slane %v1382_v41, 2 }
 0x1bd   : > { %v1384_v29 = vadd.f32 %v1383_v9, %v1382_v41 }
 0x1bf   : > { %v1385_v33 = vrot.slane %v1384_v29, 1 }
 0x1c1   : > { %v1386_v21 = vadd.f32 %v1385_v33, %v1384_v29 }
 0x1c3   : > { %v1388_v37 = vmul.f32 0.0078125, %v1386_v21  ;;  %1405 = vst [vmem:[%s2658_s16] sm:$0x1] %v1386_v21 }
 0x1c5   : > { %v1389_v51 = vsub.f32 %v2580_v34, %v1388_v37  ;;  %v1390_v31 = vsub.f32 %v2576_v24, %v1388_v37  ;;  %v1391_v52 = vsub.f32 %v2590_v36, %v1388_v37  ;;  %v1392_v61 = vsub.f32 %v2584_v63, %v1388_v37 }
 0x1c6   : > { %v1393_v20 = vsub.f32 %v2599_v60, %v1388_v37  ;;  %v1394_v0 = vsub.f32 %v2595_v28, %v1388_v37  ;;  %v1395_v50 = vsub.f32 %v2609_v48, %v1388_v37  ;;  %v1396_v24 = vsub.f32 %v2605_v44, %v1388_v37 }
 0x1c7   : > { %v1406_v54 = vmul.f32 %v1389_v51, %v1389_v51  ;;  %v1407_v42 = vmul.f32 %v1390_v31, %v1390_v31  ;;  %v1408_v45 = vmul.f32 %v1391_v52, %v1391_v52  ;;  %v1409_v59 = vmul.f32 %v1392_v61, %v1392_v61 }
 0x1c8   : > { %v1410_v56 = vmul.f32 %v1393_v20, %v1393_v20  ;;  %v1411_v7 = vmul.f32 %v1394_v0, %v1394_v0  ;;  %v1397_v57 = vsub.f32 %v2621_v25, %v1388_v37  ;;  %v1412_v8 = vmul.f32 %v1395_v50, %v1395_v50 }
 0x1c9   : > { %v1422_v55 = vadd.f32 %v1407_v42, %v1406_v54  ;;  %v1398_v60 = vsub.f32 %v2616_v53, %v1388_v37  ;;  %v1413_v26 = vmul.f32 %v1396_v24, %v1396_v24  ;;  %v1399_v28 = vsub.f32 %v2633_v19, %v1388_v37 }
 0x1ca   : > { %v1414_v58 = vmul.f32 %v1397_v57, %v1397_v57  ;;  %v1400_v48 = vsub.f32 %v2628_v43, %v1388_v37  ;;  %v1401_v17 = vsub.f32 %v1346_v32, %v1388_v37  ;;  %v1402_v22 = vsub.f32 %v2640_v12, %v1388_v37 }
 0x1cb   : > { %v1423_v62 = vadd.f32 %v1422_v55, %v1408_v45  ;;  %v1415_v40 = vmul.f32 %v1398_v60, %v1398_v60  ;;  %v1416_v44 = vmul.f32 %v1399_v28, %v1399_v28  ;;  %v1403_v49 = vsub.f32 %v1348_v14, %v1388_v37 }
 0x1cc   : > { %v1417_v25 = vmul.f32 %v1400_v48, %v1400_v48  ;;  %v1418_v2 = vmul.f32 %v1401_v17, %v1401_v17  ;;  %v1404_v4 = vsub.f32 %v1349_v13, %v1388_v37  ;;  %v1419_v27 = vmul.f32 %v1402_v22, %v1402_v22 }
 0x1cd   : > { %v1424_v34 = vadd.f32 %v1423_v62, %v1409_v59  ;;  %v1420_v30 = vmul.f32 %v1403_v49, %v1403_v49 }
 0x1ce   : > { %v1421_v35 = vmul.f32 %v1404_v4, %v1404_v4 }
 0x1cf   : > { %v1425_v36 = vadd.f32 %v1424_v34, %v1410_v56 }
 0x1d1   : > { %v1426_v63 = vadd.f32 %v1425_v36, %v1411_v7 }
 0x1d3   : > { %v1427_v47 = vadd.f32 %v1426_v63, %v1412_v8 }
 0x1d5   : > { %v1428_v5 = vadd.f32 %v1427_v47, %v1413_v26 }
 0x1d7   : > { %v1429_v11 = vadd.f32 %v1428_v5, %v1414_v58 }
 0x1d9   : > { %v1430_v3 = vadd.f32 %v1429_v11, %v1415_v40 }
 0x1db   : > { %v1431_v23 = vadd.f32 %v1430_v3, %v1416_v44 }
 0x1dd   : > { %v1432_v53 = vadd.f32 %v1431_v23, %v1417_v25 }
 0x1df   : > { %v1433_v19 = vadd.f32 %v1432_v53, %v1418_v2 }
 0x1e1   : > { %v1434_v6 = vadd.f32 %v1433_v19, %v1419_v27 }
 0x1e3   : > { %v1435_v43 = vadd.f32 %v1434_v6, %v1420_v30 }
 0x1e5   : > { %v1436_v16 = vadd.f32 %v1435_v43, %v1421_v35 }
 0x1e7   : > { %v1437_v10 = vrot.slane %v1436_v16, 4 }
 0x1e9   : > { %v1438_v32 = vadd.f32 %v1437_v10, %v1436_v16 }
 0x1eb   : > { %v1439_v1 = vrot.slane %v1438_v32, 2 }
 0x1ed   : > { %v1440_v46 = vadd.f32 %v1439_v1, %v1438_v32 }
 0x1ef   : > { %v1441_v15 = vrot.slane %v1440_v46, 1 }
 0x1f1   : > { %v1442_v12 = vadd.f32 %v1441_v15, %v1440_v46 }
 0x1f3   : > { %1443 = vst [vmem:[%s2658_s16 + $0x1] sm:$0x1] %v1442_v12 }
 0x1f4 PF: > { %s16_s22 = sadd.s32 1, %s1953_s22   ;;  %s2705_s18 = smov %s1945_s20 }
 0x1f5   : > { %p13_p11 = scmp.ge.s32.totalorder %s16_s22, 6   ;;  %s2706_s19 = smov %s1949_s21 }
 0x1f6   : > { %s2707_s20 = smov %s2710_s23  ;;  %s2708_s21 = smov %s2714_s24 }
 0x1f7   :  { %15 = sbr.rel (!%p13_p11) target bundleno = 3 (0x3), region = 86 }

// kernel: blind_spot_double_conv.5
= control target key start
LH: loop header
LB: loop body
LE: loop exit
PB: predicated region body
PF: predicated region fallthrough
CT: control target
= control target key end

     0   :  { %s896_s0 = inlined_call_operand.vmem [shape: f32[512,128], index: 0, kind: input, shape index: {}, may-alias: {0,3}]   ;;  %s897_s1 = inlined_call_operand.vmem [shape: f32[1,128], index: 1, kind: input, shape index: {}]   ;;  %s898_s2 = inlined_call_operand.vmem [shape: f32[1,128], index: 2, kind: input, shape index: {}]   ;;  %s899_s3 = inlined_call_operand.vmem [shape: f32[512,128], index: 3, kind: output, shape index: {}, may-alias: {0,3}]  }
   0x1   :  { %v14_v0 = vld [vmem:[%s896_s0] sm:$0xff]  ;;  %v15_v4 = vld [vmem:[%s896_s0 + $0x8] sm:$0xff]  ;;  %v16_v5 = vld [vmem:[%s896_s0 + $0x10] sm:$0xff] }
   0x2   :  { %v380_v1 = vld [vmem:[%s897_s1] ss:$0 sm:$0xff]  ;;  %v17_v6 = vld [vmem:[%s896_s0 + $0x18] sm:$0xff]  ;;  %v19_v11 = vld [vmem:[%s896_s0 + $0x28] sm:$0xff] }
   0x3   :  { %v385_v2 = vld [vmem:[%s898_s2] ss:$0 sm:$0xff]  ;;  %v85_v3 = vmul.f32 %v380_v1, %v14_v0  ;;  %v86_v7 = vmul.f32 %v380_v1, %v15_v4  ;;  %v87_v8 = vmul.f32 %v380_v1, %v16_v5  ;;  %v88_v9 = vmul.f32 %v380_v1, %v17_v6  ;;  %v20_v12 = vld [vmem:[%s896_s0 + $0x30] sm:$0xff]  ;;  %v21_v17 = vld [vmem:[%s896_s0 + $0x38] sm:$0xff] }
   0x4   :  { %v18_v10 = vld [vmem:[%s896_s0 + $0x20] sm:$0xff]  ;;  %v90_v15 = vmul.f32 %v380_v1, %v19_v11  ;;  %v91_v16 = vmul.f32 %v380_v1, %v20_v12  ;;  %v92_v21 = vmul.f32 %v380_v1, %v21_v17  ;;  %v23_v27 = vld [vmem:[%s896_s0 + $0x48] sm:$0xff]  ;;  %v24_v28 = vld [vmem:[%s896_s0 + $0x50] sm:$0xff] }
   0x5   :  { %v156_v13 = vadd.f32 %v385_v2, %v85_v3  ;;  %v89_v14 = vmul.f32 %v380_v1, %v18_v10  ;;  %v157_v18 = vadd.f32 %v385_v2, %v86_v7  ;;  %v158_v19 = vadd.f32 %v385_v2, %v87_v8  ;;  %v22_v22 = vld [vmem:[%s896_s0 + $0x40] sm:$0xff]  ;;  %v25_v29 = vld [vmem:[%s896_s0 + $0x58] sm:$0xff]  ;;  %v27_v35 = vld [vmem:[%s896_s0 + $0x68] sm:$0xff] }
   0x6   :  { %v159_v20 = vadd.f32 %v385_v2, %v88_v9  ;;  %v161_v25 = vadd.f32 %v385_v2, %v90_v15  ;;  %v162_v26 = vadd.f32 %v385_v2, %v91_v16  ;;  %v163_v33 = vadd.f32 %v385_v2, %v92_v21  ;;  %v26_v34 = vld [vmem:[%s896_s0 + $0x60] sm:$0xff]  ;;  %v28_v36 = vld [vmem:[%s896_s0 + $0x70] sm:$0xff] }
   0x7   :  { %v220_v23 = vmax.f32 %v156_v13, 0.0  ;;  %v160_v24 = vadd.f32 %v385_v2, %v89_v14  ;;  %v221_v30 = vmax.f32 %v157_v18, 0.0  ;;  %v222_v31 = vmax.f32 %v158_v19, 0.0 }
   0x8   :  { %v223_v32 = vmax.f32 %v159_v20, 0.0  ;;  %v225_v38 = vmax.f32 %v161_v25, 0.0  ;;  %v226_v39 = vmax.f32 %v162_v26, 0.0  ;;  %v93_v40 = vmul.f32 %v380_v1, %v22_v22 }
   0x9   :  { %284 = vst [vmem:[%s899_s3] sm:$0xff] %v220_v23  ;;  %v224_v37 = vmax.f32 %v160_v24, 0.0  ;;  %v227_v42 = vmax.f32 %v163_v33, 0.0  ;;  %v94_v43 = vmul.f32 %v380_v1, %v23_v27  ;;  %v95_v44 = vmul.f32 %v380_v1, %v24_v28 }
   0xa   :  { %v96_v45 = vmul.f32 %v380_v1, %v25_v29  ;;  %v164_v46 = vadd.f32 %v385_v2, %v93_v40  ;;  %v97_v47 = vmul.f32 %v380_v1, %v26_v34  ;;  %v98_v48 = vmul.f32 %v380_v1, %v27_v35 }
   0xb   :  { %v99_v49 = vmul.f32 %v380_v1, %v28_v36  ;;  %v165_v50 = vadd.f32 %v385_v2, %v94_v43  ;;  %v166_v51 = vadd.f32 %v385_v2, %v95_v44 }
   0xc   :  { %v167_v52 = vadd.f32 %v385_v2, %v96_v45  ;;  %v228_v55 = vmax.f32 %v164_v46, 0.0  ;;  %v168_v56 = vadd.f32 %v385_v2, %v97_v47  ;;  %v169_v57 = vadd.f32 %v385_v2, %v98_v48 }
   0xd   :  { %v170_v58 = vadd.f32 %v385_v2, %v99_v49  ;;  %v229_v62 = vmax.f32 %v165_v50, 0.0  ;;  %v230_v63 = vmax.f32 %v166_v51, 0.0 }
   0xe   :  { %v231_v0 = vmax.f32 %v167_v52, 0.0  ;;  %v232_v7 = vmax.f32 %v168_v56, 0.0  ;;  %v233_v8 = vmax.f32 %v169_v57, 0.0 }
   0xf   :  { %v234_v9 = vmax.f32 %v170_v58, 0.0 }
  0x10   :  { %v29_v41 = vld [vmem:[%s896_s0 + $0x78] sm:$0xff] }
  0x11   :  { %285 = vst [vmem:[%s899_s3 + $0x8] sm:$0xff] %v221_v30  ;;  %286 = vst [vmem:[%s899_s3 + $0x10] sm:$0xff] %v222_v31  ;;  %v100_v53 = vmul.f32 %v380_v1, %v29_v41 }
  0x12   :  { %287 = vst [vmem:[%s899_s3 + $0x18] sm:$0xff] %v223_v32  ;;  %288 = vst [vmem:[%s899_s3 + $0x20] sm:$0xff] %v224_v37 }
  0x13   :  { %289 = vst [vmem:[%s899_s3 + $0x28] sm:$0xff] %v225_v38  ;;  %290 = vst [vmem:[%s899_s3 + $0x30] sm:$0xff] %v226_v39  ;;  %v171_v3 = vadd.f32 %v385_v2, %v100_v53 }
  0x14   :  { %291 = vst [vmem:[%s899_s3 + $0x38] sm:$0xff] %v227_v42 }
  0x15   :  { %v235_v12 = vmax.f32 %v171_v3, 0.0 }
  0x1b   :  { %v30_v54 = vld [vmem:[%s896_s0 + $0x80] sm:$0xff]  ;;  %v31_v59 = vld [vmem:[%s896_s0 + $0x88] sm:$0xff]  ;;  %v32_v60 = vld [vmem:[%s896_s0 + $0x90] sm:$0xff] }
  0x1c   :  { %v33_v61 = vld [vmem:[%s896_s0 + $0x98] sm:$0xff]  ;;  %v34_v4 = vld [vmem:[%s896_s0 + $0xa0] sm:$0xff]  ;;  %v35_v5 = vld [vmem:[%s896_s0 + $0xa8] sm:$0xff]  ;;  %v101_v10 = vmul.f32 %v380_v1, %v30_v54  ;;  %v102_v13 = vmul.f32 %v380_v1, %v31_v59  ;;  %v103_v14 = vmul.f32 %v380_v1, %v32_v60 }
  0x1d   :  { %v36_v6 = vld [vmem:[%s896_s0 + $0xb0] sm:$0xff]  ;;  %v104_v15 = vmul.f32 %v380_v1, %v33_v61  ;;  %v105_v17 = vmul.f32 %v380_v1, %v34_v4  ;;  %v106_v18 = vmul.f32 %v380_v1, %v35_v5 }
  0x1e   :  { %292 = vst [vmem:[%s899_s3 + $0x40] sm:$0xff] %v228_v55  ;;  %v172_v16 = vadd.f32 %v385_v2, %v101_v10  ;;  %v107_v19 = vmul.f32 %v380_v1, %v36_v6  ;;  %v173_v20 = vadd.f32 %v385_v2, %v102_v13  ;;  %v174_v21 = vadd.f32 %v385_v2, %v103_v14 }
  0x1f   :  { %v175_v22 = vadd.f32 %v385_v2, %v104_v15  ;;  %v176_v26 = vadd.f32 %v385_v2, %v105_v17  ;;  %v177_v27 = vadd.f32 %v385_v2, %v106_v18 }
  0x20   :  { %v236_v25 = vmax.f32 %v172_v16, 0.0  ;;  %v178_v28 = vadd.f32 %v385_v2, %v107_v19  ;;  %v237_v32 = vmax.f32 %v173_v20, 0.0  ;;  %v238_v33 = vmax.f32 %v174_v21, 0.0 }
  0x21   :  { %v239_v34 = vmax.f32 %v175_v22, 0.0  ;;  %v240_v39 = vmax.f32 %v176_v26, 0.0  ;;  %v241_v40 = vmax.f32 %v177_v27, 0.0 }
  0x22   :  { %v242_v41 = vmax.f32 %v178_v28, 0.0 }
  0x25   :  { %v37_v11 = vld [vmem:[%s896_s0 + $0xb8] sm:$0xff] }
  0x26   :  { %293 = vst [vmem:[%s899_s3 + $0x48] sm:$0xff] %v229_v62  ;;  %294 = vst [vmem:[%s899_s3 + $0x50] sm:$0xff] %v230_v63  ;;  %v108_v23 = vmul.f32 %v380_v1, %v37_v11 }
  0x27   :  { %295 = vst [vmem:[%s899_s3 + $0x58] sm:$0xff] %v231_v0  ;;  %296 = vst [vmem:[%s899_s3 + $0x60] sm:$0xff] %v232_v7 }
  0x28   :  { %297 = vst [vmem:[%s899_s3 + $0x68] sm:$0xff] %v233_v8  ;;  %298 = vst [vmem:[%s899_s3 + $0x70] sm:$0xff] %v234_v9  ;;  %v179_v35 = vadd.f32 %v385_v2, %v108_v23 }
  0x29   :  { %299 = vst [vmem:[%s899_s3 + $0x78] sm:$0xff] %v235_v12 }
  0x2a   :  { %v243_v44 = vmax.f32 %v179_v35, 0.0 }
  0x30   :  { %v38_v24 = vld [vmem:[%s896_s0 + $0xc0] sm:$0xff]  ;;  %v39_v29 = vld [vmem:[%s896_s0 + $0xc8] sm:$0xff]  ;;  %v40_v30 = vld [vmem:[%s896_s0 + $0xd0] sm:$0xff] }
  0x31   :  { %v41_v31 = vld [vmem:[%s896_s0 + $0xd8] sm:$0xff]  ;;  %v42_v36 = vld [vmem:[%s896_s0 + $0xe0] sm:$0xff]  ;;  %v43_v37 = vld [vmem:[%s896_s0 + $0xe8] sm:$0xff]  ;;  %v109_v42 = vmul.f32 %v380_v1, %v38_v24  ;;  %v110_v45 = vmul.f32 %v380_v1, %v39_v29  ;;  %v111_v46 = vmul.f32 %v380_v1, %v40_v30 }
  0x32   :  { %v44_v38 = vld [vmem:[%s896_s0 + $0xf0] sm:$0xff]  ;;  %v112_v47 = vmul.f32 %v380_v1, %v41_v31  ;;  %v113_v49 = vmul.f32 %v380_v1, %v42_v36  ;;  %v114_v50 = vmul.f32 %v380_v1, %v43_v37 }
  0x33   :  { %300 = vst [vmem:[%s899_s3 + $0x80] sm:$0xff] %v236_v25  ;;  %v180_v48 = vadd.f32 %v385_v2, %v109_v42  ;;  %v115_v51 = vmul.f32 %v380_v1, %v44_v38  ;;  %v181_v52 = vadd.f32 %v385_v2, %v110_v45  ;;  %v182_v53 = vadd.f32 %v385_v2, %v111_v46 }
  0x34   :  { %v183_v54 = vadd.f32 %v385_v2, %v112_v47  ;;  %v184_v58 = vadd.f32 %v385_v2, %v113_v49  ;;  %v185_v59 = vadd.f32 %v385_v2, %v114_v50 }
  0x35   :  { %v244_v57 = vmax.f32 %v180_v48, 0.0  ;;  %v186_v60 = vadd.f32 %v385_v2, %v115_v51  ;;  %v245_v0 = vmax.f32 %v181_v52, 0.0  ;;  %v246_v3 = vmax.f32 %v182_v53, 0.0 }
  0x36   :  { %v247_v4 = vmax.f32 %v183_v54, 0.0  ;;  %v248_v9 = vmax.f32 %v184_v58, 0.0  ;;  %v249_v10 = vmax.f32 %v185_v59, 0.0 }
  0x37   :  { %v250_v11 = vmax.f32 %v186_v60, 0.0 }
  0x3a   :  { %v45_v43 = vld [vmem:[%s896_s0 + $0xf8] sm:$0xff] }
  0x3b   :  { %301 = vst [vmem:[%s899_s3 + $0x88] sm:$0xff] %v237_v32  ;;  %302 = vst [vmem:[%s899_s3 + $0x90] sm:$0xff] %v238_v33  ;;  %v116_v55 = vmul.f32 %v380_v1, %v45_v43 }
  0x3c   :  { %303 = vst [vmem:[%s899_s3 + $0x98] sm:$0xff] %v239_v34  ;;  %304 = vst [vmem:[%s899_s3 + $0xa0] sm:$0xff] %v240_v39 }
  0x3d   :  { %305 = vst [vmem:[%s899_s3 + $0xa8] sm:$0xff] %v241_v40  ;;  %306 = vst [vmem:[%s899_s3 + $0xb0] sm:$0xff] %v242_v41  ;;  %v187_v5 = vadd.f32 %v385_v2, %v116_v55 }
  0x3e   :  { %307 = vst [vmem:[%s899_s3 + $0xb8] sm:$0xff] %v243_v44 }
  0x3f   :  { %v251_v14 = vmax.f32 %v187_v5, 0.0 }
  0x45   :  { %v46_v56 = vld [vmem:[%s896_s0 + $0x100] sm:$0xff]  ;;  %v47_v61 = vld [vmem:[%s896_s0 + $0x108] sm:$0xff]  ;;  %v48_v62 = vld [vmem:[%s896_s0 + $0x110] sm:$0xff] }
  0x46   :  { %v49_v63 = vld [vmem:[%s896_s0 + $0x118] sm:$0xff]  ;;  %v50_v6 = vld [vmem:[%s896_s0 + $0x120] sm:$0xff]  ;;  %v51_v7 = vld [vmem:[%s896_s0 + $0x128] sm:$0xff]  ;;  %v117_v12 = vmul.f32 %v380_v1, %v46_v56  ;;  %v118_v15 = vmul.f32 %v380_v1, %v47_v61  ;;  %v119_v16 = vmul.f32 %v380_v1, %v48_v62 }
  0x47   :  { %v52_v8 = vld [vmem:[%s896_s0 + $0x130] sm:$0xff]  ;;  %v120_v17 = vmul.f32 %v380_v1, %v49_v63  ;;  %v121_v19 = vmul.f32 %v380_v1, %v50_v6  ;;  %v122_v20 = vmul.f32 %v380_v1, %v51_v7 }
  0x48   :  { %308 = vst [vmem:[%s899_s3 + $0xc0] sm:$0xff] %v244_v57  ;;  %v188_v18 = vadd.f32 %v385_v2, %v117_v12  ;;  %v123_v21 = vmul.f32 %v380_v1, %v52_v8  ;;  %v189_v22 = vadd.f32 %v385_v2, %v118_v15  ;;  %v190_v23 = vadd.f32 %v385_v2, %v119_v16 }
  0x49   :  { %v191_v24 = vadd.f32 %v385_v2, %v120_v17  ;;  %v192_v28 = vadd.f32 %v385_v2, %v121_v19  ;;  %v193_v29 = vadd.f32 %v385_v2, %v122_v20 }
  0x4a   :  { %v252_v27 = vmax.f32 %v188_v18, 0.0  ;;  %v194_v30 = vadd.f32 %v385_v2, %v123_v21  ;;  %v253_v34 = vmax.f32 %v189_v22, 0.0  ;;  %v254_v35 = vmax.f32 %v190_v23, 0.0 }
  0x4b   :  { %v255_v36 = vmax.f32 %v191_v24, 0.0  ;;  %v256_v41 = vmax.f32 %v192_v28, 0.0  ;;  %v257_v42 = vmax.f32 %v193_v29, 0.0 }
  0x4c   :  { %v258_v43 = vmax.f32 %v194_v30, 0.0 }
  0x4f   :  { %v53_v13 = vld [vmem:[%s896_s0 + $0x138] sm:$0xff] }
  0x50   :  { %309 = vst [vmem:[%s899_s3 + $0xc8] sm:$0xff] %v245_v0  ;;  %310 = vst [vmem:[%s899_s3 + $0xd0] sm:$0xff] %v246_v3  ;;  %v124_v25 = vmul.f32 %v380_v1, %v53_v13 }
  0x51   :  { %311 = vst [vmem:[%s899_s3 + $0xd8] sm:$0xff] %v247_v4  ;;  %312 = vst [vmem:[%s899_s3 + $0xe0] sm:$0xff] %v248_v9 }
  0x52   :  { %313 = vst [vmem:[%s899_s3 + $0xe8] sm:$0xff] %v249_v10  ;;  %314 = vst [vmem:[%s899_s3 + $0xf0] sm:$0xff] %v250_v11  ;;  %v195_v37 = vadd.f32 %v385_v2, %v124_v25 }
  0x53   :  { %315 = vst [vmem:[%s899_s3 + $0xf8] sm:$0xff] %v251_v14 }
  0x54   :  { %v259_v46 = vmax.f32 %v195_v37, 0.0 }
  0x5a   :  { %v54_v26 = vld [vmem:[%s896_s0 + $0x140] sm:$0xff]  ;;  %v55_v31 = vld [vmem:[%s896_s0 + $0x148] sm:$0xff]  ;;  %v56_v32 = vld [vmem:[%s896_s0 + $0x150] sm:$0xff] }
  0x5b   :  { %v57_v33 = vld [vmem:[%s896_s0 + $0x158] sm:$0xff]  ;;  %v58_v38 = vld [vmem:[%s896_s0 + $0x160] sm:$0xff]  ;;  %v59_v39 = vld [vmem:[%s896_s0 + $0x168] sm:$0xff]  ;;  %v125_v44 = vmul.f32 %v380_v1, %v54_v26  ;;  %v126_v47 = vmul.f32 %v380_v1, %v55_v31  ;;  %v127_v48 = vmul.f32 %v380_v1, %v56_v32 }
  0x5c   :  { %v60_v40 = vld [vmem:[%s896_s0 + $0x170] sm:$0xff]  ;;  %v128_v49 = vmul.f32 %v380_v1, %v57_v33  ;;  %v129_v51 = vmul.f32 %v380_v1, %v58_v38  ;;  %v130_v52 = vmul.f32 %v380_v1, %v59_v39 }
  0x5d   :  { %316 = vst [vmem:[%s899_s3 + $0x100] sm:$0xff] %v252_v27  ;;  %v196_v50 = vadd.f32 %v385_v2, %v125_v44  ;;  %v131_v53 = vmul.f32 %v380_v1, %v60_v40  ;;  %v197_v54 = vadd.f32 %v385_v2, %v126_v47  ;;  %v198_v55 = vadd.f32 %v385_v2, %v127_v48 }
  0x5e   :  { %v199_v56 = vadd.f32 %v385_v2, %v128_v49  ;;  %v200_v60 = vadd.f32 %v385_v2, %v129_v51  ;;  %v201_v61 = vadd.f32 %v385_v2, %v130_v52 }
  0x5f   :  { %v260_v59 = vmax.f32 %v196_v50, 0.0  ;;  %v202_v62 = vadd.f32 %v385_v2, %v131_v53  ;;  %v261_v4 = vmax.f32 %v197_v54, 0.0  ;;  %v262_v5 = vmax.f32 %v198_v55, 0.0 }
  0x60   :  { %v263_v6 = vmax.f32 %v199_v56, 0.0  ;;  %v264_v11 = vmax.f32 %v200_v60, 0.0  ;;  %v265_v12 = vmax.f32 %v201_v61, 0.0 }
  0x61   :  { %v266_v13 = vmax.f32 %v202_v62, 0.0 }
  0x64   :  { %v61_v45 = vld [vmem:[%s896_s0 + $0x178] sm:$0xff] }
  0x65   :  { %317 = vst [vmem:[%s899_s3 + $0x108] sm:$0xff] %v253_v34  ;;  %318 = vst [vmem:[%s899_s3 + $0x110] sm:$0xff] %v254_v35  ;;  %v132_v57 = vmul.f32 %v380_v1, %v61_v45 }
  0x66   :  { %319 = vst [vmem:[%s899_s3 + $0x118] sm:$0xff] %v255_v36  ;;  %320 = vst [vmem:[%s899_s3 + $0x120] sm:$0xff] %v256_v41 }
  0x67   :  { %321 = vst [vmem:[%s899_s3 + $0x128] sm:$0xff] %v257_v42  ;;  %322 = vst [vmem:[%s899_s3 + $0x130] sm:$0xff] %v258_v43  ;;  %v203_v7 = vadd.f32 %v385_v2, %v132_v57 }
  0x68   :  { %323 = vst [vmem:[%s899_s3 + $0x138] sm:$0xff] %v259_v46 }
  0x69   :  { %v267_v16 = vmax.f32 %v203_v7, 0.0 }
  0x6f   :  { %v62_v58 = vld [vmem:[%s896_s0 + $0x180] sm:$0xff]  ;;  %v63_v63 = vld [vmem:[%s896_s0 + $0x188] sm:$0xff]  ;;  %v64_v0 = vld [vmem:[%s896_s0 + $0x190] sm:$0xff] }
  0x70   :  { %v65_v3 = vld [vmem:[%s896_s0 + $0x198] sm:$0xff]  ;;  %v66_v8 = vld [vmem:[%s896_s0 + $0x1a0] sm:$0xff]  ;;  %v67_v9 = vld [vmem:[%s896_s0 + $0x1a8] sm:$0xff]  ;;  %v133_v14 = vmul.f32 %v380_v1, %v62_v58  ;;  %v134_v17 = vmul.f32 %v380_v1, %v63_v63  ;;  %v135_v18 = vmul.f32 %v380_v1, %v64_v0 }
  0x71   :  { %v68_v10 = vld [vmem:[%s896_s0 + $0x1b0] sm:$0xff]  ;;  %v136_v19 = vmul.f32 %v380_v1, %v65_v3  ;;  %v137_v21 = vmul.f32 %v380_v1, %v66_v8  ;;  %v138_v22 = vmul.f32 %v380_v1, %v67_v9 }
  0x72   :  { %324 = vst [vmem:[%s899_s3 + $0x140] sm:$0xff] %v260_v59  ;;  %v204_v20 = vadd.f32 %v385_v2, %v133_v14  ;;  %v139_v23 = vmul.f32 %v380_v1, %v68_v10  ;;  %v205_v24 = vadd.f32 %v385_v2, %v134_v17  ;;  %v206_v25 = vadd.f32 %v385_v2, %v135_v18 }
  0x73   :  { %v207_v26 = vadd.f32 %v385_v2, %v136_v19  ;;  %v208_v30 = vadd.f32 %v385_v2, %v137_v21  ;;  %v209_v31 = vadd.f32 %v385_v2, %v138_v22 }
  0x74   :  { %v268_v29 = vmax.f32 %v204_v20, 0.0  ;;  %v210_v32 = vadd.f32 %v385_v2, %v139_v23  ;;  %v269_v36 = vmax.f32 %v205_v24, 0.0  ;;  %v270_v37 = vmax.f32 %v206_v25, 0.0 }
  0x75   :  { %v271_v38 = vmax.f32 %v207_v26, 0.0  ;;  %v272_v43 = vmax.f32 %v208_v30, 0.0  ;;  %v273_v44 = vmax.f32 %v209_v31, 0.0 }
  0x76   :  { %v274_v45 = vmax.f32 %v210_v32, 0.0 }
  0x79   :  { %v69_v15 = vld [vmem:[%s896_s0 + $0x1b8] sm:$0xff] }
  0x7a   :  { %325 = vst [vmem:[%s899_s3 + $0x148] sm:$0xff] %v261_v4  ;;  %326 = vst [vmem:[%s899_s3 + $0x150] sm:$0xff] %v262_v5  ;;  %v140_v27 = vmul.f32 %v380_v1, %v69_v15 }
  0x7b   :  { %327 = vst [vmem:[%s899_s3 + $0x158] sm:$0xff] %v263_v6  ;;  %328 = vst [vmem:[%s899_s3 + $0x160] sm:$0xff] %v264_v11 }
  0x7c   :  { %329 = vst [vmem:[%s899_s3 + $0x168] sm:$0xff] %v265_v12  ;;  %330 = vst [vmem:[%s899_s3 + $0x170] sm:$0xff] %v266_v13  ;;  %v211_v39 = vadd.f32 %v385_v2, %v140_v27 }
  0x7d   :  { %331 = vst [vmem:[%s899_s3 + $0x178] sm:$0xff] %v267_v16 }
  0x7e   :  { %v275_v48 = vmax.f32 %v211_v39, 0.0 }
  0x84   :  { %v70_v28 = vld [vmem:[%s896_s0 + $0x1c0] sm:$0xff]  ;;  %v71_v33 = vld [vmem:[%s896_s0 + $0x1c8] sm:$0xff]  ;;  %v72_v34 = vld [vmem:[%s896_s0 + $0x1d0] sm:$0xff] }
  0x85   :  { %v73_v35 = vld [vmem:[%s896_s0 + $0x1d8] sm:$0xff]  ;;  %v74_v40 = vld [vmem:[%s896_s0 + $0x1e0] sm:$0xff]  ;;  %v75_v41 = vld [vmem:[%s896_s0 + $0x1e8] sm:$0xff]  ;;  %v141_v46 = vmul.f32 %v380_v1, %v70_v28  ;;  %v142_v49 = vmul.f32 %v380_v1, %v71_v33  ;;  %v143_v50 = vmul.f32 %v380_v1, %v72_v34 }
  0x86   :  { %v76_v42 = vld [vmem:[%s896_s0 + $0x1f0] sm:$0xff]  ;;  %v144_v51 = vmul.f32 %v380_v1, %v73_v35  ;;  %v145_v53 = vmul.f32 %v380_v1, %v74_v40  ;;  %v146_v54 = vmul.f32 %v380_v1, %v75_v41 }
  0x87   :  { %332 = vst [vmem:[%s899_s3 + $0x180] sm:$0xff] %v268_v29  ;;  %v212_v52 = vadd.f32 %v385_v2, %v141_v46  ;;  %v147_v55 = vmul.f32 %v380_v1, %v76_v42  ;;  %v213_v56 = vadd.f32 %v385_v2, %v142_v49  ;;  %v214_v57 = vadd.f32 %v385_v2, %v143_v50 }
  0x88   :  { %v215_v58 = vadd.f32 %v385_v2, %v144_v51  ;;  %v216_v61 = vadd.f32 %v385_v2, %v145_v53  ;;  %v217_v62 = vadd.f32 %v385_v2, %v146_v54 }
  0x89   :  { %v276_v60 = vmax.f32 %v212_v52, 0.0  ;;  %v218_v63 = vadd.f32 %v385_v2, %v147_v55  ;;  %v277_v0 = vmax.f32 %v213_v56, 0.0  ;;  %v278_v3 = vmax.f32 %v214_v57, 0.0 }
  0x8a   :  { %v279_v4 = vmax.f32 %v215_v58, 0.0  ;;  %v280_v6 = vmax.f32 %v216_v61, 0.0  ;;  %v281_v7 = vmax.f32 %v217_v62, 0.0 }
  0x8b   :  { %v282_v8 = vmax.f32 %v218_v63, 0.0 }
  0x8e   :  { %v77_v47 = vld [vmem:[%s896_s0 + $0x1f8] sm:$0xff] }
  0x8f   :  { %333 = vst [vmem:[%s899_s3 + $0x188] sm:$0xff] %v269_v36  ;;  %334 = vst [vmem:[%s899_s3 + $0x190] sm:$0xff] %v270_v37  ;;  %v148_v59 = vmul.f32 %v380_v1, %v77_v47 }
  0x90   :  { %335 = vst [vmem:[%s899_s3 + $0x198] sm:$0xff] %v271_v38  ;;  %336 = vst [vmem:[%s899_s3 + $0x1a0] sm:$0xff] %v272_v43 }
  0x91   :  { %337 = vst [vmem:[%s899_s3 + $0x1a8] sm:$0xff] %v273_v44  ;;  %338 = vst [vmem:[%s899_s3 + $0x1b0] sm:$0xff] %v274_v45  ;;  %v219_v5 = vadd.f32 %v385_v2, %v148_v59 }
  0x92   :  { %339 = vst [vmem:[%s899_s3 + $0x1b8] sm:$0xff] %v275_v48  ;;  %340 = vst [vmem:[%s899_s3 + $0x1c0] sm:$0xff] %v276_v60 }
  0x93   :  { %341 = vst [vmem:[%s899_s3 + $0x1c8] sm:$0xff] %v277_v0  ;;  %342 = vst [vmem:[%s899_s3 + $0x1d0] sm:$0xff] %v278_v3  ;;  %v283_v1 = vmax.f32 %v219_v5, 0.0 }
  0x94   :  { %343 = vst [vmem:[%s899_s3 + $0x1d8] sm:$0xff] %v279_v4  ;;  %344 = vst [vmem:[%s899_s3 + $0x1e0] sm:$0xff] %v280_v6 }
  0x95   :  { %345 = vst [vmem:[%s899_s3 + $0x1e8] sm:$0xff] %v281_v7  ;;  %346 = vst [vmem:[%s899_s3 + $0x1f0] sm:$0xff] %v282_v8 }
  0x96   :  { %347 = vst [vmem:[%s899_s3 + $0x1f8] sm:$0xff] %v283_v1 }

// kernel: blind_spot_double_conv.4
= control target key start
LH: loop header
LB: loop body
LE: loop exit
PB: predicated region body
PF: predicated region fallthrough
CT: control target
= control target key end

     0   :  { %s2986_s24 = smov 0   ;;  %s2988_s25 = smov 0   ;;  %s4526_s0 = inlined_call_operand.vmem [shape: f32[2,16,16,128], index: 0, kind: input, shape index: {}, may-alias: {0,1,2}]   ;;  %s4527_s1 = inlined_call_operand.vmem [shape: f32[2,16,16,128], index: 1, kind: input, shape index: {}, may-alias: {0,1,2}]   ;;  %s4528_s2 = inlined_call_operand.vmem [shape: f32[2,16,16,128], index: 2, kind: input, shape index: {}, may-alias: {0,1,2}]   ;;  %s4529_s3 = inlined_call_operand.vmem [shape: f32[1,128], index: 3, kind: input, shape index: {}]   ;;  %s4530_s4 = inlined_call_operand.vmem [shape: f32[1,128], index: 4, kind: input, shape index: {}]   ;;  %s4531_s5 = inlined_call_operand.vmem [shape: f32[3,384,128], index: 5, kind: input, shape index: {}]   ;;  %s4532_s6 = inlined_call_operand.vmem [shape: f32[2,16,16,128], index: 6, kind: output, shape index: {0}]   ;;  %s4533_s7 = inlined_call_operand.vmem [shape: f32[2,2,2,128], index: 7, kind: output, shape index: {1}]  }
   0x1   :  { %s2990_s26 = smov 0   ;;  %s2992_s27 = smov 0  }
   0x2   :  { %s2994_s28 = smov 0  }
   0x3 LB: > { %s27_s29 = sadd.s32 1, %s2936_s26  ;;  %s30_s30 = sadd.s32 1, %s2940_s27  ;;  %s2944_s28 = sphi %s2994_s28, %s18_s28   ;;  %s2940_s27 = sphi %s2992_s27, %s4646_s27   ;;  %s2936_s26 = sphi %s2990_s26, %s4645_s26   ;;  %s2932_s25 = sphi %s2988_s25, %s4644_s25   ;;  %s2928_s24 = sphi %s2986_s24, %s4643_s24  }
   0x4   : > { %p28_p0 = scmp.ge.s32.totalorder %s27_s29, 2  ;;  %p2110_p1 = scmp.ge.s32.totalorder %s2944_s28, 1 }
   0x5   : > { %p328_p2 = scmp.lt.s32.totalorder %s2944_s28, 5 }
   0x6   : > { %s4648_s29 = smov (%p28_p0, %s27_s29), 0  ;;  %s4650_s30 = smov (!%p28_p0, %s30_s30), %s2940_s27 }
   0x7   : > { %p329_p3 = pnand %p2110_p1, %p328_p2  ;;  %p32_p4 = scmp.ge.s32.totalorder %s4650_s30, 2 }
   0x9   : > { %s4652_s30 = smov (%p32_p4, %s4650_s30), 0  ;;  %332 = sbr.rel (%p329_p3) target bundleno = 486 (0x1e6), region = 44 }
   0xe   : > { %v2173_v0 = vld [vmem:[%s4531_s5 + $0x278] sm:$0xff]  ;;  %s3030_s14 = sshll.u32 %s2928_s24, 3  ;;  %p408_p5 = scmp.lt.s32.totalorder %s2932_s25, 1  ;;  %v2172_v3 = vld [vmem:[%s4531_s5 + $0x270] sm:$0xff]  ;;  %v2171_v6 = vld [vmem:[%s4531_s5 + $0x268] sm:$0xff]  ;;  %vm725_vm5 = vcmask 1046528  }
   0xf   : > { %v2189_v1 = vld [vmem:[%s4531_s5 + $0x2f8] sm:$0xff]  ;;  %2362 = vmatprep.subr.mxu0 %v2173_v0  ;;  %v2188_v4 = vld [vmem:[%s4531_s5 + $0x2f0] sm:$0xff]  ;;  %p424_p6 = scmp.lt.s32.totalorder %s3030_s14, 15  ;;  %v2187_v7 = vld [vmem:[%s4531_s5 + $0x2e8] sm:$0xff]  ;;  %s3078_s12 = sadd.s32 4294967295, %s3030_s14  ;;  %vm664_vm7 = vcmask 1040384  }
  0x10   : > { %v2157_v2 = vld [vmem:[%s4531_s5 + $0x1f8] sm:$0xff]  ;;  %2698 = vmatprep.subr.mxu1 %v2189_v1  ;;  %v2156_v5 = vld [vmem:[%s4531_s5 + $0x1f0] sm:$0xff]  ;;  %s4654_s25 = smov (!%p408_p5, %s2932_s25), 1  ;;  %v2155_v8 = vld [vmem:[%s4531_s5 + $0x1e8] sm:$0xff]  ;;  %v3100_v20 = vstv %s3078_s12  ;;  %p406_p7 = scmp.gt.s32.totalorder %s3078_s12, 0 }
  0x11   : > { %2363 = vmatpush3.msra.mxu0 %v2157_v2  ;;  %2699 = vmatpush3.msra.mxu1 %v2189_v1  ;;  %s425_s11 = scalar_select %p424_p6, %s3030_s14, 15  ;;  %v2170_v9 = vld [vmem:[%s4531_s5 + $0x260] sm:$0xff]  ;;  %v2169_v12 = vld [vmem:[%s4531_s5 + $0x258] sm:$0xff]  ;;  %v2168_v15 = vld [vmem:[%s4531_s5 + $0x250] sm:$0xff]  ;;  %v565_v25 = vadd.s32 1, %v3100_v20  ;;  %v566_v37 = vadd.s32 2, %v3100_v20 }
  0x12   : > { %2364 = vmatprep.subr.mxu0 %v2172_v3  ;;  %2700 = vmatprep.subr.mxu1 %v2188_v4  ;;  %v2186_v10 = vld [vmem:[%s4531_s5 + $0x2e0] sm:$0xff]  ;;  %s3063_s17 = sshll.u32 %s4654_s25, 5  ;;  %v2185_v13 = vld [vmem:[%s4531_s5 + $0x2d8] sm:$0xff]  ;;  %v2184_v16 = vld [vmem:[%s4531_s5 + $0x2d0] sm:$0xff]  ;;  %v567_v0 = vadd.s32 3, %v3100_v20  ;;  %p2113_p8 = scmp.lt.s32.totalorder %s3078_s12, 15 }
  0x13   : > { %2365 = vmatpush3.msra.mxu0 %v2156_v5  ;;  %2701 = vmatpush3.msra.mxu1 %v2188_v4  ;;  %v2154_v11 = vld [vmem:[%s4531_s5 + $0x1e0] sm:$0xff]  ;;  %s2122_s20 = sshll.u32 %s425_s11, 1  ;;  %v2153_v14 = vld [vmem:[%s4531_s5 + $0x1d8] sm:$0xff]  ;;  %v2152_v17 = vld [vmem:[%s4531_s5 + $0x1d0] sm:$0xff]  ;;  %vm575_vm0 = vcmp.ge.s32.totalorder %v565_v25, 0  ;;  %vm585_vm1 = vcmp.lt.s32.totalorder %v565_v25, 16 }
  0x14   : > { %2366 = vmatprep.subr.mxu0 %v2171_v6  ;;  %2702 = vmatprep.subr.mxu1 %v2187_v7  ;;  %s3081_s11 = sadd.s32 %s2122_s20, %s3063_s17  ;;  %v2167_v18 = vld [vmem:[%s4531_s5 + $0x248] sm:$0xff]  ;;  %v2166_v22 = vld [vmem:[%s4531_s5 + $0x240] sm:$0xff]  ;;  %v2165_v26 = vld [vmem:[%s4531_s5 + $0x238] sm:$0xff]  ;;  %vm576_vm3 = vcmp.ge.s32.totalorder %v566_v37, 0  ;;  %vm586_vm4 = vcmp.lt.s32.totalorder %v566_v37, 16  ;;  %vm577_vm8 = vcmp.ge.s32.totalorder %v567_v0, 0 }
  0x15   : > { %2367 = vmatpush3.msra.mxu0 %v2155_v8  ;;  %2703 = vmatpush3.msra.mxu1 %v2187_v7  ;;  %v2183_v19 = vld [vmem:[%s4531_s5 + $0x2c8] sm:$0xff]  ;;  %s2124_s9 = sshll.u32 %s3081_s11, 3  ;;  %v2182_v23 = vld [vmem:[%s4531_s5 + $0x2c0] sm:$0xff]  ;;  %v2181_v27 = vld [vmem:[%s4531_s5 + $0x2b8] sm:$0xff]  ;;  %vm587_vm9 = vcmp.lt.s32.totalorder %v567_v0, 16  ;;  %s433_s22 = sadd.s32 8, %s3030_s14 }
  0x16   : > { %2368 = vmatprep.subr.mxu0 %v2170_v9  ;;  %2704 = vmatprep.subr.mxu1 %v2186_v10  ;;  %v2151_v21 = vld [vmem:[%s4531_s5 + $0x1c8] sm:$0xff]  ;;  %v2150_v24 = vld [vmem:[%s4531_s5 + $0x1c0] sm:$0xff]  ;;  %s3119_s8 = scalar_lea.vmem %s4527_s1, %s2124_s9  ;;  %v2149_v28 = vld [vmem:[%s4531_s5 + $0x1b8] sm:$0xff]  ;;  %p3590_p9 = scmp.lt.s32.totalorder %s433_s22, 15 }
  0x17   : > { %2369 = vmatpush3.msra.mxu0 %v2154_v11  ;;  %2705 = vmatpush3.msra.mxu1 %v2186_v10  ;;  %v2164_v29 = vld [vmem:[%s4531_s5 + $0x230] sm:$0xff]  ;;  %v471_v31 = vld [vmem:[%s3119_s8] sm:$0xff]  ;;  %v472_v36 = vld [vmem:[%s3119_s8 + $0x8] sm:$0xff]  ;;  %s3306_s15 = scalar_select %p406_p7, %s3078_s12, 0 }
  0x18   : > { %2370 = vmatprep.subr.mxu0 %v2169_v12  ;;  %2706 = vmatprep.subr.mxu1 %v2185_v13  ;;  %v2180_v30 = vld [vmem:[%s4531_s5 + $0x2b0] sm:$0xff]  ;;  %v3141_v32 = vld [vmem:[%s4529_s3] ss:$0 sm:$0xff]  ;;  %v2163_v38 = vld [vmem:[%s4531_s5 + $0x228] sm:$0xff]  ;;  %s4658_s22 = smov (!%p3590_p9, %s433_s22), 15  ;;  %p462_p10 = scmp.lt.s32.totalorder %s2928_s24, 1 }
  0x19   : > { %2371 = vmatpush3.msra.mxu0 %v2153_v14  ;;  %2707 = vmatpush3.msra.mxu1 %v2185_v13  ;;  %v3146_v33 = vld [vmem:[%s4530_s4] ss:$0 sm:$0xff]  ;;  %v2148_v34 = vld [vmem:[%s4531_s5 + $0x1b0] sm:$0xff]  ;;  %v498_v35 = vmul.f32 %v3141_v32, %v471_v31  ;;  %v2179_v39 = vld [vmem:[%s4531_s5 + $0x2a8] sm:$0xff]  ;;  %v499_v40 = vmul.f32 %v3141_v32, %v472_v36  ;;  %s4656_s15 = smov (!%p2113_p8, %s3306_s15), 15  ;;  %s4660_s22 = smov (!%p3590_p9, %s4658_s22), 15 }
  0x1a   : > { %2372 = vmatprep.subr.mxu0 %v2168_v15  ;;  %2708 = vmatprep.subr.mxu1 %v2184_v16  ;;  %v2147_v41 = vld [vmem:[%s4531_s5 + $0x1a8] sm:$0xff]  ;;  %v473_v43 = vld [vmem:[%s3119_s8 + $0x10] sm:$0xff]  ;;  %v474_v44 = vld [vmem:[%s3119_s8 + $0x18] sm:$0xff]  ;;  %s2118_s18 = sshll.u32 %s4656_s15, 1  ;;  %s2129_s14 = sshll.u32 %s4660_s22, 1 }
  0x1b   : > { %2373 = vmatpush3.msra.mxu0 %v2152_v17  ;;  %2709 = vmatpush3.msra.mxu1 %v2184_v16  ;;  %v525_v42 = vadd.f32 %v3146_v33, %v498_v35  ;;  %v2162_v45 = vld [vmem:[%s4531_s5 + $0x220] sm:$0xff]  ;;  %vm3175_vm2 = vmand %vm575_vm0, %vm585_vm1  ;;  %v526_v48 = vadd.f32 %v3146_v33, %v499_v40  ;;  %v500_v49 = vmul.f32 %v3141_v32, %v473_v43  ;;  %v2161_v52 = vld [vmem:[%s4531_s5 + $0x218] sm:$0xff]  ;;  %s3466_s23 = sadd.s32 %s3063_s17, %s2118_s18  ;;  %s442_s15 = sadd.s32 %s2129_s14, %s3063_s17 }
  0x1c   : > { %2374 = vmatprep.subr.mxu0 %v2167_v18  ;;  %2710 = vmatprep.subr.mxu1 %v2183_v19  ;;  %v2178_v46 = vld [vmem:[%s4531_s5 + $0x2a0] sm:$0xff]  ;;  %v501_v50 = vmul.f32 %v3141_v32, %v474_v44  ;;  %v2177_v54 = vld [vmem:[%s4531_s5 + $0x298] sm:$0xff]  ;;  %v476_v59 = vld [vmem:[%s3119_s8 + $0x28] sm:$0xff]  ;;  %s2120_s18 = sshll.u32 %s3466_s23, 3  ;;  %s2131_s22 = sshll.u32 %s442_s15, 3 }
  0x1d   : > { %2375 = vmatpush3.msra.mxu0 %v2151_v21  ;;  %2711 = vmatpush3.msra.mxu1 %v2183_v19  ;;  %v2146_v51 = vld [vmem:[%s4531_s5 + $0x1a0] sm:$0xff]  ;;  %v3188_v53 = vmax.f32 %v525_v42, 0.0  ;;  %v3193_v55 = vmax.f32 %v526_v48, 0.0  ;;  %v527_v56 = vadd.f32 %v3146_v33, %v500_v49  ;;  %v2145_v60 = vld [vmem:[%s4531_s5 + $0x198] sm:$0xff]  ;;  %v503_v63 = vmul.f32 %v3141_v32, %v476_v59  ;;  %v2160_v1 = vld [vmem:[%s4531_s5 + $0x210] sm:$0xff]  ;;  %s416_s16 = scalar_lea.vmem %s4526_s0, %s2120_s18  ;;  %s444_s23 = scalar_lea.vmem %s4528_s2, %s2131_s22 }
  0x1e   : > { %2376 = vmatprep.subr.mxu0 %v2166_v22  ;;  %2712 = vmatprep.subr.mxu1 %v2182_v23  ;;  %v528_v57 = vadd.f32 %v3146_v33, %v501_v50  ;;  %v475_v58 = vld [vmem:[%s3119_s8 + $0x20] sm:$0xff]  ;;  %v2176_v2 = vld [vmem:[%s4531_s5 + $0x290] sm:$0xff]  ;;  %vm3228_vm6 = vmand %vm576_vm3, %vm586_vm4  ;;  %v569_v49 = vadd.s32 5, %v3100_v20  ;;  %s4662_s24 = smov (!%p462_p10, %s2928_s24), 1  ;;  %s2136_s11 = sshll.u32 %s4654_s25, 1 }
  0x1f   : > { %2377 = vmatpush3.msra.mxu0 %v2150_v24  ;;  %2713 = vmatpush3.msra.mxu1 %v2182_v23  ;;  %v626_v61 = vsel %vm3175_vm2, %v3188_v53, 0.0  ;;  %v502_v62 = vmul.f32 %v3141_v32, %v475_v58  ;;  %v2144_v3 = vld [vmem:[%s4531_s5 + $0x190] sm:$0xff]  ;;  %v3220_v4 = vsel %vm3175_vm2, %v3193_v55, 0.0  ;;  %v3222_v5 = vmax.f32 %v527_v56, 0.0  ;;  %v478_v11 = vld [vmem:[%s3119_s8 + $0x38] sm:$0xff]  ;;  %v2159_v12 = vld [vmem:[%s4531_s5 + $0x208] sm:$0xff] }
  0x20   : > { %2378 = vmatprep.subr.mxu0 %v2165_v26  ;;  %2714 = vmatprep.subr.mxu1 %v2181_v27  ;;  %v729_v6 = vrot.slane %v626_v61, 1  ;;  %v3224_v7 = vmax.f32 %v528_v57, 0.0  ;;  %v477_v10 = vld [vmem:[%s3119_s8 + $0x30] sm:$0xff]  ;;  %v2175_v13 = vld [vmem:[%s4531_s5 + $0x288] sm:$0xff]  ;;  %v3242_v14 = vrot.slane %v3220_v4, 1  ;;  %v530_v15 = vadd.f32 %v3146_v33, %v503_v63  ;;  %v2158_v19 = vld [vmem:[%s4531_s5 + $0x200] sm:$0xff] }
  0x21   : > { %2379 = vmatpush3.msra.mxu0 %v2149_v28  ;;  %2715 = vmatpush3.msra.mxu1 %v2181_v27  ;;  %v529_v9 = vadd.f32 %v3146_v33, %v502_v62  ;;  %v504_v16 = vmul.f32 %v3141_v32, %v477_v10  ;;  %v505_v17 = vmul.f32 %v3141_v32, %v478_v11  ;;  %v2143_v18 = vld [vmem:[%s4531_s5 + $0x188] sm:$0xff]  ;;  %v2174_v21 = vld [vmem:[%s4531_s5 + $0x280] sm:$0xff]  ;;  %v3260_v22 = vsel %vm3228_vm6, %v3222_v5, 0.0  ;;  %vm3286_vm10 = vmand %vm577_vm8, %vm587_vm9 }
  0x22   : > { %2380 = vmatprep.subr.mxu0 %v2164_v29  ;;  %2716 = vmatprep.subr.mxu1 %v2180_v30  ;;  %v3265_v23 = vsel %vm3228_vm6, %v3224_v7, 0.0  ;;  %v568_v24 = vadd.s32 4, %v3100_v20  ;;  %v479_v25 = vld [vmem:[%s3119_s8 + $0x40] sm:$0xff]  ;;  %v480_v26 = vld [vmem:[%s3119_s8 + $0x48] sm:$0xff]  ;;  %v3273_v28 = vrot.slane %v626_v61, 7  ;;  %v3281_v31 = vsel %vm725_vm5, %v729_v6, %v3242_v14  ;;  %vm3293_vm11 = vmneg %vm664_vm7 }
  0x23   : > { %2381 = vmatpush3.msra.mxu0 %v2148_v34  ;;  %2717 = vmatpush3.msra.mxu1 %v2180_v30  ;;  %v2142_v27 = vld [vmem:[%s4531_s5 + $0x180] sm:$0xff]  ;;  %v3275_v29 = vmax.f32 %v529_v9, 0.0  ;;  %v3277_v30 = vmax.f32 %v530_v15, 0.0  ;;  %v669_v34 = vrot.slane %v3220_v4, 7  ;;  %v531_v36 = vadd.f32 %v3146_v33, %v504_v16  ;;  %v817_v43 = vld [vmem:[%s4531_s5 + $0xf8] sm:$0xff]  ;;  %v481_v50 = vld [vmem:[%s3119_s8 + $0x50] sm:$0xff] }
  0x24   : > { %2382 = vmatprep.subr.mxu0 %v2163_v38  ;;  %2718 = vmatprep.subr.mxu1 %v2179_v39  ;;  %v532_v37 = vadd.f32 %v3146_v33, %v505_v17  ;;  %v3299_v40 = vrot.slane %v3265_v23, 1  ;;  %v507_v42 = vmul.f32 %v3141_v32, %v480_v26  ;;  %v833_v44 = vld [vmem:[%s4531_s5 + $0x178] sm:$0xff]  ;;  %vm578_vm12 = vcmp.ge.s32.totalorder %v568_v24, 0  ;;  %v800_v59 = vld [vmem:[%s4531_s5 + $0x70] sm:$0xff]  ;;  %v799_v6 = vld [vmem:[%s4531_s5 + $0x68] sm:$0xff] }
  0x25   : > { %2383 = vmatpush3.msra.mxu0 %v2147_v41  ;;  %2719 = vmatpush3.msra.mxu1 %v2179_v39  ;;  %v732_v39 = vrot.slane %v3260_v22, 1  ;;  %v506_v41 = vmul.f32 %v3141_v32, %v479_v25  ;;  %vm588_vm13 = vcmp.lt.s32.totalorder %v568_v24, 16  ;;  %v3330_v48 = vsel %vm3286_vm10, %v3277_v30, 0.0  ;;  %v832_v4 = vld [vmem:[%s4531_s5 + $0x170] sm:$0xff]  ;;  %v814_v15 = vld [vmem:[%s4531_s5 + $0xe0] sm:$0xff] }
  0x26   : > { %2384 = vmatprep.subr.mxu0 %v2162_v45  ;;  %2720 = vmatprep.subr.mxu1 %v2178_v46  ;;  %4570 = vst [vmem:[#allocation2_spill] sm:$0xff] %v3299_v40  ;;  %v801_v45 = vld [vmem:[%s4531_s5 + $0x78] sm:$0xff]  ;;  %v3347_v56 = vmax.f32 %v531_v36, 0.0  ;;  %v3349_v57 = vmax.f32 %v532_v37, 0.0  ;;  %vm3360_vm14 = vmand %vm578_vm12, %vm588_vm13  ;;  %v534_v62 = vadd.f32 %v3146_v33, %v507_v42  ;;  %v3368_v0 = vrot.slane %v3330_v48, 1 }
  0x27   : > { %2385 = vmatpush3.msra.mxu0 %v2146_v51  ;;  %2721 = vmatpush3.msra.mxu1 %v2178_v46  ;;  %v3325_v46 = vsel %vm3286_vm10, %v3275_v29, 0.0  ;;  %v482_v51 = vld [vmem:[%s3119_s8 + $0x58] sm:$0xff]  ;;  %v3353_v58 = vsel %vm725_vm5, %v732_v39, %v3299_v40  ;;  %v533_v61 = vadd.f32 %v3146_v33, %v506_v41  ;;  %vm579_vm15 = vcmp.ge.s32.totalorder %v569_v49, 0  ;;  %v831_v39 = vld [vmem:[%s4531_s5 + $0x168] sm:$0xff] }
  0x28   : > { %2386 = vmatprep.subr.mxu0 %v2161_v52  ;;  %2722 = vmatprep.subr.mxu1 %v2177_v54  ;;  %v816_v52 = vld [vmem:[%s4531_s5 + $0xf0] sm:$0xff]  ;;  %v735_v63 = vrot.slane %v3325_v46, 1  ;;  %4573 = vst [vmem:[#allocation3_spill] sm:$0xff] %v3368_v0  ;;  %vm589_vm0 = vcmp.lt.s32.totalorder %v569_v49, 16  ;;  %v3393_v9 = vsel %vm3360_vm14, %v3347_v56, 0.0  ;;  %v3398_v10 = vsel %vm3360_vm14, %v3349_v57, 0.0 }
  0x29   : > { %2387 = vmatpush3.msra.mxu0 %v2145_v60  ;;  %2723 = vmatpush3.msra.mxu1 %v2177_v54  ;;  %v3345_v54 = vsel %vm664_vm7, %v3273_v28, %v669_v34  ;;  %v570_v11 = vadd.s32 6, %v3100_v20  ;;  %v3410_v16 = vrot.slane %v3260_v22, 7  ;;  %v3412_v17 = vmax.f32 %v533_v61, 0.0  ;;  %vm3426_vm1 = vmand %vm579_vm15, %vm589_vm0  ;;  %v813_v37 = vld [vmem:[%s4531_s5 + $0xd8] sm:$0xff] }
  0x2a   : > { %2388 = vmatprep.subr.mxu0 %v2160_v1  ;;  %2724 = vmatprep.subr.mxu1 %v2176_v2  ;;  %v508_v1 = vmul.f32 %v3141_v32, %v481_v50  ;;  %v672_v24 = vrot.slane %v3265_v23, 7  ;;  %v3435_v34 = vrot.slane %v3398_v10, 1  ;;  %v797_v41 = vld [vmem:[%s4531_s5 + $0x58] sm:$0xff]  ;;  %v812_v50 = vld [vmem:[%s4531_s5 + $0xd0] sm:$0xff] }
  0x2b   : > { %2389 = vmatpush3.msra.mxu0 %v2144_v3  ;;  %2725 = vmatpush3.msra.mxu1 %v2176_v2  ;;  %v509_v2 = vmul.f32 %v3141_v32, %v482_v51  ;;  %v815_v3 = vld [vmem:[%s4531_s5 + $0xe8] sm:$0xff]  ;;  %vm580_vm3 = vcmp.ge.s32.totalorder %v570_v11, 0  ;;  %vm590_vm4 = vcmp.lt.s32.totalorder %v570_v11, 16  ;;  %v3455_v42 = vsel %vm3426_vm1, %v3412_v17, 0.0  ;;  %v486_v49 = vld [vmem:[%s3119_s8 + $0x78] sm:$0xff] }
  0x2c   : > { %2390 = vmatprep.subr.mxu0 %v2159_v12  ;;  %2726 = vmatprep.subr.mxu1 %v2175_v13  ;;  %v483_v12 = vld [vmem:[%s3119_s8 + $0x60] sm:$0xff]  ;;  %v535_v25 = vadd.f32 %v3146_v33, %v508_v1  ;;  %4577 = vst [vmem:[#allocation5_spill] sm:$0xff] %v3435_v34  ;;  %v3478_v51 = vsel %vm664_vm7, %v3410_v16, %v672_v24  ;;  %vm3493_vm8 = vmand %vm580_vm3, %vm590_vm4  ;;  %v811_v11 = vld [vmem:[%s4531_s5 + $0xc8] sm:$0xff]  ;;  %vm574_vm4 = vcmp.ge.s32.totalorder %v3100_v20, 0 }
  0x2d   : > { %2391 = vmatpush3.msra.mxu0 %v2143_v18  ;;  %2727 = vmatpush3.msra.mxu1 %v2175_v13  ;;  %v484_v13 = vld [vmem:[%s3119_s8 + $0x68] sm:$0xff]  ;;  %v3414_v18 = vmax.f32 %v534_v62, 0.0  ;;  %v536_v26 = vadd.f32 %v3146_v33, %v509_v2  ;;  %v510_v23 = vmul.f32 %v3141_v32, %v483_v12  ;;  %v796_v62 = vld [vmem:[%s4531_s5 + $0x50] sm:$0xff]  ;;  %v513_v12 = vmul.f32 %v3141_v32, %v486_v49 }
  0x2e   : > { %2392 = vmatprep.subr.mxu0 %v2158_v19  ;;  %2728 = vmatprep.subr.mxu1 %v2174_v21  ;;  %v3418_v19 = vsel %vm725_vm5, %v735_v63, %v3368_v0  ;;  %v511_v36 = vmul.f32 %v3141_v32, %v484_v13  ;;  %v830_v13 = vld [vmem:[%s4531_s5 + $0x160] sm:$0xff] }
  0x2f   : > { %2393 = vmatpush3.msra.mxu0 %v2142_v27  ;;  %2190 = vmatprep.mubr.msk.f32.mxu0 %vm3175_vm2, %v3188_v53  ;;  %4574 = vst [vmem:[#allocation4_spill] sm:$0xff] %v3418_v19  ;;  %v738_v27 = vrot.slane %v3393_v9, 1  ;;  %v537_v1 = vadd.f32 %v3146_v33, %v510_v23  ;;  %v540_v49 = vadd.f32 %v3146_v33, %v513_v12 }
  0x30   : > { %2729 = vmatpush3.msra.mxu1 %v2174_v21  ;;  %2730 = vmatprep.mubr.f32.mxu1 %v3281_v31  ;;  %v798_v21 = vld [vmem:[%s4531_s5 + $0x60] sm:$0xff]  ;;  %v538_v2 = vadd.f32 %v3146_v33, %v511_v36 }
  0x31   : > { %2192 = vmatmul.mubr.msk.f32.vlgmr.msra.gmra.mxu0 %vm3293_vm11, %v3273_v28  ;;  %2731 = vmatmul.mubr.msk.f32.vlgmr.msra.gmra.mxu1 %vm725_vm5, %v3242_v14  ;;  %v3486_v61 = vsel %vm725_vm5, %v738_v27, %v3435_v34  ;;  %v3536_v27 = vmax.f32 %v537_v1, 0.0  ;;  %v675_v1 = vrot.slane %v3330_v48, 7 }
  0x32   : > { %2474 = vmatprep.subr.mxu1 %v817_v43  ;;  %2754 = vmatprep.subr.mxu0 %v833_v44  ;;  %v3460_v43 = vsel %vm3426_vm1, %v3414_v18, 0.0  ;;  %4578 = vst [vmem:[#allocation6_spill] sm:$0xff] %v3486_v61  ;;  %v3538_v23 = vmax.f32 %v538_v2, 0.0  ;;  %v469_v2 = vld [vmem:[%s416_s16] sm:$0xff] }
  0x33   : > { %2475 = vmatpush3.msra.mxu1 %v801_v45  ;;  %2755 = vmatpush3.msra.mxu0 %v833_v44  ;;  %v571_v44 = vadd.s32 7, %v3100_v20  ;;  %v485_v45 = vld [vmem:[%s3119_s8 + $0x70] sm:$0xff] }
  0x34   : > { %2476 = vmatprep.subr.mxu1 %v816_v52  ;;  %2193 = vmatprep.mubr.msk.f32.mxu0 %vm3175_vm2, %v3193_v55  ;;  %v3480_v52 = vmax.f32 %v535_v25, 0.0 }
  0x35   : > { %2733 = vmatprep.mubr.f32.mxu1 %v3353_v58  ;;  %2477 = vmatpush3.msra.mxu1 %v800_v59  ;;  %v3482_v59 = vmax.f32 %v536_v26, 0.0  ;;  %vm581_vm9 = vcmp.ge.s32.totalorder %v571_v44, 0  ;;  %vm591_vm12 = vcmp.lt.s32.totalorder %v571_v44, 16  ;;  %v810_v26 = vld [vmem:[%s4531_s5 + $0xc0] sm:$0xff]  ;;  %v829_v44 = vld [vmem:[%s4531_s5 + $0x158] sm:$0xff] }
  0x36   : > { %953 = vmatmul.mubr.f32.gmra.mxu0 %v3345_v54  ;;  %2734 = vmatmul.mubr.msk.f32.gmra.mxu1 %vm725_vm5, %v3299_v40  ;;  %v3523_v24 = vsel %vm3493_vm8, %v3480_v52, 0.0  ;;  %vm3555_vm13 = vmand %vm581_vm9, %vm591_vm12  ;;  %vm584_vm9 = vcmp.lt.s32.totalorder %v3100_v20, 16 }
  0x37   : > { %2478 = vmatprep.subr.mxu1 %v815_v3  ;;  %2756 = vmatprep.subr.mxu0 %v832_v4  ;;  %v741_v3 = vrot.slane %v3455_v42, 1  ;;  %v3528_v25 = vsel %vm3493_vm8, %v3482_v59, 0.0  ;;  %v3583_v12 = vsel %vm3555_vm13, %v3536_v27, 0.0  ;;  %v3588_v48 = vsel %vm3555_vm13, %v3538_v23, 0.0  ;;  %vm3716_vm12 = vmand %vm574_vm4, %vm584_vm9 }
  0x38   : > { %2479 = vmatpush3.msra.mxu1 %v799_v6  ;;  %2757 = vmatpush3.msra.mxu0 %v832_v4  ;;  %v3501_v4 = vrot.slane %v3460_v43, 1  ;;  %v512_v6 = vmul.f32 %v3141_v32, %v485_v45  ;;  %v3886_v47 = vrot.slane %v3583_v12, 7 }
  0x39   : > { %2480 = vmatprep.subr.mxu1 %v814_v15  ;;  %2194 = vmatprep.mubr.msk.f32.mxu0 %vm3228_vm6, %v3222_v5  ;;  %v572_v15 = vadd.s32 8, %v3100_v20 }
  0x3a   : > { %2736 = vmatprep.mubr.f32.mxu1 %v3418_v19  ;;  %2481 = vmatpush3.msra.mxu1 %v798_v21  ;;  %4581 = vst [vmem:[#allocation7_spill] sm:$0xff] %v3501_v4  ;;  %v795_v21 = vld [vmem:[%s4531_s5 + $0x48] sm:$0xff]  ;;  %v3545_v36 = vsel %vm725_vm5, %v741_v3, %v3501_v4  ;;  %v539_v45 = vadd.f32 %v3146_v33, %v512_v6  ;;  %v793_v6 = vld [vmem:[%s4531_s5 + $0x38] sm:$0xff] }
  0x3b   : > { %2196 = vmatmul.mubr.msk.f32.gmra.mxu0 %vm3293_vm11, %v3410_v16  ;;  %2737 = vmatmul.mubr.msk.f32.gmra.mxu1 %vm725_vm5, %v3368_v0  ;;  %4582 = vst [vmem:[#allocation8_spill] sm:$0xff] %v3545_v36  ;;  %vm582_vm15 = vcmp.ge.s32.totalorder %v572_v15, 0  ;;  %vm592_vm0 = vcmp.lt.s32.totalorder %v572_v15, 16  ;;  %v470_v3 = vld [vmem:[%s416_s16 + $0x8] sm:$0xff]  ;;  %v3629_v15 = vrot.slane %v3588_v48, 1  ;;  %s4378_s16 = scalar_lea.vmem %s4532_s6, %s2124_s9  ;;  %s465_s9 = sadd.s32 %s2136_s11, %s4662_s24 }
  0x3c   : > { %2482 = vmatprep.subr.mxu1 %v813_v37  ;;  %2758 = vmatprep.subr.mxu0 %v831_v39  ;;  %v794_v37 = vld [vmem:[%s4531_s5 + $0x40] sm:$0xff]  ;;  %vm3615_vm3 = vmand %vm582_vm15, %vm592_vm0  ;;  %v488_v0 = vld [vmem:[%s444_s23 + $0x8] sm:$0xff]  ;;  %s2137_s15 = sshll.u32 %s465_s9, 1 }
  0x3d   : > { %2483 = vmatpush3.msra.mxu1 %v797_v41  ;;  %2759 = vmatpush3.msra.mxu0 %v831_v39  ;;  %v3551_v39 = vrot.slane %v3325_v46, 7  ;;  %v744_v46 = vrot.slane %v3523_v24, 1  ;;  %4590 = vst [vmem:[#allocation11_spill] sm:$0xff] %v3629_v15  ;;  %s4496_s18 = scalar_lea.vmem %s4533_s7, %s2137_s15 }
  0x3e   : > { %2484 = vmatprep.subr.mxu1 %v812_v50  ;;  %2197 = vmatprep.mubr.msk.f32.mxu0 %vm3228_vm6, %v3224_v7  ;;  %v809_v50 = vld [vmem:[%s4531_s5 + $0xb8] sm:$0xff] }
  0x3f   : > { %2739 = vmatprep.mubr.f32.mxu1 %v3486_v61  ;;  %2485 = vmatpush3.msra.mxu1 %v796_v62  ;;  %v3566_v62 = vrot.slane %v3528_v25, 1  ;;  %v487_v61 = vld [vmem:[%s444_s23] sm:$0xff] }
  0x40   : > { %963 = vmatmul.mubr.f32.gmra.mxu0 %v3478_v51  ;;  %2740 = vmatmul.mubr.msk.f32.gmra.mxu1 %vm725_vm5, %v3435_v34  ;;  %v3676_v34 = vrot.slane %v3393_v9, 7  ;;  %v805_v9 = vld [vmem:[%s4531_s5 + $0x98] sm:$0xff] }
  0x41   : > { %2486 = vmatprep.subr.mxu1 %v811_v11  ;;  %2760 = vmatprep.subr.mxu0 %v830_v13  ;;  %4585 = vst [vmem:[#allocation9_spill] sm:$0xff] %v3566_v62  ;;  %v808_v11 = vld [vmem:[%s4531_s5 + $0xb0] sm:$0xff] }
  0x42   : > { %2487 = vmatpush3.msra.mxu1 %v795_v21  ;;  %2761 = vmatpush3.msra.mxu0 %v830_v13  ;;  %v3602_v13 = vmax.f32 %v539_v45, 0.0  ;;  %v3604_v21 = vmax.f32 %v540_v49, 0.0  ;;  %v496_v45 = vmul.f32 %v3141_v32, %v469_v2  ;;  %v497_v49 = vmul.f32 %v3141_v32, %v470_v3  ;;  %v807_v2 = vld [vmem:[%s4531_s5 + $0xa8] sm:$0xff] }
  0x43   : > { %2488 = vmatprep.subr.mxu1 %v810_v26  ;;  %2198 = vmatprep.mubr.msk.f32.mxu0 %vm3286_vm10, %v3275_v29  ;;  %v3608_v26 = vsel %vm725_vm5, %v744_v46, %v3566_v62  ;;  %v747_v46 = vrot.slane %v3583_v12, 1  ;;  %v2314_v12 = vld [vmem:[%s4531_s5 + $0x460] sm:$0xff] }
  0x44   : > { %2742 = vmatprep.mubr.f32.mxu1 %v3545_v36  ;;  %2489 = vmatpush3.msra.mxu1 %v794_v37  ;;  %4587 = vst [vmem:[#allocation10_spill] sm:$0xff] %v3608_v26  ;;  %v792_v37 = vld [vmem:[%s4531_s5 + $0x30] sm:$0xff]  ;;  %v3649_v3 = vsel %vm3615_vm3, %v3602_v13, 0.0 }
  0x45   : > { %2200 = vmatmul.mubr.msk.f32.gmra.mxu0 %vm3293_vm11, %v3551_v39  ;;  %2743 = vmatmul.mubr.msk.f32.gmra.mxu1 %vm725_vm5, %v3501_v4  ;;  %v3670_v36 = vsel %vm725_vm5, %v747_v46, %v3629_v15  ;;  %v827_v46 = vld [vmem:[%s4531_s5 + $0x148] sm:$0xff] }
  0x46   : > { %2490 = vmatprep.subr.mxu1 %v809_v50  ;;  %2762 = vmatprep.subr.mxu0 %v829_v44  ;;  %v3625_v50 = vsel %vm664_vm7, %v3551_v39, %v675_v1  ;;  %v791_v1 = vld [vmem:[%s4531_s5 + $0x28] sm:$0xff]  ;;  %4591 = vst [vmem:[#allocation12_spill] sm:$0xff] %v3670_v36 }
  0x47   : > { %2491 = vmatpush3.msra.mxu1 %v793_v6  ;;  %2763 = vmatpush3.msra.mxu0 %v829_v44  ;;  %v828_v44 = vld [vmem:[%s4531_s5 + $0x150] sm:$0xff]  ;;  %v3654_v6 = vsel %vm3615_vm3, %v3604_v21, 0.0 }
  0x48   : > { %2492 = vmatprep.subr.mxu1 %v808_v11  ;;  %2201 = vmatprep.mubr.msk.f32.mxu0 %vm3286_vm10, %v3277_v30  ;;  %v806_v11 = vld [vmem:[%s4531_s5 + $0xa0] sm:$0xff] }
  0x49   : > { %2745 = vmatprep.mubr.f32.mxu1 %v3608_v26  ;;  %2493 = vmatpush3.msra.mxu1 %v792_v37  ;;  %v3663_v37 = vadd.f32 %v3146_v33, %v496_v45  ;;  %v3666_v26 = vadd.f32 %v3146_v33, %v497_v49  ;;  %v750_v45 = vrot.slane %v3649_v3, 1  ;;  %v3681_v49 = vrot.slane %v3654_v6, 1 }
  0x4a   : > { %973 = vmatmul.mubr.f32.gmra.mxu0 %v3625_v50  ;;  %2746 = vmatmul.mubr.msk.f32.gmra.mxu1 %vm725_vm5, %v3566_v62  ;;  %v790_v62 = vld [vmem:[%s4531_s5 + $0x20] sm:$0xff] }
  0x4b   : > { %2494 = vmatprep.subr.mxu1 %v807_v2  ;;  %2764 = vmatprep.subr.mxu0 %v828_v44  ;;  %4592 = vst [vmem:[#allocation13_spill] sm:$0xff] %v3681_v49  ;;  %v678_v2 = vrot.slane %v3398_v10, 7  ;;  %v804_v10 = vld [vmem:[%s4531_s5 + $0x90] sm:$0xff] }
  0x4c   : > { %2495 = vmatpush3.msra.mxu1 %v791_v1  ;;  %2765 = vmatpush3.msra.mxu0 %v828_v44  ;;  %v789_v44 = vld [vmem:[%s4531_s5 + $0x18] sm:$0xff]  ;;  %v543_v1 = vmax.f32 %v3663_v37, 0.0  ;;  %v514_v37 = vmul.f32 %v3141_v32, %v487_v61 }
  0x4d   : > { %2496 = vmatprep.subr.mxu1 %v806_v11  ;;  %2202 = vmatprep.mubr.msk.f32.mxu0 %vm3360_vm14, %v3347_v56  ;;  %v515_v11 = vmul.f32 %v3141_v32, %v488_v0  ;;  %v3731_v19 = vsel %vm664_vm7, %v3676_v34, %v678_v2  ;;  %v573_v32 = vadd.s32 9, %v3100_v20  ;;  %v4598_v20 = vmax.f32 %v3666_v26, 0.0  ;;  %v787_v2 = vld [vmem:[%s4531_s5 + $0x8] sm:$0xff] }
  0x4e   : > { %2748 = vmatprep.mubr.f32.mxu1 %v3670_v36  ;;  %2497 = vmatpush3.msra.mxu1 %v790_v62  ;;  %v788_v36 = vld [vmem:[%s4531_s5 + $0x10] sm:$0xff]  ;;  %v3734_v61 = vadd.f32 %v3146_v33, %v514_v37  ;;  %v786_v37 = vld [vmem:[%s4531_s5] sm:$0xff]  ;;  %v819_v62 = vld [vmem:[%s4531_s5 + $0x108] sm:$0xff] }
  0x4f   : > { %2204 = vmatmul.mubr.msk.f32.gmra.mxu0 %vm3293_vm11, %v3676_v34  ;;  %2749 = vmatmul.mubr.msk.f32.gmra.mxu1 %vm725_vm5, %v3629_v15  ;;  %v3724_v15 = vsel %vm725_vm5, %v750_v45, %v3681_v49  ;;  %v3738_v0 = vadd.f32 %v3146_v33, %v515_v11  ;;  %v803_v45 = vld [vmem:[%s4531_s5 + $0x88] sm:$0xff]  ;;  %v3757_v33 = vsel %vm3716_vm12, %v4598_v20, 0.0  ;;  %vm583_vm15 = vcmp.ge.s32.totalorder %v573_v32, 0 }
  0x50   : > { %2498 = vmatprep.subr.mxu1 %v805_v9  ;;  %2766 = vmatprep.subr.mxu0 %v827_v46  ;;  %4595 = vst [vmem:[#allocation14_spill] sm:$0xff] %v3724_v15  ;;  %4596 = vst [vmem:[#allocation15_spill] sm:$0xff] %v3734_v61  ;;  %v826_v9 = vld [vmem:[%s4531_s5 + $0x140] sm:$0xff]  ;;  %vm593_vm0 = vcmp.lt.s32.totalorder %v573_v32, 16  ;;  %v3780_v20 = vrot.slane %v3455_v42, 7  ;;  %v666_v40 = vrot.slane %v3757_v33, 7 }
  0x51   : > { %2499 = vmatpush3.msra.mxu1 %v789_v44  ;;  %2767 = vmatpush3.msra.mxu0 %v827_v46  ;;  %4597 = vst [vmem:[#allocation16_spill] sm:$0xff] %v3738_v0  ;;  %v3751_v46 = vsel %vm3716_vm12, %v543_v1, 0.0  ;;  %v4559_v44 = vmax.f32 %v3734_v61, 0.0  ;;  %vm3771_vm4 = vmand %vm583_vm15, %vm593_vm0 }
  0x52   : > { %2500 = vmatprep.subr.mxu1 %v804_v10  ;;  %2205 = vmatprep.mubr.msk.f32.mxu0 %vm3360_vm14, %v3349_v57  ;;  %v802_v10 = vld [vmem:[%s4531_s5 + $0x80] sm:$0xff]  ;;  %v665_v32 = vrot.slane %v3751_v46, 7 }
  0x53   : > { %2751 = vmatprep.mubr.f32.mxu1 %v3724_v15  ;;  %2501 = vmatpush3.msra.mxu1 %v788_v36  ;;  %v3786_v11 = vsel %vm3771_vm4, %v4559_v44, 0.0  ;;  %v681_v15 = vrot.slane %v3460_v43, 7  ;;  %v4602_v44 = vmax.f32 %v3666_v26, 0.0  ;;  %v684_v26 = vrot.slane %v3528_v25, 7  ;;  %v821_v25 = vld [vmem:[%s4531_s5 + $0x118] sm:$0xff] }
  0x54   : > { %983 = vmatmul.mubr.f32.gmra.mxu0 %v3731_v19  ;;  %2752 = vmatmul.mubr.msk.f32.gmra.mxu1 %vm725_vm5, %v3681_v49  ;;  %v4601_v49 = vmax.f32 %v3738_v0, 0.0  ;;  %v753_v42 = vrot.slane %v3786_v11, 1  ;;  %v823_v0 = vld [vmem:[%s4531_s5 + $0x128] sm:$0xff] }
  0x55   : > { %2502 = vmatprep.subr.mxu1 %v803_v45  ;;  %2768 = vmatprep.subr.mxu0 %v826_v9 }
  0x56   : > { %v3792_v45 = vsel %vm3771_vm4, %v4601_v49, 0.0  ;;  %2503 = vmatpush3.msra.mxu1 %v787_v2  ;;  %2769 = vmatpush3.msra.mxu0 %v826_v9  ;;  %v825_v49 = vld [vmem:[%s4531_s5 + $0x138] sm:$0xff]  ;;  %v824_v9 = vld [vmem:[%s4531_s5 + $0x130] sm:$0xff]  ;;  %v692_v2 = vrot.slane %v3786_v11, 7 }
  0x57   : > { %v4560_v61 = vrot.slane %v3792_v45, 1  ;;  %2504 = vmatprep.subr.mxu1 %v802_v10  ;;  %2206 = vmatprep.mubr.msk.f32.mxu0 %vm3426_vm1, %v3412_v17  ;;  %v693_v10 = vrot.slane %v3792_v45, 7  ;;  %v4616_v8 = vrot.slane %v3792_v45, 1 }
  0x58   : > { %2505 = vmatpush3.msra.mxu1 %v786_v37  ;;  %2230 = vmatprep.mubr.msk.f32.mxu1 %vm3716_vm12, %v543_v1  ;;  %v2317_v1 = vld [vmem:[%s4531_s5 + $0x478] sm:$0xff]  ;;  %v3829_v37 = vsel %vm664_vm7, %v3780_v20, %v681_v15  ;;  %v822_v15 = vld [vmem:[%s4531_s5 + $0x120] sm:$0xff]  ;;  %v4619_v35 = vld [vmem:[#allocation16_spill] sm:$0xff] }
  0x59   : > { %v3809_v43 = vsel %vm725_vm5, %v753_v42, %v4560_v61  ;;  %2208 = vmatmul.mubr.msk.f32.gmra.mxu0 %vm3293_vm11, %v3780_v20  ;;  %2232 = vmatmul.mubr.msk.f32.vlgmr.msra.gmra.mxu1 %vm3293_vm11, %v665_v32  ;;  %v667_v42 = vsel %vm664_vm7, %v665_v32, %v666_v40  ;;  %v3839_v61 = vsel %vm664_vm7, %v692_v2, %v693_v10  ;;  %v3846_v40 = vrot.slane %v3523_v24, 7  ;;  %v2316_v24 = vld [vmem:[%s4531_s5 + $0x470] sm:$0xff]  ;;  %v2311_v10 = vld [vmem:[%s4531_s5 + $0x448] sm:$0xff] }
  0x5a   : > { %2770 = vmatprep.subr.mxu0 %v825_v49  ;;  %2209 = vmatprep.mubr.msk.f32.mxu0 %vm3426_vm1, %v3414_v18  ;;  %v690_v32 = vrot.slane %v3654_v6, 7 }
  0x5b   : > { %2771 = vmatpush3.msra.mxu0 %v825_v49  ;;  %2233 = vmatprep.mubr.msk.f32.mxu1 %vm3716_vm12, %v4602_v44  ;;  %v3926_v44 = vrot.slane %v3649_v3, 7  ;;  %v726_v49 = vrot.slane %v3751_v46, 1  ;;  %v818_v3 = vld [vmem:[%s4531_s5 + $0x100] sm:$0xff] }
  0x5c   : > { %2772 = vmatprep.subr.mxu0 %v824_v9  ;;  %2810 = vmatprep.subr.mxu1 %v2317_v1 }
  0x5d   : > { %993 = vmatmul.mubr.f32.gmra.mxu0 %v3829_v37  ;;  %1243 = vmatmul.mubr.f32.gmra.mxu1 %v667_v42  ;;  %v3957_v6 = vsel %vm664_vm7, %v3926_v44, %v690_v32  ;;  %v2285_v42 = vld [vmem:[%s4531_s5 + $0x378] sm:$0xff]  ;;  %v2295_v32 = vld [vmem:[%s4531_s5 + $0x3c8] sm:$0xff] }
  0x5e   : > { %2773 = vmatpush3.msra.mxu0 %v824_v9  ;;  %2210 = vmatprep.mubr.msk.f32.mxu0 %vm3493_vm8, %v3480_v52  ;;  %v727_v9 = vrot.slane %v3757_v33, 1  ;;  %v2301_v33 = vld [vmem:[%s4531_s5 + $0x3f8] sm:$0xff] }
  0x5f   : > { %2234 = vmatprep.mubr.msk.f32.mxu1 %vm3175_vm2, %v3188_v53  ;;  %2774 = vmatprep.subr.mxu0 %v823_v0  ;;  %v3875_v53 = vsel %vm664_vm7, %v3846_v40, %v684_v26  ;;  %v2300_v26 = vld [vmem:[%s4531_s5 + $0x3f0] sm:$0xff] }
  0x60   : > { %2775 = vmatpush3.msra.mxu0 %v823_v0  ;;  %2811 = vmatpush3.msra.mxu1 %v2317_v1  ;;  %v2313_v0 = vld [vmem:[%s4531_s5 + $0x458] sm:$0xff]  ;;  %v2312_v1 = vld [vmem:[%s4531_s5 + $0x450] sm:$0xff]  ;;  %v728_v46 = vsel %vm725_vm5, %v726_v49, %v727_v9 }
  0x61   : > { %2212 = vmatmul.mubr.msk.f32.gmra.mxu0 %vm3293_vm11, %v3846_v40  ;;  %2236 = vmatmul.mubr.msk.f32.gmra.mxu1 %vm3293_vm11, %v3273_v28  ;;  %v2315_v28 = vld [vmem:[%s4531_s5 + $0x468] sm:$0xff]  ;;  %v4604_v49 = vld [vmem:[#allocation4_spill] sm:$0xff] }
  0x62   : > { %2213 = vmatprep.mubr.msk.f32.mxu0 %vm3493_vm8, %v3482_v59  ;;  %2237 = vmatprep.mubr.msk.f32.mxu1 %vm3175_vm2, %v3193_v55  ;;  %v687_v55 = vrot.slane %v3588_v48, 7 }
  0x63   : > { %2776 = vmatprep.subr.mxu0 %v822_v15  ;;  %2812 = vmatprep.subr.mxu1 %v2316_v24 }
  0x64   : > { %2777 = vmatpush3.msra.mxu0 %v822_v15  ;;  %2813 = vmatpush3.msra.mxu1 %v2316_v24  ;;  %v3915_v48 = vsel %vm664_vm7, %v3886_v47, %v687_v55  ;;  %v2284_v15 = vld [vmem:[%s4531_s5 + $0x370] sm:$0xff]  ;;  %v2310_v24 = vld [vmem:[%s4531_s5 + $0x440] sm:$0xff] }
  0x65   : > { %1003 = vmatmul.mubr.f32.gmra.mxu0 %v3875_v53  ;;  %1253 = vmatmul.mubr.f32.gmra.mxu1 %v3345_v54  ;;  %v820_v54 = vld [vmem:[%s4531_s5 + $0x110] sm:$0xff]  ;;  %v2298_v55 = vld [vmem:[%s4531_s5 + $0x3e0] sm:$0xff] }
  0x66   : > { %2214 = vmatprep.mubr.msk.f32.mxu0 %vm3555_vm13, %v3536_v27  ;;  %2238 = vmatprep.mubr.msk.f32.mxu1 %vm3228_vm6, %v3222_v5 }
  0x67   : > { %2778 = vmatprep.subr.mxu0 %v821_v25  ;;  %2814 = vmatprep.subr.mxu1 %v2315_v28 }
  0x68   : > { %2779 = vmatpush3.msra.mxu0 %v821_v25  ;;  %2815 = vmatpush3.msra.mxu1 %v2315_v28  ;;  %v2299_v25 = vld [vmem:[%s4531_s5 + $0x3e8] sm:$0xff] }
  0x69   : > { %2216 = vmatmul.mubr.msk.f32.gmra.mxu0 %vm3293_vm11, %v3886_v47  ;;  %2240 = vmatmul.mubr.msk.f32.gmra.mxu1 %vm3293_vm11, %v3410_v16  ;;  %v2283_v28 = vld [vmem:[%s4531_s5 + $0x368] sm:$0xff] }
  0x6a   : > { %2217 = vmatprep.mubr.msk.f32.mxu0 %vm3555_vm13, %v3538_v23  ;;  %2241 = vmatprep.mubr.msk.f32.mxu1 %vm3228_vm6, %v3224_v7 }
  0x6b   : > { %2780 = vmatprep.subr.mxu0 %v820_v54  ;;  %2816 = vmatprep.subr.mxu1 %v2314_v12 }
  0x6c   : > { %2781 = vmatpush3.msra.mxu0 %v820_v54  ;;  %2817 = vmatpush3.msra.mxu1 %v2314_v12  ;;  %v2281_v54 = vld [vmem:[%s4531_s5 + $0x358] sm:$0xff]  ;;  %v2296_v12 = vld [vmem:[%s4531_s5 + $0x3d0] sm:$0xff] }
  0x6d   : > { %1013 = vmatmul.mubr.f32.gmra.mxu0 %v3915_v48  ;;  %1263 = vmatmul.mubr.f32.gmra.mxu1 %v3478_v51 }
  0x6e   : > { %2218 = vmatprep.mubr.msk.f32.mxu0 %vm3615_vm3, %v3602_v13  ;;  %2242 = vmatprep.mubr.msk.f32.mxu1 %vm3286_vm10, %v3275_v29 }
  0x6f   : > { %2782 = vmatprep.subr.mxu0 %v819_v62  ;;  %2818 = vmatprep.subr.mxu1 %v2313_v0 }
  0x70   : > { %2783 = vmatpush3.msra.mxu0 %v819_v62  ;;  %2819 = vmatpush3.msra.mxu1 %v2313_v0  ;;  %v4603_v62 = vld [vmem:[#allocation2_spill] sm:$0xff]  ;;  %v2280_v0 = vld [vmem:[%s4531_s5 + $0x350] sm:$0xff] }
  0x71   : > { %2220 = vmatmul.mubr.msk.f32.gmra.mxu0 %vm3293_vm11, %v3926_v44  ;;  %2244 = vmatmul.mubr.msk.f32.gmra.mxu1 %vm3293_vm11, %v3551_v39 }
  0x72   : > { %2221 = vmatprep.mubr.msk.f32.mxu0 %vm3615_vm3, %v3604_v21  ;;  %2245 = vmatprep.mubr.msk.f32.mxu1 %vm3286_vm10, %v3277_v30 }
  0x73   : > { %2784 = vmatprep.subr.mxu0 %v818_v3  ;;  %2820 = vmatprep.subr.mxu1 %v2312_v1 }
  0x74   : > { %2785 = vmatpush3.msra.mxu0 %v818_v3  ;;  %2821 = vmatpush3.msra.mxu1 %v2312_v1  ;;  %v2294_v3 = vld [vmem:[%s4531_s5 + $0x3c0] sm:$0xff]  ;;  %v4605_v1 = vld [vmem:[#allocation3_spill] sm:$0xff] }
  0x75   : > { %1023 = vmatmul.mubr.f32.gmra.mxu0 %v3957_v6  ;;  %1273 = vmatmul.mubr.f32.gmra.mxu1 %v3625_v50 }
  0x76   : > { %2246 = vmatprep.mubr.msk.f32.mxu1 %vm3360_vm14, %v3347_v56  ;;  %2786 = vmatprep.mubr.f32.mxu0 %v728_v46  ;;  %v2278_v46 = vld [vmem:[%s4531_s5 + $0x340] sm:$0xff] }
  0x77   : > { %2586 = vmatprep.subr.mxu0 %v2301_v33  ;;  %2822 = vmatprep.subr.mxu1 %v2311_v10  ;;  %v2293_v33 = vld [vmem:[%s4531_s5 + $0x3b8] sm:$0xff] }
  0x78   : > { %2823 = vmatpush3.msra.mxu1 %v2311_v10  ;;  %v4606_v10 = vld [vmem:[#allocation6_spill] sm:$0xff] }
  0x79   : > { %2248 = vmatmul.mubr.msk.f32.gmra.mxu1 %vm3293_vm11, %v3676_v34  ;;  %2787 = vmatmul.mubr.msk.f32.vlgmr.msra.gmra.mxu0 %vm725_vm5, %v727_v9  ;;  %v2279_v9 = vld [vmem:[%s4531_s5 + $0x348] sm:$0xff] }
  0x7a   : > { %2587 = vmatpush3.msra.mxu0 %v2285_v42  ;;  %2249 = vmatprep.mubr.msk.f32.mxu1 %vm3360_vm14, %v3349_v57  ;;  %v2277_v42 = vld [vmem:[%s4531_s5 + $0x338] sm:$0xff] }
  0x7b   : > { %2588 = vmatprep.subr.mxu0 %v2300_v26  ;;  %2789 = vmatprep.mubr.f32.mxu0 %v3281_v31  ;;  %v2282_v31 = vld [vmem:[%s4531_s5 + $0x360] sm:$0xff]  ;;  %v2309_v26 = vld [vmem:[%s4531_s5 + $0x438] sm:$0xff] }
  0x7c   : > { %2589 = vmatpush3.msra.mxu0 %v2284_v15  ;;  %2824 = vmatprep.subr.mxu1 %v2310_v24  ;;  %v2292_v15 = vld [vmem:[%s4531_s5 + $0x3b0] sm:$0xff] }
  0x7d   : > { %1283 = vmatmul.mubr.f32.gmra.mxu1 %v3731_v19  ;;  %2790 = vmatmul.mubr.msk.f32.gmra.mxu0 %vm725_vm5, %v3242_v14  ;;  %v2297_v14 = vld [vmem:[%s4531_s5 + $0x3d8] sm:$0xff] }
  0x7e   : > { %2590 = vmatprep.subr.mxu0 %v2299_v25  ;;  %2250 = vmatprep.mubr.msk.f32.mxu1 %vm3426_vm1, %v3412_v17  ;;  %v2276_v25 = vld [vmem:[%s4531_s5 + $0x330] sm:$0xff] }
  0x7f   : > { %2591 = vmatpush3.msra.mxu0 %v2283_v28  ;;  %2792 = vmatprep.mubr.f32.mxu0 %v3353_v58  ;;  %v2291_v28 = vld [vmem:[%s4531_s5 + $0x3a8] sm:$0xff] }
  0x80   : > { %2592 = vmatprep.subr.mxu0 %v2298_v55  ;;  %2825 = vmatpush3.msra.mxu1 %v2310_v24  ;;  %v4607_v24 = vld [vmem:[#allocation5_spill] sm:$0xff]  ;;  %v4608_v55 = vld [vmem:[#allocation8_spill] sm:$0xff] }
  0x81   : > { %2593 = vmatpush3.msra.mxu0 %v2282_v31  ;;  %2252 = vmatmul.mubr.msk.f32.gmra.mxu1 %vm3293_vm11, %v3780_v20  ;;  %v2308_v31 = vld [vmem:[%s4531_s5 + $0x430] sm:$0xff] }
  0x82   : > { %2793 = vmatmul.mubr.msk.f32.gmra.mxu0 %vm725_vm5, %v4603_v62  ;;  %2594 = vmatprep.subr.mxu0 %v2297_v14  ;;  %v2275_v14 = vld [vmem:[%s4531_s5 + $0x328] sm:$0xff] }
  0x83   : > { %2595 = vmatpush3.msra.mxu0 %v2281_v54  ;;  %2253 = vmatprep.mubr.msk.f32.mxu1 %vm3426_vm1, %v3414_v18  ;;  %v4609_v54 = vld [vmem:[#allocation7_spill] sm:$0xff] }
  0x84   : > { %2596 = vmatprep.subr.mxu0 %v2296_v12  ;;  %2795 = vmatprep.mubr.f32.mxu0 %v4604_v49  ;;  %v2290_v12 = vld [vmem:[%s4531_s5 + $0x3a0] sm:$0xff] }
  0x85   : > { %2597 = vmatpush3.msra.mxu0 %v2280_v0  ;;  %1293 = vmatmul.mubr.f32.gmra.mxu1 %v3829_v37  ;;  %v2307_v0 = vld [vmem:[%s4531_s5 + $0x428] sm:$0xff] }
  0x86   : > { %2796 = vmatmul.mubr.msk.f32.gmra.mxu0 %vm725_vm5, %v4605_v1  ;;  %2598 = vmatprep.subr.mxu0 %v2295_v32  ;;  %v2274_v32 = vld [vmem:[%s4531_s5 + $0x320] sm:$0xff] }
  0x87   : > { %2599 = vmatpush3.msra.mxu0 %v2279_v9  ;;  %2254 = vmatprep.mubr.msk.f32.mxu1 %vm3493_vm8, %v3480_v52  ;;  %v2289_v9 = vld [vmem:[%s4531_s5 + $0x398] sm:$0xff] }
  0x88   : > { %2600 = vmatprep.subr.mxu0 %v2294_v3  ;;  %2798 = vmatprep.mubr.f32.mxu0 %v4606_v10  ;;  %v4610_v3 = vld [vmem:[#allocation10_spill] sm:$0xff] }
  0x89   : > { %2601 = vmatpush3.msra.mxu0 %v2278_v46  ;;  %2256 = vmatmul.mubr.msk.f32.gmra.mxu1 %vm3293_vm11, %v3846_v40  ;;  %v2306_v46 = vld [vmem:[%s4531_s5 + $0x420] sm:$0xff] }
  0x8a   : > { %2799 = vmatmul.mubr.msk.f32.gmra.mxu0 %vm725_vm5, %v4607_v24  ;;  %2602 = vmatprep.subr.mxu0 %v2293_v33  ;;  %v2273_v33 = vld [vmem:[%s4531_s5 + $0x318] sm:$0xff] }
  0x8b   : > { %2603 = vmatpush3.msra.mxu0 %v2277_v42  ;;  %2826 = vmatprep.subr.mxu1 %v2309_v26  ;;  %v4611_v42 = vld [vmem:[#allocation9_spill] sm:$0xff] }
  0x8c   : > { %2604 = vmatprep.subr.mxu0 %v2292_v15  ;;  %2257 = vmatprep.mubr.msk.f32.mxu1 %vm3493_vm8, %v3482_v59  ;;  %v2305_v15 = vld [vmem:[%s4531_s5 + $0x418] sm:$0xff] }
  0x8d   : > { %2801 = vmatprep.mubr.f32.mxu0 %v4608_v55  ;;  %2605 = vmatpush3.msra.mxu0 %v2276_v25  ;;  %v2272_v25 = vld [vmem:[%s4531_s5 + $0x310] sm:$0xff] }
  0x8e   : > { %2827 = vmatpush3.msra.mxu1 %v2309_v26  ;;  %2802 = vmatmul.mubr.msk.f32.gmra.mxu0 %vm725_vm5, %v4609_v54  ;;  %v2288_v26 = vld [vmem:[%s4531_s5 + $0x390] sm:$0xff] }
  0x8f   : > { %1303 = vmatmul.mubr.f32.gmra.mxu1 %v3875_v53  ;;  %2606 = vmatprep.subr.mxu0 %v2291_v28  ;;  %v2287_v28 = vld [vmem:[%s4531_s5 + $0x388] sm:$0xff] }
  0x90   : > { %2828 = vmatprep.subr.mxu1 %v2308_v31  ;;  %2607 = vmatpush3.msra.mxu0 %v2275_v14  ;;  %v2304_v14 = vld [vmem:[%s4531_s5 + $0x410] sm:$0xff] }
  0x91   : > { %2829 = vmatpush3.msra.mxu1 %v2308_v31  ;;  %2608 = vmatprep.subr.mxu0 %v2290_v12  ;;  %v4612_v31 = vld [vmem:[#allocation12_spill] sm:$0xff]  ;;  %v2271_v12 = vld [vmem:[%s4531_s5 + $0x308] sm:$0xff] }
  0x92   : > { %2830 = vmatprep.subr.mxu1 %v2307_v0  ;;  %2258 = vmatprep.mubr.msk.f32.mxu1 %vm3555_vm13, %v3536_v27 }
  0x93   : > { %2804 = vmatprep.mubr.f32.mxu0 %v4610_v3  ;;  %2609 = vmatpush3.msra.mxu0 %v2274_v32  ;;  %v2286_v32 = vld [vmem:[%s4531_s5 + $0x380] sm:$0xff] }
  0x94   : > { %2831 = vmatpush3.msra.mxu1 %v2307_v0  ;;  %2805 = vmatmul.mubr.msk.f32.gmra.mxu0 %vm725_vm5, %v4611_v42  ;;  %v4613_v0 = vld [vmem:[#allocation11_spill] sm:$0xff] }
  0x95   : > { %2260 = vmatmul.mubr.msk.f32.gmra.mxu1 %vm3293_vm11, %v3886_v47  ;;  %2610 = vmatprep.subr.mxu0 %v2289_v9  ;;  %v2303_v9 = vld [vmem:[%s4531_s5 + $0x408] sm:$0xff] }
  0x96   : > { %2832 = vmatprep.subr.mxu1 %v2306_v46  ;;  %2611 = vmatpush3.msra.mxu0 %v2273_v33  ;;  %v2302_v33 = vld [vmem:[%s4531_s5 + $0x400] sm:$0xff] }
  0x97   : > { %2833 = vmatpush3.msra.mxu1 %v2306_v46  ;;  %2612 = vmatprep.subr.mxu0 %v2288_v26  ;;  %v2270_v46 = vld [vmem:[%s4531_s5 + $0x300] sm:$0xff] }
  0x98   : > { %2834 = vmatprep.subr.mxu1 %v2305_v15  ;;  %2261 = vmatprep.mubr.msk.f32.mxu1 %vm3555_vm13, %v3538_v23 }
  0x99   : > { %2807 = vmatprep.mubr.f32.mxu0 %v4612_v31  ;;  %2613 = vmatpush3.msra.mxu0 %v2272_v25 }
  0x9a   : > { %2835 = vmatpush3.msra.mxu1 %v2305_v15  ;;  %2808 = vmatmul.mubr.msk.f32.gmra.mxu0 %vm725_vm5, %v4613_v0 }
  0x9b   : > { %1313 = vmatmul.mubr.f32.gmra.mxu1 %v3915_v48  ;;  %2614 = vmatprep.subr.mxu0 %v2287_v28 }
  0x9c   : > { %2836 = vmatprep.subr.mxu1 %v2304_v14  ;;  %2615 = vmatpush3.msra.mxu0 %v2271_v12 }
  0x9d   : > { %2837 = vmatpush3.msra.mxu1 %v2304_v14  ;;  %2616 = vmatprep.subr.mxu0 %v2286_v32 }
  0x9e   : > { %2838 = vmatprep.subr.mxu1 %v2303_v9  ;;  %2617 = vmatpush3.msra.mxu0 %v2270_v46 }
  0x9f   : > { %2318 = vmatprep.mubr.msk.f32.mxu0 %vm3228_vm6, %v3222_v5  ;;  %2839 = vmatpush3.msra.mxu1 %v2303_v9  ;;  %v4614_v5 = vld [vmem:[#allocation14_spill] sm:$0xff] }
  0xa0   : > { %2320 = vmatmul.mubr.msk.f32.vlgmr.msra.gmra.mxu0 %vm3293_vm11, %v3410_v16  ;;  %2840 = vmatprep.subr.mxu1 %v2302_v33 }
  0xa1   : > { %2841 = vmatpush3.msra.mxu1 %v2302_v33  ;;  %2842 = vmatprep.mubr.f32.mxu1 %v3353_v58 }
  0xa2   : > { %2843 = vmatmul.mubr.msk.f32.vlgmr.msra.gmra.mxu1 %vm725_vm5, %v4603_v62  ;;  %2321 = vmatprep.mubr.msk.f32.mxu0 %vm3228_vm6, %v3224_v7  ;;  %v4615_v7 = vld [vmem:[#allocation13_spill] sm:$0xff] }
  0xa3   : > { %2845 = vmatprep.mubr.f32.mxu1 %v4604_v49 }
  0xa4   : > { %1582 = vmatmul.mubr.f32.gmra.mxu0 %v3478_v51 }
  0xa5   : > { %2322 = vmatprep.mubr.msk.f32.mxu0 %vm3286_vm10, %v3275_v29  ;;  %v4617_v29 = vld [vmem:[#allocation15_spill] sm:$0xff] }
  0xa6   : > { %2846 = vmatmul.mubr.msk.f32.gmra.mxu1 %vm725_vm5, %v4605_v1 }
  0xa7   : > { %2848 = vmatprep.mubr.f32.mxu1 %v4606_v10 }
  0xa8   : > { %2324 = vmatmul.mubr.msk.f32.gmra.mxu0 %vm3293_vm11, %v3551_v39 }
  0xa9   : > { %2325 = vmatprep.mubr.msk.f32.mxu0 %vm3286_vm10, %v3277_v30  ;;  %v4618_v30 = vmax.f32 %v4617_v29, 0.0 }
  0xaa   : > { %2849 = vmatmul.mubr.msk.f32.gmra.mxu1 %vm725_vm5, %v4607_v24 }
  0xab   : > { %2851 = vmatprep.mubr.f32.mxu1 %v4608_v55 }
  0xac   : > { %1592 = vmatmul.mubr.f32.gmra.mxu0 %v3625_v50 }
  0xad   : > { %2326 = vmatprep.mubr.msk.f32.mxu0 %vm3360_vm14, %v3347_v56  ;;  %v4620_v56 = vmax.f32 %v4619_v35, 0.0 }
  0xae   : > { %2852 = vmatmul.mubr.msk.f32.gmra.mxu1 %vm725_vm5, %v4609_v54 }
  0xaf   : > { %2854 = vmatprep.mubr.f32.mxu1 %v4610_v3 }
  0xb0   : > { %2328 = vmatmul.mubr.msk.f32.gmra.mxu0 %vm3293_vm11, %v3676_v34 }
  0xb1   : > { %2329 = vmatprep.mubr.msk.f32.mxu0 %vm3360_vm14, %v3349_v57 }
  0xb2   : > { %2855 = vmatmul.mubr.msk.f32.gmra.mxu1 %vm725_vm5, %v4611_v42 }
  0xb3   : > { %2857 = vmatprep.mubr.f32.mxu1 %v4612_v31 }
  0xb4   : > { %1602 = vmatmul.mubr.f32.gmra.mxu0 %v3731_v19 }
  0xb5   : > { %2330 = vmatprep.mubr.msk.f32.mxu0 %vm3426_vm1, %v3412_v17 }
  0xb6   : > { %2858 = vmatmul.mubr.msk.f32.gmra.mxu1 %vm725_vm5, %v4613_v0 }
  0xb7   : > { %2860 = vmatprep.mubr.f32.mxu1 %v4614_v5 }
  0xb8   : > { %2332 = vmatmul.mubr.msk.f32.gmra.mxu0 %vm3293_vm11, %v3780_v20 }
  0xb9   : > { %2333 = vmatprep.mubr.msk.f32.mxu0 %vm3426_vm1, %v3414_v18 }
  0xba   : > { %2861 = vmatmul.mubr.msk.f32.gmra.mxu1 %vm725_vm5, %v4615_v7 }
  0xbb   : > { %2863 = vmatprep.mubr.f32.mxu1 %v3809_v43 }
  0xbc   : > { %1612 = vmatmul.mubr.f32.gmra.mxu0 %v3829_v37 }
  0xbd   : > { %2334 = vmatprep.mubr.msk.f32.mxu0 %vm3493_vm8, %v3480_v52 }
  0xbe   : > { %2864 = vmatmul.mubr.msk.f32.gmra.mxu1 %vm725_vm5, %v4616_v8 }
  0xc0   : > { %2336 = vmatmul.mubr.msk.f32.gmra.mxu0 %vm3293_vm11, %v3846_v40 }
  0xc1   : > { %2337 = vmatprep.mubr.msk.f32.mxu0 %vm3493_vm8, %v3482_v59 }
  0xc4   : > { %1622 = vmatmul.mubr.f32.gmra.mxu0 %v3875_v53 }
  0xc5   : > { %2338 = vmatprep.mubr.msk.f32.mxu0 %vm3555_vm13, %v3536_v27 }
  0xc8   : > { %2340 = vmatmul.mubr.msk.f32.gmra.mxu0 %vm3293_vm11, %v3886_v47 }
  0xc9   : > { %2341 = vmatprep.mubr.msk.f32.mxu0 %vm3555_vm13, %v3538_v23 }
  0xcc   : > { %1632 = vmatmul.mubr.f32.gmra.mxu0 %v3915_v48 }
  0xcd   : > { %2342 = vmatprep.mubr.msk.f32.mxu0 %vm3615_vm3, %v3602_v13 }
  0xd0   : > { %2344 = vmatmul.mubr.msk.f32.gmra.mxu0 %vm3293_vm11, %v3926_v44 }
  0xd1   : > { %2345 = vmatprep.mubr.msk.f32.mxu0 %vm3615_vm3, %v3604_v21 }
  0xd4   : > { %1642 = vmatmul.mubr.f32.gmra.mxu0 %v3957_v6 }
  0xd5   : > { %2346 = vmatprep.mubr.msk.f32.mxu0 %vm3771_vm4, %v4618_v30 }
  0xd8   : > { %2348 = vmatmul.mubr.msk.f32.gmra.mxu0 %vm3293_vm11, %v692_v2 }
  0xd9   : > { %2349 = vmatprep.mubr.msk.f32.mxu0 %vm3771_vm4, %v4620_v56 }
  0xdc   : > { %1652 = vmatmul.mubr.f32.gmra.mxu0 %v3839_v61 }
  0xf1   : > { %v2394_v57 = vpop.f32.mrf.mxu0  ;;  %v2732_v58 = vpop.f32.mrf.mxu1 }
  0xf3   : > { %v2395_v60 = vpop.f32.mrf.mxu0  ;;  %v1094_v16 = vpop.f32.mrf.mxu1 }
  0xf4   : > { %v2396_v17 = vadd.f32 %v2395_v60, %v2394_v57 }
  0xf6   : > { %v4258_v18 = vadd.f32 %v2396_v17, %v1094_v16  ;;  %v2397_v19 = vpop.f32.mrf.mxu0  ;;  %v2735_v22 = vpop.f32.mrf.mxu1 }
  0xf8   : > { %v2398_v34 = vpop.f32.mrf.mxu0  ;;  %v1104_v51 = vpop.f32.mrf.mxu1 }
  0xf9   : > { %v2399_v38 = vadd.f32 %v2398_v34, %v2397_v19 }
  0xfb   : > { %v4260_v52 = vadd.f32 %v2732_v58, %v2399_v38  ;;  %v2400_v59 = vpop.f32.mrf.mxu0  ;;  %v2738_v63 = vpop.f32.mrf.mxu1 }
  0xfd   : > { %v2401_v4 = vpop.f32.mrf.mxu0  ;;  %v1114_v27 = vpop.f32.mrf.mxu1 }
  0xfe   : > { %v2402_v23 = vadd.f32 %v2401_v4, %v2400_v59 }
 0x100   : > { %v4262_v39 = vadd.f32 %v2402_v23, %v1104_v51  ;;  %v2403_v41 = vpop.f32.mrf.mxu0  ;;  %v2741_v13 = vpop.f32.mrf.mxu1 }
 0x102   : > { %v2404_v21 = vpop.f32.mrf.mxu0  ;;  %v1124_v50 = vpop.f32.mrf.mxu1 }
 0x103   : > { %v2405_v61 = vadd.f32 %v2404_v21, %v2403_v41 }
 0x105   : > { %v4264_v11 = vadd.f32 %v2735_v22, %v2405_v61  ;;  %v2406_v36 = vpop.f32.mrf.mxu0  ;;  %v2744_v20 = vpop.f32.mrf.mxu1 }
 0x107   : > { %v2407_v45 = vpop.f32.mrf.mxu0  ;;  %v1134_v43 = vpop.f32.mrf.mxu1 }
 0x108   : > { %v2408_v2 = vadd.f32 %v2407_v45, %v2406_v36 }
 0x10a   : > { %v4266_v37 = vadd.f32 %v2408_v2, %v1114_v27  ;;  %v2409_v40 = vpop.f32.mrf.mxu0  ;;  %v2747_v53 = vpop.f32.mrf.mxu1 }
 0x10c   : > { %v2410_v47 = vpop.f32.mrf.mxu0  ;;  %v1144_v48 = vpop.f32.mrf.mxu1 }
 0x10d   : > { %v2411_v44 = vadd.f32 %v2410_v47, %v2409_v40 }
 0x10f   : > { %v4268_v6 = vadd.f32 %v2738_v63, %v2411_v44  ;;  %v2412_v62 = vpop.f32.mrf.mxu0  ;;  %v2750_v49 = vpop.f32.mrf.mxu1 }
 0x111   : > { %v2413_v1 = vpop.f32.mrf.mxu0  ;;  %v1154_v10 = vpop.f32.mrf.mxu1 }
 0x112   : > { %v2414_v24 = vadd.f32 %v2413_v1, %v2412_v62 }
 0x114   : > { %v4270_v55 = vadd.f32 %v2414_v24, %v1124_v50  ;;  %v2415_v54 = vpop.f32.mrf.mxu0  ;;  %v2753_v3 = vpop.f32.mrf.mxu1 }
 0x116   : > { %v2416_v42 = vpop.f32.mrf.mxu0  ;;  %v1164_v26 = vpop.f32.mrf.mxu1 }
 0x117   : > { %v2417_v15 = vadd.f32 %v2416_v42, %v2415_v54 }
 0x119   : > { %v4272_v25 = vadd.f32 %v2741_v13, %v2417_v15  ;;  %v2418_v28 = vpop.f32.mrf.mxu0  ;;  %v4274_v31 = vpop.f32.mrf.mxu1 }
 0x11b   : > { %v2419_v14 = vpop.f32.mrf.mxu0  ;;  %v4276_v12 = vpop.f32.mrf.mxu1 }
 0x11c   : > { %v2420_v0 = vadd.f32 %v2419_v14, %v2418_v28 }
 0x11d   : > { %v2421_v32 = vpop.f32.mrf.mxu0  ;;  %v4278_v9 = vpop.f32.mrf.mxu1 }
 0x11e   : > { %v4280_v46 = vadd.f32 %v2420_v0, %v1134_v43 }
 0x11f   : > { %v2422_v33 = vpop.f32.mrf.mxu0  ;;  %v4282_v5 = vpop.f32.mrf.mxu1 }
 0x120   : > { %v2423_v7 = vadd.f32 %v2422_v33, %v2421_v32 }
 0x121   : > { %v2424_v8 = vpop.f32.mrf.mxu0  ;;  %v4284_v29 = vpop.f32.mrf.mxu1 }
 0x122   : > { %v4286_v30 = vadd.f32 %v2744_v20, %v2423_v7 }
 0x123   : > { %v2425_v35 = vpop.f32.mrf.mxu0  ;;  %v4288_v56 = vpop.f32.mrf.mxu1 }
 0x124   : > { %v2426_v57 = vadd.f32 %v2425_v35, %v2424_v8 }
 0x125   : > { %v2427_v58 = vpop.f32.mrf.mxu0  ;;  %v4290_v60 = vpop.f32.mrf.mxu1 }
 0x126   : > { %v4292_v16 = vadd.f32 %v2426_v57, %v1144_v48 }
 0x127   : > { %v2428_v17 = vpop.f32.mrf.mxu0  ;;  %v4294_v19 = vpop.f32.mrf.mxu1 }
 0x128   : > { %v2429_v22 = vadd.f32 %v2428_v17, %v2427_v58 }
 0x129   : > { %v2430_v34 = vpop.f32.mrf.mxu0  ;;  %v4296_v51 = vpop.f32.mrf.mxu1 }
 0x12a   : > { %v4298_v38 = vadd.f32 %v2747_v53, %v2429_v22 }
 0x12b   : > { %v2431_v59 = vpop.f32.mrf.mxu0  ;;  %v4300_v63 = vpop.f32.mrf.mxu1 }
 0x12c   : > { %4621 = vst [vmem:[#allocation2_spill] sm:$0xff] %v4298_v38  ;;  %v2432_v4 = vadd.f32 %v2431_v59, %v2430_v34 }
 0x12d   : > { %v2433_v27 = vpop.f32.mrf.mxu0  ;;  %v4302_v23 = vpop.f32.mrf.mxu1 }
 0x12e   : > { %v4304_v41 = vadd.f32 %v2432_v4, %v1154_v10 }
 0x12f   : > { %v2434_v13 = vpop.f32.mrf.mxu0  ;;  %v4306_v21 = vpop.f32.mrf.mxu1 }
 0x130   : > { %4622 = vst [vmem:[#allocation4_spill] sm:$0xff] %v4304_v41  ;;  %v2435_v50 = vadd.f32 %v2434_v13, %v2433_v27 }
 0x131   : > { %v2436_v61 = vpop.f32.mrf.mxu0  ;;  %v4308_v36 = vpop.f32.mrf.mxu1 }
 0x132   : > { %v1160_v20 = vadd.f32 %v2750_v49, %v2435_v50 }
 0x133   : > { %v2437_v45 = vpop.f32.mrf.mxu0  ;;  %v4310_v43 = vpop.f32.mrf.mxu1 }
 0x134   : > { %v2438_v2 = vadd.f32 %v2437_v45, %v2436_v61 }
 0x135   : > { %v2439_v40 = vpop.f32.mrf.mxu0  ;;  %v4312_v53 = vpop.f32.mrf.mxu1 }
 0x136   : > { %v4314_v47 = vadd.f32 %v2438_v2, %v1164_v26 }
 0x137   : > { %v2440_v48 = vpop.f32.mrf.mxu0  ;;  %v4316_v44 = vpop.f32.mrf.mxu1 }
 0x138   : > { %4623 = vst [vmem:[#allocation3_spill] sm:$0xff] %v4314_v47  ;;  %v2441_v62 = vadd.f32 %v2440_v48, %v2439_v40 }
 0x139   : > { %v4318_v1 = vpop.f32.mrf.mxu1  ;;  %v2788_v10 = vpop.f32.mrf.mxu0 }
 0x13a   : > { %v1170_v24 = vadd.f32 %v2753_v3, %v2441_v62 }
 0x13b   : > { %v4320_v54 = vpop.f32.mrf.mxu1  ;;  %v1384_v49 = vpop.f32.mrf.mxu0 }
 0x13d   : > { %v4322_v42 = vpop.f32.mrf.mxu1  ;;  %v4324_v15 = vpop.f32.mrf.mxu0 }
 0x13f   : > { %v4326_v28 = vpop.f32.mrf.mxu1  ;;  %v1394_v14 = vpop.f32.mrf.mxu0 }
 0x141   : > { %v4328_v26 = vpop.f32.mrf.mxu1 }
 0x142   : > { %v4330_v0 = vpop.f32.mrf.mxu0 }
 0x143   : > { %v4332_v32 = vpop.f32.mrf.mxu1 }
 0x144   : > { %v4334_v33 = vpop.f32.mrf.mxu0 }
 0x145   : > { %v4336_v7 = vpop.f32.mrf.mxu1 }
 0x146   : > { %v4338_v3 = vpop.f32.mrf.mxu0 }
 0x147   : > { %v4340_v8 = vpop.f32.mrf.mxu1 }
 0x148   : > { %v4342_v35 = vpop.f32.mrf.mxu0 }
 0x149   : > { %v4344_v57 = vpop.f32.mrf.mxu1 }
 0x14a   : > { %4624 = vst [vmem:[#allocation6_spill] sm:$0xff] %v4344_v57  ;;  %v4346_v58 = vpop.f32.mrf.mxu0 }
 0x14b   : > { %v4348_v17 = vpop.f32.mrf.mxu1 }
 0x14c   : > { %4625 = vst [vmem:[#allocation5_spill] sm:$0xff] %v4348_v17  ;;  %v4350_v22 = vpop.f32.mrf.mxu0 }
 0x14e   : > { %v4352_v34 = vpop.f32.mrf.mxu0 }
 0x14f   : > { %4626 = vst [vmem:[#allocation8_spill] sm:$0xff] %v4352_v34  ;;  %v2545_v59 = vpop.f32.mrf.mxu1 }
 0x150   : > { %v4354_v4 = vpop.f32.mrf.mxu0 }
 0x151   : > { %v2546_v27 = vpop.f32.mrf.mxu1 }
 0x152   : > { %v2547_v13 = vadd.f32 %v2546_v27, %v2545_v59  ;;  %v2508_v59 = vadd.f32 %v4276_v12, %v4274_v31 }
 0x154   : > { %v1305_v50 = vadd.f32 %v2547_v13, %v1160_v20  ;;  %v2806_v61 = vpop.f32.mrf.mxu0 }
 0x155   : > { %v4356_v45 = vpop.f32.mrf.mxu1 }
 0x156   : > { %4627 = vst [vmem:[#allocation7_spill] sm:$0xff] %v4356_v45  ;;  %v4358_v2 = vadd.f32 %v2806_v61, %v1305_v50  ;;  %v4360_v40 = vpop.f32.mrf.mxu0 }
 0x157   : > { %4629 = vst [vmem:[#allocation9_spill] sm:$0xff] %v4360_v40  ;;  %v4362_v48 = vpop.f32.mrf.mxu1  ;;  %v1240_v40 = vadd.f32 %v2508_v59, %v4258_v18 }
 0x158   : > { %4628 = vst [vmem:[#allocation10_spill] sm:$0xff] %v4358_v2  ;;  %4630 = vst [vmem:[#allocation12_spill] sm:$0xff] %v4362_v48  ;;  %v2511_v2 = vadd.f32 %v4282_v5, %v4278_v9 }
 0x159   : > { %v1385_v17 = vadd.f32 %v1384_v49, %v1240_v40  ;;  %v2517_v40 = vadd.f32 %v4294_v19, %v4290_v60 }
 0x15a   : > { %v2809_v62 = vpop.f32.mrf.mxu0  ;;  %v1245_v18 = vadd.f32 %v2511_v2, %v4260_v52  ;;  %v2520_v2 = vadd.f32 %v4300_v63, %v4296_v51 }
 0x15b   : > { %v2551_v47 = vpop.f32.mrf.mxu1 }
 0x15c   : > { %v4364_v41 = vpop.f32.mrf.mxu0 }
 0x15d   : > { %4631 = vst [vmem:[#allocation11_spill] sm:$0xff] %v4364_v41  ;;  %v2552_v34 = vpop.f32.mrf.mxu1 }
 0x15e   : > { %v2553_v38 = vadd.f32 %v2552_v34, %v2551_v47 }
 0x160   : > { %v1315_v20 = vadd.f32 %v2553_v38, %v1170_v24  ;;  %v2618_v27 = vpop.f32.mrf.mxu0  ;;  %v2514_v38 = vadd.f32 %v4288_v56, %v4284_v29 }
 0x162   : > { %v4368_v13 = vadd.f32 %v2809_v62, %v1315_v20  ;;  %v2619_v50 = vpop.f32.mrf.mxu0  ;;  %v2844_v61 = vpop.f32.mrf.mxu1  ;;  %v1255_v62 = vadd.f32 %v2517_v40, %v4264_v11  ;;  %v2523_v20 = vadd.f32 %v4306_v21, %v4302_v23 }
 0x163   : > { %v2620_v48 = vadd.f32 %v2619_v50, %v2618_v27 }
 0x164   : > { %v2621_v45 = vpop.f32.mrf.mxu0  ;;  %v1723_v41 = vpop.f32.mrf.mxu1  ;;  %v1400_v19 = vadd.f32 %v4324_v15, %v1255_v62  ;;  %v1265_v23 = vadd.f32 %v2523_v20, %v4268_v6  ;;  %v2535_v20 = vadd.f32 %v4326_v28, %v4322_v42 }
 0x165   : > { %v1724_v57 = vadd.f32 %v2620_v48, %v1723_v41  ;;  %v1390_v41 = vadd.f32 %v2788_v10, %v1245_v18  ;;  %v1250_v48 = vadd.f32 %v2514_v38, %v4262_v39 }
 0x166   : > { %v2622_v31 = vpop.f32.mrf.mxu0  ;;  %v2847_v12 = vpop.f32.mrf.mxu1  ;;  %v1285_v42 = vadd.f32 %v2535_v20, %v4286_v30 }
 0x167   : > { %v4383_v9 = vadd.f32 %v1724_v57, %v1385_v17  ;;  %v2623_v5 = vadd.f32 %v2622_v31, %v2621_v45  ;;  %v1395_v57 = vadd.f32 %v1394_v14, %v1250_v48  ;;  %v2529_v48 = vadd.f32 %v4316_v44, %v4312_v53 }
 0x168   : > { %v2624_v47 = vpop.f32.mrf.mxu0  ;;  %v1733_v34 = vpop.f32.mrf.mxu1 }
 0x169   : > { %1818 = vst [vmem:[%s4378_s16] sm:$0xff] %v4383_v9  ;;  %v1729_v24 = vadd.f32 %v2844_v61, %v2623_v5  ;;  %v1260_v61 = vadd.f32 %v2520_v2, %v4266_v37  ;;  %v2526_v37 = vadd.f32 %v4310_v43, %v4308_v36  ;;  %v2532_v2 = vadd.f32 %v4320_v54, %v4318_v1 }
 0x16a   : > { %v2625_v49 = vpop.f32.mrf.mxu0  ;;  %v2850_v45 = vpop.f32.mrf.mxu1  ;;  %v1275_v53 = vadd.f32 %v2529_v48, %v4272_v25 }
 0x16b   : > { %v4390_v29 = vadd.f32 %v1729_v24, %v1390_v41  ;;  %v2626_v56 = vadd.f32 %v2625_v49, %v2624_v47  ;;  %v1405_v15 = vadd.f32 %v4334_v33, %v1260_v61  ;;  %v1410_v33 = vadd.f32 %v4330_v0, %v1265_v23 }
 0x16c   : > { %v2627_v52 = vpop.f32.mrf.mxu0  ;;  %v1743_v50 = vpop.f32.mrf.mxu1  ;;  %v1270_v36 = vadd.f32 %v2526_v37, %v4270_v55  ;;  %v1280_v1 = vadd.f32 %v2532_v2, %v4280_v46 }
 0x16d   : > { %1819 = vst [vmem:[%s4378_s16 + $0x8] sm:$0xff] %v4390_v29  ;;  %v1734_v17 = vadd.f32 %v2626_v56, %v1733_v34  ;;  %v1834_v11 = vadd.f32 %v4390_v29, %v4383_v9 }
 0x16e   : > { %v2628_v10 = vpop.f32.mrf.mxu0  ;;  %v2853_v18 = vpop.f32.mrf.mxu1 }
 0x16f   : > { %v4397_v59 = vadd.f32 %v1734_v17, %v1395_v57  ;;  %v2629_v60 = vadd.f32 %v2628_v10, %v2627_v52  ;;  %v1415_v57 = vadd.f32 %v4342_v35, %v1270_v36  ;;  %v4635_v36 = vld [vmem:[#allocation8_spill] sm:$0xff] }
 0x170   : > { %v2630_v39 = vpop.f32.mrf.mxu0  ;;  %v1753_v40 = vpop.f32.mrf.mxu1 }
 0x171   : > { %1820 = vst [vmem:[%s4378_s16 + $0x10] sm:$0xff] %v4397_v59  ;;  %v1739_v14 = vadd.f32 %v2847_v12, %v2629_v60  ;;  %v1835_v38 = vadd.f32 %v1834_v11, %v4397_v59  ;;  %v1420_v60 = vadd.f32 %v4338_v3, %v1275_v53 }
 0x172   : > { %v2631_v27 = vpop.f32.mrf.mxu0 }
 0x173   : > { %v4407_v51 = vadd.f32 %v1739_v14, %v1400_v19  ;;  %v2632_v63 = vadd.f32 %v2631_v27, %v2630_v39 }
 0x174   : > { %v2633_v31 = vpop.f32.mrf.mxu0 }
 0x175   : > { %1821 = vst [vmem:[%s4378_s16 + $0x18] sm:$0xff] %v4407_v51  ;;  %v1744_v12 = vadd.f32 %v2632_v63, %v1743_v50  ;;  %v1836_v47 = vadd.f32 %v1835_v38, %v4407_v51  ;;  %v1425_v50 = vadd.f32 %v4350_v22, %v1280_v1  ;;  %v1430_v38 = vadd.f32 %v4346_v58, %v1285_v42 }
 0x176   : > { %v2634_v21 = vpop.f32.mrf.mxu0 }
 0x177   : > { %v4416_v5 = vadd.f32 %v1744_v12, %v1405_v15  ;;  %v2635_v41 = vadd.f32 %v2634_v21, %v2633_v31  ;;  %v2538_v31 = vadd.f32 %v4332_v32, %v4328_v26 }
 0x178   : > { %v2636_v24 = vpop.f32.mrf.mxu0 }
 0x179   : > { %1822 = vst [vmem:[%s4378_s16 + $0x20] sm:$0xff] %v4416_v5  ;;  %v1837_v49 = vadd.f32 %v1836_v47, %v4416_v5  ;;  %v1749_v34 = vadd.f32 %v2850_v45, %v2635_v41  ;;  %v2856_v45 = vpop.f32.mrf.mxu1  ;;  %v1290_v26 = vadd.f32 %v2538_v31, %v4292_v16 }
 0x17a   : > { %v2637_v6 = vpop.f32.mrf.mxu0 }
 0x17b   : > { %v4426_v43 = vadd.f32 %v1749_v34, %v1410_v33  ;;  %v2638_v56 = vadd.f32 %v2637_v6, %v2636_v24  ;;  %v1763_v14 = vpop.f32.mrf.mxu1  ;;  %v1435_v47 = vadd.f32 %v4354_v4, %v1290_v26  ;;  %v4633_v34 = vld [vmem:[#allocation5_spill] sm:$0xff] }
 0x17c   : > { %v2639_v52 = vpop.f32.mrf.mxu0 }
 0x17d   : > { %1823 = vst [vmem:[%s4378_s16 + $0x28] sm:$0xff] %v4426_v43  ;;  %v1754_v0 = vadd.f32 %v2638_v56, %v1753_v40  ;;  %v1838_v17 = vadd.f32 %v1837_v49, %v4426_v43  ;;  %v2859_v63 = vpop.f32.mrf.mxu1  ;;  %v4632_v49 = vld [vmem:[#allocation6_spill] sm:$0xff] }
 0x17e   : > { %v2640_v10 = vpop.f32.mrf.mxu0  ;;  %v2544_v6 = vadd.f32 %v4633_v34, %v4632_v49 }
 0x17f   : > { %v4435_v55 = vadd.f32 %v1754_v0, %v1415_v57  ;;  %v2641_v44 = vadd.f32 %v2640_v10, %v2639_v52  ;;  %v1773_v21 = vpop.f32.mrf.mxu1 }
 0x180   : > { %v2642_v62 = vpop.f32.mrf.mxu0 }
 0x181   : > { %1824 = vst [vmem:[%s4378_s16 + $0x30] sm:$0xff] %v4435_v55  ;;  %v1839_v35 = vadd.f32 %v1838_v17, %v4435_v55  ;;  %v1759_v39 = vadd.f32 %v2853_v18, %v2641_v44  ;;  %v2541_v18 = vadd.f32 %v4340_v8, %v4336_v7  ;;  %v2862_v33 = vpop.f32.mrf.mxu1  ;;  %v4634_v7 = vld [vmem:[#allocation2_spill] sm:$0xff]  ;;  %v4636_v17 = vld [vmem:[#allocation4_spill] sm:$0xff]  ;;  %v4637_v44 = vld [vmem:[#allocation7_spill] sm:$0xff] }
 0x182   : > { %v2643_v19 = vpop.f32.mrf.mxu0  ;;  %v1300_v10 = vadd.f32 %v2544_v6, %v4636_v17 }
 0x183   : > { %v4444_v25 = vadd.f32 %v1759_v39, %v1420_v60  ;;  %v2644_v54 = vadd.f32 %v2643_v19, %v2642_v62  ;;  %v1295_v8 = vadd.f32 %v2541_v18, %v4634_v7  ;;  %v1783_v0 = vpop.f32.mrf.mxu1  ;;  %v4638_v62 = vld [vmem:[#allocation12_spill] sm:$0xff] }
 0x184   : > { %v2645_v27 = vpop.f32.mrf.mxu0  ;;  %v2550_v60 = vadd.f32 %v4638_v62, %v4637_v44 }
 0x185   : > { %1825 = vst [vmem:[%s4378_s16 + $0x38] sm:$0xff] %v4444_v25  ;;  %v1764_v3 = vadd.f32 %v2644_v54, %v1763_v14  ;;  %v1840_v61 = vadd.f32 %v1839_v35, %v4444_v25  ;;  %v1440_v56 = vadd.f32 %v4635_v36, %v1295_v8  ;;  %v4639_v35 = vld [vmem:[#allocation9_spill] sm:$0xff]  ;;  %v2865_v1 = vpop.f32.mrf.mxu1 }
 0x186   : > { %v2646_v11 = vpop.f32.mrf.mxu0  ;;  %v1445_v39 = vadd.f32 %v4639_v35, %v1300_v10 }
 0x187   : > { %v4453_v46 = vadd.f32 %v1764_v3, %v1425_v50  ;;  %v2647_v28 = vadd.f32 %v2646_v11, %v2645_v27  ;;  %v4640_v3 = vld [vmem:[#allocation3_spill] sm:$0xff]  ;;  %v1793_v42 = vpop.f32.mrf.mxu1 }
 0x188   : > { %v2648_v15 = vpop.f32.mrf.mxu0 }
 0x189   : > { %1826 = vst [vmem:[%s4378_s16 + $0x40] sm:$0xff] %v4453_v46  ;;  %v1841_v22 = vadd.f32 %v1840_v61, %v4453_v46  ;;  %v1769_v12 = vadd.f32 %v2856_v45, %v2647_v28  ;;  %v1310_v61 = vadd.f32 %v2550_v60, %v4640_v3  ;;  %v4641_v28 = vld [vmem:[#allocation10_spill] sm:$0xff] }
 0x18a   : > { %v2649_v23 = vpop.f32.mrf.mxu0 }
 0x18b   : > { %v4462_v30 = vadd.f32 %v1769_v12, %v1430_v38  ;;  %v2650_v32 = vadd.f32 %v2649_v23, %v2648_v15  ;;  %v4642_v12 = vld [vmem:[#allocation11_spill] sm:$0xff] }
 0x18c   : > { %v2651_v37 = vpop.f32.mrf.mxu0  ;;  %v1455_v23 = vadd.f32 %v4642_v12, %v1310_v61 }
 0x18d   : > { %1827 = vst [vmem:[%s4378_s16 + $0x48] sm:$0xff] %v4462_v30  ;;  %v1774_v58 = vadd.f32 %v2650_v32, %v1773_v21  ;;  %v1842_v41 = vadd.f32 %v1841_v22, %v4462_v30 }
 0x18e   : > { %v2652_v24 = vpop.f32.mrf.mxu0 }
 0x18f   : > { %v4471_v16 = vadd.f32 %v1774_v58, %v1435_v47  ;;  %v2653_v40 = vadd.f32 %v2652_v24, %v2651_v37 }
 0x190   : > { %v2654_v48 = vpop.f32.mrf.mxu0 }
 0x191   : > { %1828 = vst [vmem:[%s4378_s16 + $0x50] sm:$0xff] %v4471_v16  ;;  %v1843_v4 = vadd.f32 %v1842_v41, %v4471_v16  ;;  %v1779_v52 = vadd.f32 %v2859_v63, %v2653_v40 }
 0x192   : > { %v2655_v57 = vpop.f32.mrf.mxu0 }
 0x193   : > { %v1813_v45 = vadd.f32 %v1779_v52, %v1440_v56  ;;  %v2656_v2 = vadd.f32 %v2655_v57, %v2654_v48 }
 0x194   : > { %v2657_v53 = vpop.f32.mrf.mxu0 }
 0x195   : > { %1829 = vst [vmem:[%s4378_s16 + $0x58] sm:$0xff] %v1813_v45  ;;  %v1784_v19 = vadd.f32 %v2656_v2, %v1783_v0  ;;  %v1844_v14 = vadd.f32 %v1843_v4, %v1813_v45 }
 0x196   : > { %v2658_v20 = vpop.f32.mrf.mxu0 }
 0x197   : > { %v1814_v54 = vadd.f32 %v1784_v19, %v1445_v39  ;;  %v2659_v27 = vadd.f32 %v2658_v20, %v2657_v53 }
 0x198   : > { %v2660_v50 = vpop.f32.mrf.mxu0 }
 0x199   : > { %1830 = vst [vmem:[%s4378_s16 + $0x60] sm:$0xff] %v1814_v54  ;;  %v1845_v11 = vadd.f32 %v1844_v14, %v1814_v54  ;;  %v1789_v63 = vadd.f32 %v2862_v33, %v2659_v27 }
 0x19a   : > { %v2661_v31 = vpop.f32.mrf.mxu0 }
 0x19b   : > { %v1815_v15 = vadd.f32 %v1789_v63, %v4641_v28  ;;  %v2662_v38 = vadd.f32 %v2661_v31, %v2660_v50 }
 0x19c   : > { %v2663_v22 = vpop.f32.mrf.mxu0 }
 0x19d   : > { %1831 = vst [vmem:[%s4378_s16 + $0x68] sm:$0xff] %v1815_v15  ;;  %v1794_v21 = vadd.f32 %v2662_v38, %v1793_v42  ;;  %v1846_v18 = vadd.f32 %v1845_v11, %v1815_v15 }
 0x19e   : > { %v2664_v26 = vpop.f32.mrf.mxu0 }
 0x19f   : > { %v1816_v32 = vadd.f32 %v1794_v21, %v1455_v23  ;;  %v2665_v37 = vadd.f32 %v2664_v26, %v2663_v22 }
 0x1a1   : > { %1832 = vst [vmem:[%s4378_s16 + $0x70] sm:$0xff] %v1816_v32  ;;  %v1847_v47 = vadd.f32 %v1846_v18, %v1816_v32  ;;  %v1799_v58 = vadd.f32 %v2865_v1, %v2665_v37 }
 0x1a3   : > { %v1817_v41 = vadd.f32 %v1799_v58, %v4368_v13 }
 0x1a5   : > { %1833 = vst [vmem:[%s4378_s16 + $0x78] sm:$0xff] %v1817_v41  ;;  %v1848_v24 = vadd.f32 %v1847_v47, %v1817_v41 }
 0x1a7   : > { %v1849_v33 = vrot.slane %v1848_v24, 4 }
 0x1a9   : > { %v1850_v49 = vadd.f32 %v1849_v33, %v1848_v24 }
 0x1ab   : > { %v1851_v34 = vrot.slane %v1850_v49, 2 }
 0x1ad   : > { %v1852_v6 = vadd.f32 %v1851_v34, %v1850_v49 }
 0x1af   : > { %v1853_v7 = vrot.slane %v1852_v6, 1 }
 0x1b1   : > { %v1854_v8 = vadd.f32 %v1853_v7, %v1852_v6 }
 0x1b3   : > { %v1856_v40 = vmul.f32 0.0078125, %v1854_v8  ;;  %1873 = vst [vmem:[%s4496_s18] sm:$0x1] %v1854_v8 }
 0x1b5   : > { %v1857_v13 = vsub.f32 %v4383_v9, %v1856_v40  ;;  %v1858_v48 = vsub.f32 %v4390_v29, %v1856_v40  ;;  %v1860_v36 = vsub.f32 %v4407_v51, %v1856_v40  ;;  %v1861_v56 = vsub.f32 %v4416_v5, %v1856_v40 }
 0x1b6   : > { %v1862_v4 = vsub.f32 %v4426_v43, %v1856_v40  ;;  %v1863_v52 = vsub.f32 %v4435_v55, %v1856_v40  ;;  %v1864_v57 = vsub.f32 %v4444_v25, %v1856_v40  ;;  %v1865_v0 = vsub.f32 %v4453_v46, %v1856_v40 }
 0x1b7   : > { %v1866_v17 = vsub.f32 %v4462_v30, %v1856_v40  ;;  %v1867_v10 = vsub.f32 %v4471_v16, %v1856_v40  ;;  %v1868_v2 = vsub.f32 %v1813_v45, %v1856_v40  ;;  %v1869_v9 = vsub.f32 %v1814_v54, %v1856_v40 }
 0x1b8   : > { %v1870_v53 = vsub.f32 %v1815_v15, %v1856_v40  ;;  %v1871_v29 = vsub.f32 %v1816_v32, %v1856_v40  ;;  %v1872_v44 = vsub.f32 %v1817_v41, %v1856_v40  ;;  %v1859_v51 = vsub.f32 %v4397_v59, %v1856_v40 }
 0x1b9   : > { %v1874_v5 = vmul.f32 %v1857_v13, %v1857_v13  ;;  %v1875_v62 = vmul.f32 %v1858_v48, %v1858_v48  ;;  %v1877_v55 = vmul.f32 %v1860_v36, %v1860_v36  ;;  %v1878_v25 = vmul.f32 %v1861_v56, %v1861_v56 }
 0x1ba   : > { %v1876_v43 = vmul.f32 %v1859_v51, %v1859_v51  ;;  %v1879_v46 = vmul.f32 %v1862_v4, %v1862_v4  ;;  %v1880_v30 = vmul.f32 %v1863_v52, %v1863_v52  ;;  %v1881_v16 = vmul.f32 %v1864_v57, %v1864_v57 }
 0x1bb   : > { %v1890_v60 = vadd.f32 %v1875_v62, %v1874_v5  ;;  %v1882_v20 = vmul.f32 %v1865_v0, %v1865_v0  ;;  %v1883_v54 = vmul.f32 %v1866_v17, %v1866_v17  ;;  %v1884_v50 = vmul.f32 %v1867_v10, %v1867_v10 }
 0x1bc   : > { %v1885_v3 = vmul.f32 %v1868_v2, %v1868_v2  ;;  %v1886_v11 = vmul.f32 %v1869_v9, %v1869_v9  ;;  %v1887_v31 = vmul.f32 %v1870_v53, %v1870_v53  ;;  %v1888_v28 = vmul.f32 %v1871_v29, %v1871_v29 }
 0x1bd   : > { %v1891_v35 = vadd.f32 %v1890_v60, %v1876_v43  ;;  %v1889_v38 = vmul.f32 %v1872_v44, %v1872_v44 }
 0x1bf   : > { %v1892_v39 = vadd.f32 %v1891_v35, %v1877_v55 }
 0x1c1   : > { %v1893_v19 = vadd.f32 %v1892_v39, %v1878_v25 }
 0x1c3   : > { %v1894_v14 = vadd.f32 %v1893_v19, %v1879_v46 }
 0x1c5   : > { %v1895_v45 = vadd.f32 %v1894_v14, %v1880_v30 }
 0x1c7   : > { %v1896_v1 = vadd.f32 %v1895_v45, %v1881_v16 }
 0x1c9   : > { %v1897_v27 = vadd.f32 %v1896_v1, %v1882_v20 }
 0x1cb   : > { %v1898_v59 = vadd.f32 %v1897_v27, %v1883_v54 }
 0x1cd   : > { %v1899_v61 = vadd.f32 %v1898_v59, %v1884_v50 }
 0x1cf   : > { %v1900_v63 = vadd.f32 %v1899_v61, %v1885_v3 }
 0x1d1   : > { %v1901_v42 = vadd.f32 %v1900_v63, %v1886_v11 }
 0x1d3   : > { %v1902_v15 = vadd.f32 %v1901_v42, %v1887_v31 }
 0x1d5   : > { %v1903_v22 = vadd.f32 %v1902_v15, %v1888_v28 }
 0x1d7   : > { %v1904_v12 = vadd.f32 %v1903_v22, %v1889_v38 }
 0x1d9   : > { %v1905_v23 = vrot.slane %v1904_v12, 4 }
 0x1db   : > { %v1906_v21 = vadd.f32 %v1905_v23, %v1904_v12 }
 0x1dd   : > { %v1907_v18 = vrot.slane %v1906_v21, 2 }
 0x1df   : > { %v1908_v26 = vadd.f32 %v1907_v18, %v1906_v21 }
 0x1e1   : > { %v1909_v32 = vrot.slane %v1908_v26, 1 }
 0x1e3   : > { %v1910_v37 = vadd.f32 %v1909_v32, %v1908_v26 }
 0x1e5   : > { %1911 = vst [vmem:[%s4496_s18 + $0x1] sm:$0x1] %v1910_v37 }
 0x1e6 PF: > { %s18_s28 = sadd.s32 1, %s2944_s28   ;;  %s4643_s24 = smov %s2936_s26 }
 0x1e7   : > { %p15_p11 = scmp.ge.s32.totalorder %s18_s28, 6   ;;  %s4644_s25 = smov %s2940_s27 }
 0x1e8   : > { %s4645_s26 = smov %s4648_s29  ;;  %s4646_s27 = smov %s4652_s30 }
 0x1e9   :  { %17 = sbr.rel (!%p15_p11) target bundleno = 3 (0x3), region = 94 }

</bundles_post_ra>
